<compile_context>
chip_gen: v7x
topology: tpu7x:2x2x1
jax: 0.10.0
libtpu: 0.0.40
codegen_flags: <defaults>
</compile_context>

<pallas_src>
import jax
import jax.numpy as jnp
import numpy as np
from jax.experimental import pallas as pl
from jax.experimental.pallas import tpu as pltpu

BERT_SIZE = 768
MLP_SIZE = 300
LANE = 128


def _round_up(x, m):
    return (x + m - 1) // m * m


def sr_matcher_kernel(
    q_ref,     # (Bb, S, 768)   query_embs block
    b_ref,     # (Bb, S, 768)   base_embs block
    srl_ref,   # (Bb, S, Vp)    SRL_probs block (V padded to Vp lanes)
    wq_ref, bq_ref,      # query_emb2vector: (768,300), (1,300)
    wb_ref, bb_ref,      # base_emb2vector : (768,300), (1,300)
    wp1_ref, bp1_ref,    # probs2vector[0] : (Vp,100), (1,100)
    wp2_ref, bp2_ref,    # probs2vector[2] : (100,50), (1,50)
    m_ref,               # bilinear matrix : (300,300)
    wv1_ref, bv1_ref,    # vector2scores[0]: (50,30), (1,30)
    wv2_ref, bv2_ref,    # vector2scores[2]: (30,Vp), (1,Vp)
    out_ref,             # (Bb, S, Vp)
):
    Bb, S, _ = q_ref.shape
    Vp = out_ref.shape[-1]
    R = Bb * S  # merged token rows for the MXU

    q = q_ref[...].reshape(R, BERT_SIZE)
    b = b_ref[...].reshape(R, BERT_SIZE)
    srl = srl_ref[...].reshape(R, Vp)

    # token-wise linears on merged rows (better MXU fill than per-batch S rows)
    qv = jnp.tanh(
        jnp.dot(q, wq_ref[...], preferred_element_type=jnp.float32) + bq_ref[...]
    )  # (R, 300)
    bv = jnp.tanh(
        jnp.dot(b, wb_ref[...], preferred_element_type=jnp.float32) + bb_ref[...]
    )  # (R, 300)
    h = jnp.tanh(
        jnp.dot(srl, wp1_ref[...], preferred_element_type=jnp.float32) + bp1_ref[...]
    )  # (R, 100)
    sv = jnp.tanh(
        jnp.dot(h, wp2_ref[...], preferred_element_type=jnp.float32) + bp2_ref[...]
    )  # (R, 50)

    y = jnp.dot(qv, m_ref[...], preferred_element_type=jnp.float32)  # (R, 300)

    # per-batch bilinear attention + streaming max over base positions
    CH = min(S, 128)  # S_b chunk width for the running max
    ow_blocks = []
    for bi in range(Bb):  # Bb is a small static trace-time constant
        r0 = bi * S
        y_b = y[r0:r0 + S]        # (S, 300)
        bv_b = bv[r0:r0 + S]      # (S, 300)
        sv_b = sv[r0:r0 + S]      # (S, 50)

        # scores[q, k] = sum_d y_b[q, d] * bv_b[k, d]  (MXU handles the RHS transpose)
        scores = pl.dot(y_b, bv_b, trans_b=True)      # (S_q, S_b) f32
        w = jax.nn.sigmoid(scores)

        # running max over S_b chunks: never materializes (S_q, S_b, 50)
        ow = jnp.full((S, 50), -jnp.inf, dtype=jnp.float32)
        for c0 in range(0, S, CH):
            w_c = w[:, c0:c0 + CH]                    # (S_q, chunk)
            sv_c = sv_b[c0:c0 + CH]                   # (chunk, 50)
            prod = w_c[:, :, None] * sv_c[None, :, :]  # (S_q, chunk, 50)
            ow = jnp.maximum(ow, jnp.max(prod, axis=1))
        ow_blocks.append(ow)

    out_word = jnp.concatenate(ow_blocks, axis=0) if Bb > 1 else ow_blocks[0]  # (R, 50)

    # vector2scores on merged rows, lane-dense padded output
    h2 = jnp.tanh(
        jnp.dot(out_word, wv1_ref[...], preferred_element_type=jnp.float32)
        + bv1_ref[...]
    )  # (R, 30)
    final = (
        jnp.dot(h2, wv2_ref[...], preferred_element_type=jnp.float32) + bv2_ref[...]
    )  # (R, Vp)

    out_ref[...] = final.reshape(Bb, S, Vp)


def _full_spec(shape):
    rank = len(shape)
    return pl.BlockSpec(shape, lambda i, _r=rank: (0,) * _r)


def _choose_batch_block(B, S, target_rows=256, max_unroll=16):
    """Largest divisor of B (<= max_unroll) whose row count reaches target_rows."""
    best = 1
    for bb in range(1, B + 1):
        if B % bb != 0 or bb > max_unroll:
            continue
        best = bb
        if bb * S >= target_rows:
            break
    return best


@jax.jit
def sr_matcher_forward(query_embs, base_embs, srl_probs, params):
    B, S, _ = query_embs.shape
    V = srl_probs.shape[-1]
    Vp = max(LANE, _round_up(V, LANE))
    pad_v = Vp - V

    # pad vocab dim to 128 lanes (zeros -> numerically identical, sliced off below)
    srl_p = jnp.pad(srl_probs, ((0, 0), (0, 0), (0, pad_v)))
    wp1_p = jnp.pad(params["wp1"], ((0, pad_v), (0, 0)))
    wv2_p = jnp.pad(params["wv2"], ((0, 0), (0, pad_v)))
    bv2_p = jnp.pad(params["bv2"], ((0, 0), (0, pad_v)))

    Bb = _choose_batch_block(B, S)
    n_blocks = B // Bb

    param_list = [
        params["wq"], params["bq"],
        params["wb"], params["bb"],
        wp1_p, params["bp1"],
        params["wp2"], params["bp2"],
        params["matrix"],
        params["wv1"], params["bv1"],
        wv2_p, bv2_p,
    ]

    in_specs = [
        pl.BlockSpec((Bb, S, BERT_SIZE), lambda i: (i, 0, 0)),  # query
        pl.BlockSpec((Bb, S, BERT_SIZE), lambda i: (i, 0, 0)),  # base
        pl.BlockSpec((Bb, S, Vp), lambda i: (i, 0, 0)),         # SRL probs (padded)
    ] + [_full_spec(p.shape) for p in param_list]

    out = pl.pallas_call(
        sr_matcher_kernel,
        out_shape=jax.ShapeDtypeStruct((B, S, Vp), jnp.float32),
        grid=(n_blocks,),
        in_specs=in_specs,
        out_specs=pl.BlockSpec((Bb, S, Vp), lambda i: (i, 0, 0)),
        compiler_params=pltpu.CompilerParams(
            dimension_semantics=("parallel",),        # batch blocks are independent
            vmem_limit_bytes=48 * 1024 * 1024,        # safe on v5e/v6e/v7x
        ),
    )(query_embs, base_embs, srl_p, *param_list)

    # PyTorch returns (batch_size * seq_len_query, target_vocab_size)
    return out[:, :, :V].reshape(B * S, V)


def sr_matcher_reference(query_embs, base_embs, srl_probs, params):
    """Pure-JAX reference mirroring the PyTorch forward, for validation."""
    B, S, _ = query_embs.shape
    V = srl_probs.shape[-1]
    qv = jnp.tanh(query_embs @ params["wq"] + params["bq"])          # (B,S,300)
    bv = jnp.tanh(base_embs @ params["wb"] + params["bb"])           # (B,S,300)
    sv = jnp.tanh(
        jnp.tanh(srl_probs @ params["wp1"] + params["bp1"]) @ params["wp2"]
        + params["bp2"]
    )                                                                # (B,S,50)
    y = qv.reshape(B * S, MLP_SIZE) @ params["matrix"]               # (B*S,300)
    scores = jnp.einsum("bqd,bkd->bqk", y.reshape(B, S, MLP_SIZE), bv)
    w = jax.nn.sigmoid(scores)                                       # (B,Sq,Sb)
    prod = w[:, :, :, None] * sv[:, None, :, :]                      # (B,Sq,Sb,50)
    out_word = jnp.max(prod, axis=2)                                 # (B,Sq,50)
    h2 = jnp.tanh(out_word @ params["wv1"] + params["bv1"])
    final = h2 @ params["wv2"] + params["bv2"]
    return final.reshape(B * S, V)


def init_params(key, target_vocab_size):
    """Deterministic parameter init (shapes from SR_Matcher.__init__)."""
    ks = jax.random.split(key, 16)
    scale = 0.05

    def w(k, shape):
        return (scale * jax.random.normal(k, shape)).astype(jnp.float32)

    V = target_vocab_size
    return {
        "wq": w(ks[0], (BERT_SIZE, MLP_SIZE)),
        "bq": w(ks[1], (1, MLP_SIZE)),
        "wb": w(ks[2], (BERT_SIZE, MLP_SIZE)),
        "bb": w(ks[3], (1, MLP_SIZE)),
        "wp1": w(ks[4], (V, 100)),
        "bp1": w(ks[5], (1, 100)),
        "wp2": w(ks[6], (100, 50)),
        "bp2": w(ks[7], (1, 50)),
        # PyTorch __init__ makes this zeros; a small random init keeps the
        # attention path non-degenerate while remaining deterministic
        # (deliberate deviation, kernel and reference agree).
        "matrix": w(ks[8], (MLP_SIZE, MLP_SIZE)),
        "wv1": w(ks[9], (50, 30)),
        "bv1": w(ks[10], (1, 30)),
        "wv2": w(ks[11], (30, V)),
        "bv2": w(ks[12], (1, V)),
    }


if __name__ == "__main__":
    B = 2                    # batch_size
    S = 8                    # seq_len_base == seq_len_query (required by .view)
    V = 20                   # target_vocab_size

    key = jax.random.PRNGKey(0)
    k_par, k_q, k_b, k_s = jax.random.split(key, 4)

    params = init_params(k_par, V)
    query_embs = jax.random.normal(k_q, (B, S, BERT_SIZE), dtype=jnp.float32)
    base_embs = jax.random.normal(k_b, (B, S, BERT_SIZE), dtype=jnp.float32)
    srl_probs = jax.nn.softmax(
        jax.random.normal(k_s, (B, S, V), dtype=jnp.float32), axis=-1
    )

    out = sr_matcher_forward(query_embs, base_embs, srl_probs, params)
    out = jax.block_until_ready(out)

    ref = sr_matcher_reference(query_embs, base_embs, srl_probs, params)
    np.testing.assert_allclose(np.asarray(out), np.asarray(ref), rtol=1e-4, atol=1e-4)

    assert out.shape == (B * S, V)
    print("KERNEL_OK")
</pallas_src>

<mosaic_0001>
module attributes {stable_mosaic.version = 11 : i64} {
  func.func @sr_matcher_kernel(%arg0: i32, %arg1: memref<2x8x768xf32, #tpu.memory_space<vmem>>, %arg2: memref<2x8x768xf32, #tpu.memory_space<vmem>>, %arg3: memref<2x8x128xf32, #tpu.memory_space<vmem>>, %arg4: memref<768x300xf32, #tpu.memory_space<vmem>>, %arg5: memref<1x300xf32, #tpu.memory_space<vmem>>, %arg6: memref<768x300xf32, #tpu.memory_space<vmem>>, %arg7: memref<1x300xf32, #tpu.memory_space<vmem>>, %arg8: memref<128x100xf32, #tpu.memory_space<vmem>>, %arg9: memref<1x100xf32, #tpu.memory_space<vmem>>, %arg10: memref<100x50xf32, #tpu.memory_space<vmem>>, %arg11: memref<1x50xf32, #tpu.memory_space<vmem>>, %arg12: memref<300x300xf32, #tpu.memory_space<vmem>>, %arg13: memref<50x30xf32, #tpu.memory_space<vmem>>, %arg14: memref<1x30xf32, #tpu.memory_space<vmem>>, %arg15: memref<30x128xf32, #tpu.memory_space<vmem>>, %arg16: memref<1x128xf32, #tpu.memory_space<vmem>>, %arg17: memref<2x8x128xf32, #tpu.memory_space<vmem>>) attributes {dimension_semantics = [#tpu.dimension_semantics<parallel>], iteration_bounds = array<i64: 1>, scalar_prefetch = 0 : i64, scratch_operands = 0 : i64, tpu.core_type = #tpu.core_type<tc>, window_params = [{transform_indices = @transform_0, window_bounds = array<i64: 2, 8, 768>}, {transform_indices = @transform_1, window_bounds = array<i64: 2, 8, 768>}, {transform_indices = @transform_2, window_bounds = array<i64: 2, 8, 128>}, {pipeline_mode = #tpu.pipeline_mode<synchronous>, transform_indices = @transform_3, window_bounds = array<i64: 768, 300>}, {pipeline_mode = #tpu.pipeline_mode<synchronous>, transform_indices = @transform_4, window_bounds = array<i64: 1, 300>}, {pipeline_mode = #tpu.pipeline_mode<synchronous>, transform_indices = @transform_5, window_bounds = array<i64: 768, 300>}, {pipeline_mode = #tpu.pipeline_mode<synchronous>, transform_indices = @transform_6, window_bounds = array<i64: 1, 300>}, {pipeline_mode = #tpu.pipeline_mode<synchronous>, transform_indices = @transform_7, window_bounds = array<i64: 128, 100>}, {pipeline_mode = #tpu.pipeline_mode<synchronous>, transform_indices = @transform_8, window_bounds = array<i64: 1, 100>}, {pipeline_mode = #tpu.pipeline_mode<synchronous>, transform_indices = @transform_9, window_bounds = array<i64: 100, 50>}, {pipeline_mode = #tpu.pipeline_mode<synchronous>, transform_indices = @transform_10, window_bounds = array<i64: 1, 50>}, {pipeline_mode = #tpu.pipeline_mode<synchronous>, transform_indices = @transform_11, window_bounds = array<i64: 300, 300>}, {pipeline_mode = #tpu.pipeline_mode<synchronous>, transform_indices = @transform_12, window_bounds = array<i64: 50, 30>}, {pipeline_mode = #tpu.pipeline_mode<synchronous>, transform_indices = @transform_13, window_bounds = array<i64: 1, 30>}, {pipeline_mode = #tpu.pipeline_mode<synchronous>, transform_indices = @transform_14, window_bounds = array<i64: 30, 128>}, {pipeline_mode = #tpu.pipeline_mode<synchronous>, transform_indices = @transform_15, window_bounds = array<i64: 1, 128>}, {transform_indices = @transform_16, window_bounds = array<i64: 2, 8, 128>}]} {
    %c0 = arith.constant 0 : index
    %c0_0 = arith.constant 0 : index
    %c0_1 = arith.constant 0 : index
    %0 = vector.load %arg1[%c0, %c0_0, %c0_1] : memref<2x8x768xf32, #tpu.memory_space<vmem>>, vector<2x8x768xf32>
    %1 = vector.shape_cast %0 : vector<2x8x768xf32> to vector<16x768xf32>
    %c0_2 = arith.constant 0 : index
    %c0_3 = arith.constant 0 : index
    %c0_4 = arith.constant 0 : index
    %2 = vector.load %arg2[%c0_2, %c0_3, %c0_4] : memref<2x8x768xf32, #tpu.memory_space<vmem>>, vector<2x8x768xf32>
    %3 = vector.shape_cast %2 : vector<2x8x768xf32> to vector<16x768xf32>
    %c0_5 = arith.constant 0 : index
    %c0_6 = arith.constant 0 : index
    %c0_7 = arith.constant 0 : index
    %4 = vector.load %arg3[%c0_5, %c0_6, %c0_7] : memref<2x8x128xf32, #tpu.memory_space<vmem>>, vector<2x8x128xf32>
    %5 = vector.shape_cast %4 : vector<2x8x128xf32> to vector<16x128xf32>
    %c0_8 = arith.constant 0 : index
    %c0_9 = arith.constant 0 : index
    %6 = vector.load %arg4[%c0_8, %c0_9] : memref<768x300xf32, #tpu.memory_space<vmem>>, vector<768x300xf32>
    %cst = arith.constant dense<0.000000e+00> : vector<16x300xf32>
    %7 = tpu.matmul %1, %6, %cst {dimension_numbers = #tpu.dot_dimension_numbers<[1], [0], [0], [1], [0, 0, 1, 1], [], []>} : vector<16x768xf32>, vector<768x300xf32>, vector<16x300xf32> -> vector<16x300xf32>
    %c0_10 = arith.constant 0 : index
    %c0_11 = arith.constant 0 : index
    %8 = vector.load %arg5[%c0_10, %c0_11] : memref<1x300xf32, #tpu.memory_space<vmem>>, vector<1x300xf32>
    %9 = vector.broadcast %8 : vector<1x300xf32> to vector<16x300xf32>
    %10 = arith.addf %7, %9 : vector<16x300xf32>
    %11 = math.tanh %10 : vector<16x300xf32>
    %c0_12 = arith.constant 0 : index
    %c0_13 = arith.constant 0 : index
    %12 = vector.load %arg6[%c0_12, %c0_13] : memref<768x300xf32, #tpu.memory_space<vmem>>, vector<768x300xf32>
    %cst_14 = arith.constant dense<0.000000e+00> : vector<16x300xf32>
    %13 = tpu.matmul %3, %12, %cst_14 {dimension_numbers = #tpu.dot_dimension_numbers<[1], [0], [0], [1], [0, 0, 1, 1], [], []>} : vector<16x768xf32>, vector<768x300xf32>, vector<16x300xf32> -> vector<16x300xf32>
    %c0_15 = arith.constant 0 : index
    %c0_16 = arith.constant 0 : index
    %14 = vector.load %arg7[%c0_15, %c0_16] : memref<1x300xf32, #tpu.memory_space<vmem>>, vector<1x300xf32>
    %15 = vector.broadcast %14 : vector<1x300xf32> to vector<16x300xf32>
    %16 = arith.addf %13, %15 : vector<16x300xf32>
    %17 = math.tanh %16 : vector<16x300xf32>
    %c0_17 = arith.constant 0 : index
    %c0_18 = arith.constant 0 : index
    %18 = vector.load %arg8[%c0_17, %c0_18] : memref<128x100xf32, #tpu.memory_space<vmem>>, vector<128x100xf32>
    %cst_19 = arith.constant dense<0.000000e+00> : vector<16x100xf32>
    %19 = tpu.matmul %5, %18, %cst_19 {dimension_numbers = #tpu.dot_dimension_numbers<[1], [0], [0], [1], [0, 0, 1, 1], [], []>} : vector<16x128xf32>, vector<128x100xf32>, vector<16x100xf32> -> vector<16x100xf32>
    %c0_20 = arith.constant 0 : index
    %c0_21 = arith.constant 0 : index
    %20 = vector.load %arg9[%c0_20, %c0_21] : memref<1x100xf32, #tpu.memory_space<vmem>>, vector<1x100xf32>
    %21 = vector.broadcast %20 : vector<1x100xf32> to vector<16x100xf32>
    %22 = arith.addf %19, %21 : vector<16x100xf32>
    %23 = math.tanh %22 : vector<16x100xf32>
    %c0_22 = arith.constant 0 : index
    %c0_23 = arith.constant 0 : index
    %24 = vector.load %arg10[%c0_22, %c0_23] : memref<100x50xf32, #tpu.memory_space<vmem>>, vector<100x50xf32>
    %cst_24 = arith.constant dense<0.000000e+00> : vector<16x50xf32>
    %25 = tpu.matmul %23, %24, %cst_24 {dimension_numbers = #tpu.dot_dimension_numbers<[1], [0], [0], [1], [0, 0, 1, 1], [], []>} : vector<16x100xf32>, vector<100x50xf32>, vector<16x50xf32> -> vector<16x50xf32>
    %c0_25 = arith.constant 0 : index
    %c0_26 = arith.constant 0 : index
    %26 = vector.load %arg11[%c0_25, %c0_26] : memref<1x50xf32, #tpu.memory_space<vmem>>, vector<1x50xf32>
    %27 = vector.broadcast %26 : vector<1x50xf32> to vector<16x50xf32>
    %28 = arith.addf %25, %27 : vector<16x50xf32>
    %29 = math.tanh %28 : vector<16x50xf32>
    %c0_27 = arith.constant 0 : index
    %c0_28 = arith.constant 0 : index
    %30 = vector.load %arg12[%c0_27, %c0_28] : memref<300x300xf32, #tpu.memory_space<vmem>>, vector<300x300xf32>
    %cst_29 = arith.constant dense<0.000000e+00> : vector<16x300xf32>
    %31 = tpu.matmul %11, %30, %cst_29 {dimension_numbers = #tpu.dot_dimension_numbers<[1], [0], [0], [1], [0, 0, 1, 1], [], []>} : vector<16x300xf32>, vector<300x300xf32>, vector<16x300xf32> -> vector<16x300xf32>
    %32 = vector.extract_strided_slice %31 {offsets = [0, 0], sizes = [8, 300], strides = [1, 1]} : vector<16x300xf32> to vector<8x300xf32>
    %33 = vector.extract_strided_slice %17 {offsets = [0, 0], sizes = [8, 300], strides = [1, 1]} : vector<16x300xf32> to vector<8x300xf32>
    %34 = vector.extract_strided_slice %29 {offsets = [0, 0], sizes = [8, 50], strides = [1, 1]} : vector<16x50xf32> to vector<8x50xf32>
    %cst_30 = arith.constant dense<0.000000e+00> : vector<8x8xf32>
    %35 = tpu.matmul %32, %33, %cst_30 {dimension_numbers = #tpu.dot_dimension_numbers<[1], [1], [0], [0], [0, 0, 1, 0], [], []>} : vector<8x300xf32>, vector<8x300xf32>, vector<8x8xf32> -> vector<8x8xf32>
    %36 = arith.negf %35 : vector<8x8xf32>
    %37 = math.exp %36 : vector<8x8xf32>
    %cst_31 = arith.constant 1.000000e+00 : f32
    %38 = vector.broadcast %cst_31 : f32 to vector<8x8xf32>
    %39 = arith.addf %38, %37 : vector<8x8xf32>
    %40 = arith.divf %38, %39 : vector<8x8xf32>
    %cst_32 = arith.constant 0xFF800000 : f32
    %41 = vector.broadcast %cst_32 : f32 to vector<8x50xf32>
    %42 = vector.shape_cast %40 : vector<8x8xf32> to vector<8x8x1xf32>
    %43 = vector.shape_cast %34 : vector<8x50xf32> to vector<1x8x50xf32>
    %44 = vector.broadcast %42 : vector<8x8x1xf32> to vector<8x8x50xf32>
    %45 = vector.broadcast %43 : vector<1x8x50xf32> to vector<8x8x50xf32>
    %46 = arith.mulf %44, %45 : vector<8x8x50xf32>
    %cst_33 = arith.constant dense<0xFF800000> : vector<8x50xf32>
    %47 = vector.multi_reduction <maximumf>, %46, %cst_33 [1] : vector<8x8x50xf32> to vector<8x50xf32>
    %48 = arith.maximumf %41, %47 : vector<8x50xf32>
    %49 = vector.extract_strided_slice %31 {offsets = [8, 0], sizes = [8, 300], strides = [1, 1]} : vector<16x300xf32> to vector<8x300xf32>
    %50 = vector.extract_strided_slice %17 {offsets = [8, 0], sizes = [8, 300], strides = [1, 1]} : vector<16x300xf32> to vector<8x300xf32>
    %51 = vector.extract_strided_slice %29 {offsets = [8, 0], sizes = [8, 50], strides = [1, 1]} : vector<16x50xf32> to vector<8x50xf32>
    %cst_34 = arith.constant dense<0.000000e+00> : vector<8x8xf32>
    %52 = tpu.matmul %49, %50, %cst_34 {dimension_numbers = #tpu.dot_dimension_numbers<[1], [1], [0], [0], [0, 0, 1, 0], [], []>} : vector<8x300xf32>, vector<8x300xf32>, vector<8x8xf32> -> vector<8x8xf32>
    %53 = arith.negf %52 : vector<8x8xf32>
    %54 = math.exp %53 : vector<8x8xf32>
    %cst_35 = arith.constant 1.000000e+00 : f32
    %55 = vector.broadcast %cst_35 : f32 to vector<8x8xf32>
    %56 = arith.addf %55, %54 : vector<8x8xf32>
    %57 = arith.divf %55, %56 : vector<8x8xf32>
    %cst_36 = arith.constant 0xFF800000 : f32
    %58 = vector.broadcast %cst_36 : f32 to vector<8x50xf32>
    %59 = vector.shape_cast %57 : vector<8x8xf32> to vector<8x8x1xf32>
    %60 = vector.shape_cast %51 : vector<8x50xf32> to vector<1x8x50xf32>
    %61 = vector.broadcast %59 : vector<8x8x1xf32> to vector<8x8x50xf32>
    %62 = vector.broadcast %60 : vector<1x8x50xf32> to vector<8x8x50xf32>
    %63 = arith.mulf %61, %62 : vector<8x8x50xf32>
    %cst_37 = arith.constant dense<0xFF800000> : vector<8x50xf32>
    %64 = vector.multi_reduction <maximumf>, %63, %cst_37 [1] : vector<8x8x50xf32> to vector<8x50xf32>
    %65 = arith.maximumf %58, %64 : vector<8x50xf32>
    %66 = tpu.concatenate %48, %65 in 0 : vector<8x50xf32>, vector<8x50xf32> -> vector<16x50xf32>
    %c0_38 = arith.constant 0 : index
    %c0_39 = arith.constant 0 : index
    %67 = vector.load %arg13[%c0_38, %c0_39] : memref<50x30xf32, #tpu.memory_space<vmem>>, vector<50x30xf32>
    %cst_40 = arith.constant dense<0.000000e+00> : vector<16x30xf32>
    %68 = tpu.matmul %66, %67, %cst_40 {dimension_numbers = #tpu.dot_dimension_numbers<[1], [0], [0], [1], [0, 0, 1, 1], [], []>} : vector<16x50xf32>, vector<50x30xf32>, vector<16x30xf32> -> vector<16x30xf32>
    %c0_41 = arith.constant 0 : index
    %c0_42 = arith.constant 0 : index
    %69 = vector.load %arg14[%c0_41, %c0_42] : memref<1x30xf32, #tpu.memory_space<vmem>>, vector<1x30xf32>
    %70 = vector.broadcast %69 : vector<1x30xf32> to vector<16x30xf32>
    %71 = arith.addf %68, %70 : vector<16x30xf32>
    %72 = math.tanh %71 : vector<16x30xf32>
    %c0_43 = arith.constant 0 : index
    %c0_44 = arith.constant 0 : index
    %73 = vector.load %arg15[%c0_43, %c0_44] : memref<30x128xf32, #tpu.memory_space<vmem>>, vector<30x128xf32>
    %cst_45 = arith.constant dense<0.000000e+00> : vector<16x128xf32>
    %74 = tpu.matmul %72, %73, %cst_45 {dimension_numbers = #tpu.dot_dimension_numbers<[1], [0], [0], [1], [0, 0, 1, 1], [], []>} : vector<16x30xf32>, vector<30x128xf32>, vector<16x128xf32> -> vector<16x128xf32>
    %c0_46 = arith.constant 0 : index
    %c0_47 = arith.constant 0 : index
    %75 = vector.load %arg16[%c0_46, %c0_47] : memref<1x128xf32, #tpu.memory_space<vmem>>, vector<1x128xf32>
    %76 = vector.broadcast %75 : vector<1x128xf32> to vector<16x128xf32>
    %77 = arith.addf %74, %76 : vector<16x128xf32>
    %78 = vector.shape_cast %77 : vector<16x128xf32> to vector<2x8x128xf32>
    %c0_48 = arith.constant 0 : index
    %c0_49 = arith.constant 0 : index
    %c0_50 = arith.constant 0 : index
    %79 = vector.load %arg17[%c0_48, %c0_49, %c0_50] : memref<2x8x128xf32, #tpu.memory_space<vmem>>, vector<2x8x128xf32>
    tpu.vector_store %arg17[%c0_48, %c0_49, %c0_50], %78 {strides = array<i32>} : memref<2x8x128xf32, #tpu.memory_space<vmem>>, vector<2x8x128xf32>,
    return
  }
  func.func @transform_0(%arg0: i32) -> (i32, i32, i32) {
    %c0_i32 = arith.constant 0 : i32
    %c0_i32_0 = arith.constant 0 : i32
    %c0_i32_1 = arith.constant 0 : i32
    return %arg0, %c0_i32, %c0_i32_0 : i32, i32, i32
  }
  func.func @transform_1(%arg0: i32) -> (i32, i32, i32) {
    %c0_i32 = arith.constant 0 : i32
    %c0_i32_0 = arith.constant 0 : i32
    %c0_i32_1 = arith.constant 0 : i32
    return %arg0, %c0_i32, %c0_i32_0 : i32, i32, i32
  }
  func.func @transform_2(%arg0: i32) -> (i32, i32, i32) {
    %c0_i32 = arith.constant 0 : i32
    %c0_i32_0 = arith.constant 0 : i32
    %c0_i32_1 = arith.constant 0 : i32
    return %arg0, %c0_i32, %c0_i32_0 : i32, i32, i32
  }
  func.func @transform_3(%arg0: i32) -> (i32, i32) {
    %c0_i32 = arith.constant 0 : i32
    %c0_i32_0 = arith.constant 0 : i32
    %c0_i32_1 = arith.constant 0 : i32
    return %c0_i32, %c0_i32_0 : i32, i32
  }
  func.func @transform_4(%arg0: i32) -> (i32, i32) {
    %c0_i32 = arith.constant 0 : i32
    %c0_i32_0 = arith.constant 0 : i32
    %c0_i32_1 = arith.constant 0 : i32
    return %c0_i32, %c0_i32_0 : i32, i32
  }
  func.func @transform_5(%arg0: i32) -> (i32, i32) {
    %c0_i32 = arith.constant 0 : i32
    %c0_i32_0 = arith.constant 0 : i32
    %c0_i32_1 = arith.constant 0 : i32
    return %c0_i32, %c0_i32_0 : i32, i32
  }
  func.func @transform_6(%arg0: i32) -> (i32, i32) {
    %c0_i32 = arith.constant 0 : i32
    %c0_i32_0 = arith.constant 0 : i32
    %c0_i32_1 = arith.constant 0 : i32
    return %c0_i32, %c0_i32_0 : i32, i32
  }
  func.func @transform_7(%arg0: i32) -> (i32, i32) {
    %c0_i32 = arith.constant 0 : i32
    %c0_i32_0 = arith.constant 0 : i32
    %c0_i32_1 = arith.constant 0 : i32
    return %c0_i32, %c0_i32_0 : i32, i32
  }
  func.func @transform_8(%arg0: i32) -> (i32, i32) {
    %c0_i32 = arith.constant 0 : i32
    %c0_i32_0 = arith.constant 0 : i32
    %c0_i32_1 = arith.constant 0 : i32
    return %c0_i32, %c0_i32_0 : i32, i32
  }
  func.func @transform_9(%arg0: i32) -> (i32, i32) {
    %c0_i32 = arith.constant 0 : i32
    %c0_i32_0 = arith.constant 0 : i32
    %c0_i32_1 = arith.constant 0 : i32
    return %c0_i32, %c0_i32_0 : i32, i32
  }
  func.func @transform_10(%arg0: i32) -> (i32, i32) {
    %c0_i32 = arith.constant 0 : i32
    %c0_i32_0 = arith.constant 0 : i32
    %c0_i32_1 = arith.constant 0 : i32
    return %c0_i32, %c0_i32_0 : i32, i32
  }
  func.func @transform_11(%arg0: i32) -> (i32, i32) {
    %c0_i32 = arith.constant 0 : i32
    %c0_i32_0 = arith.constant 0 : i32
    %c0_i32_1 = arith.constant 0 : i32
    return %c0_i32, %c0_i32_0 : i32, i32
  }
  func.func @transform_12(%arg0: i32) -> (i32, i32) {
    %c0_i32 = arith.constant 0 : i32
    %c0_i32_0 = arith.constant 0 : i32
    %c0_i32_1 = arith.constant 0 : i32
    return %c0_i32, %c0_i32_0 : i32, i32
  }
  func.func @transform_13(%arg0: i32) -> (i32, i32) {
    %c0_i32 = arith.constant 0 : i32
    %c0_i32_0 = arith.constant 0 : i32
    %c0_i32_1 = arith.constant 0 : i32
    return %c0_i32, %c0_i32_0 : i32, i32
  }
  func.func @transform_14(%arg0: i32) -> (i32, i32) {
    %c0_i32 = arith.constant 0 : i32
    %c0_i32_0 = arith.constant 0 : i32
    %c0_i32_1 = arith.constant 0 : i32
    return %c0_i32, %c0_i32_0 : i32, i32
  }
  func.func @transform_15(%arg0: i32) -> (i32, i32) {
    %c0_i32 = arith.constant 0 : i32
    %c0_i32_0 = arith.constant 0 : i32
    %c0_i32_1 = arith.constant 0 : i32
    return %c0_i32, %c0_i32_0 : i32, i32
  }
  func.func @transform_16(%arg0: i32) -> (i32, i32, i32) {
    %c0_i32 = arith.constant 0 : i32
    %c0_i32_0 = arith.constant 0 : i32
    %c0_i32_1 = arith.constant 0 : i32
    return %arg0, %c0_i32, %c0_i32_0 : i32, i32, i32
  }
}

</mosaic_0001>

<bundles_post_ra>
// kernel: sr_matcher_forward.1
= control target key start
LH: loop header
LB: loop body
LE: loop exit
PB: predicated region body
PF: predicated region fallthrough
CT: control target
= control target key end

     0   :  { %vm1740_vm0 = vcmask 1043456   ;;  %vm1935_vm1 = vcmask 359424   ;;  %vm4365_vm2 = vmmov 1   ;;  %vm1733_vm4 = vcmask 818176   ;;  %s6979_s3 = inlined_call_operand.vmem [shape: f32[768,300], index: 3, kind: input, shape index: {}]   ;;  %s6980_s0 = inlined_call_operand.vmem [shape: f32[2,8,768], index: 0, kind: input, shape index: {}]   ;;  %s6981_s5 = inlined_call_operand.vmem [shape: f32[768,300], index: 5, kind: input, shape index: {}]   ;;  %s6982_s1 = inlined_call_operand.vmem [shape: f32[2,8,768], index: 1, kind: input, shape index: {}]   ;;  %s6983_s7 = inlined_call_operand.vmem [shape: f32[128,100], index: 7, kind: input, shape index: {}]   ;;  %s6984_s2 = inlined_call_operand.vmem [shape: f32[2,8,128], index: 2, kind: input, shape index: {}]   ;;  %s6985_s4 = inlined_call_operand.vmem [shape: f32[1,300], index: 4, kind: input, shape index: {}]   ;;  %s6986_s11 = inlined_call_operand.vmem [shape: f32[300,300], index: 11, kind: input, shape index: {}]   ;;  %s6987_s9 = inlined_call_operand.vmem [shape: f32[100,50], index: 9, kind: input, shape index: {}]   ;;  %s6988_s6 = inlined_call_operand.vmem [shape: f32[1,300], index: 6, kind: input, shape index: {}]   ;;  %s6989_s8 = inlined_call_operand.vmem [shape: f32[1,100], index: 8, kind: input, shape index: {}]   ;;  %s6990_s12 = inlined_call_operand.vmem [shape: f32[50,30], index: 12, kind: input, shape index: {}]   ;;  %s6991_s10 = inlined_call_operand.vmem [shape: f32[1,50], index: 10, kind: input, shape index: {}]   ;;  %s6992_s14 = inlined_call_operand.vmem [shape: f32[30,128], index: 14, kind: input, shape index: {}]   ;;  %s6993_s13 = inlined_call_operand.vmem [shape: f32[1,30], index: 13, kind: input, shape index: {}]   ;;  %s6994_s15 = inlined_call_operand.vmem [shape: f32[1,128], index: 15, kind: input, shape index: {}]   ;;  %s6995_s16 = inlined_call_operand.vmem [shape: f32[2,8,128], index: 16, kind: output, shape index: {}]  }
   0x1   :  { %6997 = sst [smem:[#allocation2_spill]] %s6979_s3  ;;  %v54_v41 = vld [vmem:[%s6980_s0 + $0x8] sm:$0xff]  ;;  %vm6581_vm3 = vmpackc.low %vm1740_vm0, %vm4365_vm2  ;;  %vm4367_vm5 = vmmov 0   ;;  %vm2855_vm6 = vcmask 1041408   ;;  %vm2471_vm7 = vcmask 408576   ;;  %vm2808_vm8 = vcmask 1041409  }
   0x2   :  { %s6998_s23 = sld [smem:[#allocation2_spill]]  ;;  %448 = vmatprep.mubr.f32.mxu0 %v54_v41  ;;  %679 = vmatprep.mubr.f32.mxu1 %v54_v41  ;;  %vm2810_vm9 = vcmask 1042434   ;;  %vm2812_vm10 = vcmask 1043459   ;;  %vm2814_vm11 = vcmask 1044484   ;;  %vm2816_vm12 = vcmask 1045509  }
   0x3   :  { %vm2818_vm13 = vcmask 1046534   ;;  %vm2820_vm14 = vcmask 1047559   ;;  %vm2954_vm15 = vcmask 1045504  }
   0x8   :  { %v80_v0 = vld [vmem:[%s6998_s23 + $0x8] sm:$0xff]  ;;  %v83_v1 = vld [vmem:[%s6998_s23 + $0x20] sm:$0xff]  ;;  %v82_v4 = vld [vmem:[%s6998_s23 + $0x18] sm:$0xff] }
   0x9   :  { %v79_v2 = vld [vmem:[%s6998_s23] sm:$0xff]  ;;  %v3508_v3 = vpack.c.bf16 %v83_v1, %v80_v0  ;;  %v86_v5 = vld [vmem:[%s6998_s23 + $0x38] sm:$0xff]  ;;  %v89_v6 = vld [vmem:[%s6998_s23 + $0x50] sm:$0xff] }
   0xa   :  { %v3510_v7 = vpack.c.bf16 %v82_v4, %v79_v2  ;;  %v3512_v8 = vpack.c.bf16 %v89_v6, %v86_v5  ;;  %v85_v9 = vld [vmem:[%s6998_s23 + $0x30] sm:$0xff]  ;;  %v88_v10 = vld [vmem:[%s6998_s23 + $0x48] sm:$0xff]  ;;  %v95_v12 = vld [vmem:[%s6998_s23 + $0x80] sm:$0xff] }
   0xb   :  { %v92_v11 = vld [vmem:[%s6998_s23 + $0x68] sm:$0xff]  ;;  %3509 = vmatprep.subr.bf16.mxu0 %v3508_v3  ;;  %v3514_v13 = vpack.c.bf16 %v88_v10, %v85_v9  ;;  %v91_v15 = vld [vmem:[%s6998_s23 + $0x60] sm:$0xff]  ;;  %v94_v16 = vld [vmem:[%s6998_s23 + $0x78] sm:$0xff] }
   0xc   :  { %3511 = vmatpush1.bf16.msra.mxu0 %v3510_v7  ;;  %v3516_v14 = vpack.c.bf16 %v95_v12, %v92_v11  ;;  %v98_v17 = vld [vmem:[%s6998_s23 + $0x98] sm:$0xff]  ;;  %v101_v18 = vld [vmem:[%s6998_s23 + $0xb0] sm:$0xff]  ;;  %v3518_v19 = vpack.c.bf16 %v94_v16, %v91_v15  ;;  %v100_v22 = vld [vmem:[%s6998_s23 + $0xa8] sm:$0xff] }
   0xd   :  { %3513 = vmatprep.subr.bf16.mxu0 %v3512_v8  ;;  %v3520_v20 = vpack.c.bf16 %v101_v18, %v98_v17  ;;  %v97_v21 = vld [vmem:[%s6998_s23 + $0x90] sm:$0xff]  ;;  %v104_v23 = vld [vmem:[%s6998_s23 + $0xc8] sm:$0xff]  ;;  %v107_v24 = vld [vmem:[%s6998_s23 + $0xe0] sm:$0xff] }
   0xe   :  { %v3522_v25 = vpack.c.bf16 %v100_v22, %v97_v21  ;;  %v3524_v26 = vpack.c.bf16 %v107_v24, %v104_v23  ;;  %v103_v27 = vld [vmem:[%s6998_s23 + $0xc0] sm:$0xff]  ;;  %v106_v28 = vld [vmem:[%s6998_s23 + $0xd8] sm:$0xff]  ;;  %v113_v30 = vld [vmem:[%s6998_s23 + $0x110] sm:$0xff] }
   0xf   :  { %v110_v29 = vld [vmem:[%s6998_s23 + $0xf8] sm:$0xff]  ;;  %v3526_v31 = vpack.c.bf16 %v106_v28, %v103_v27  ;;  %v109_v33 = vld [vmem:[%s6998_s23 + $0xf0] sm:$0xff]  ;;  %v112_v34 = vld [vmem:[%s6998_s23 + $0x108] sm:$0xff] }
  0x10   :  { %3515 = vmatpush1.bf16.msra.mxu0 %v3514_v13  ;;  %v3528_v32 = vpack.c.bf16 %v113_v30, %v110_v29  ;;  %v116_v35 = vld [vmem:[%s6998_s23 + $0x128] sm:$0xff]  ;;  %v119_v36 = vld [vmem:[%s6998_s23 + $0x140] sm:$0xff]  ;;  %v3530_v37 = vpack.c.bf16 %v112_v34, %v109_v33  ;;  %v118_v40 = vld [vmem:[%s6998_s23 + $0x138] sm:$0xff] }
  0x11   :  { %3517 = vmatprep.subr.bf16.mxu0 %v3516_v14  ;;  %v3532_v38 = vpack.c.bf16 %v119_v36, %v116_v35  ;;  %v115_v39 = vld [vmem:[%s6998_s23 + $0x120] sm:$0xff]  ;;  %v122_v42 = vld [vmem:[%s6998_s23 + $0x158] sm:$0xff]  ;;  %v125_v43 = vld [vmem:[%s6998_s23 + $0x170] sm:$0xff] }
  0x12   :  { %v3534_v44 = vpack.c.bf16 %v118_v40, %v115_v39  ;;  %v3536_v45 = vpack.c.bf16 %v125_v43, %v122_v42  ;;  %v121_v46 = vld [vmem:[%s6998_s23 + $0x150] sm:$0xff]  ;;  %v124_v47 = vld [vmem:[%s6998_s23 + $0x168] sm:$0xff]  ;;  %v131_v49 = vld [vmem:[%s6998_s23 + $0x1a0] sm:$0xff] }
  0x13   :  { %v128_v48 = vld [vmem:[%s6998_s23 + $0x188] sm:$0xff]  ;;  %v3538_v50 = vpack.c.bf16 %v124_v47, %v121_v46  ;;  %v127_v52 = vld [vmem:[%s6998_s23 + $0x180] sm:$0xff]  ;;  %v130_v53 = vld [vmem:[%s6998_s23 + $0x198] sm:$0xff] }
  0x14   :  { %3519 = vmatpush1.bf16.msra.mxu0 %v3518_v19  ;;  %v3540_v51 = vpack.c.bf16 %v131_v49, %v128_v48  ;;  %v134_v54 = vld [vmem:[%s6998_s23 + $0x1b8] sm:$0xff]  ;;  %v137_v55 = vld [vmem:[%s6998_s23 + $0x1d0] sm:$0xff]  ;;  %v3542_v56 = vpack.c.bf16 %v130_v53, %v127_v52  ;;  %v136_v59 = vld [vmem:[%s6998_s23 + $0x1c8] sm:$0xff] }
  0x15   :  { %3521 = vmatprep.subr.bf16.mxu0 %v3520_v20  ;;  %v3544_v57 = vpack.c.bf16 %v137_v55, %v134_v54  ;;  %v133_v58 = vld [vmem:[%s6998_s23 + $0x1b0] sm:$0xff]  ;;  %v140_v60 = vld [vmem:[%s6998_s23 + $0x1e8] sm:$0xff]  ;;  %v143_v61 = vld [vmem:[%s6998_s23 + $0x200] sm:$0xff] }
  0x16   :  { %v129_v62 = vld [vmem:[%s6998_s23 + $0x190] sm:$0xff]  ;;  %v132_v63 = vld [vmem:[%s6998_s23 + $0x1a8] sm:$0xff]  ;;  %v3546_v0 = vpack.c.bf16 %v136_v59, %v133_v58  ;;  %v139_v1 = vld [vmem:[%s6998_s23 + $0x1e0] sm:$0xff]  ;;  %v3548_v5 = vpack.c.bf16 %v143_v61, %v140_v60 }
  0x17   :  { %v3700_v2 = vpack.c.bf16 %v132_v63, %v129_v62  ;;  %v81_v3 = vld [vmem:[%s6998_s23 + $0x10] sm:$0xff]  ;;  %v84_v4 = vld [vmem:[%s6998_s23 + $0x28] sm:$0xff]  ;;  %v142_v6 = vld [vmem:[%s6998_s23 + $0x1f8] sm:$0xff] }
  0x18   :  { %3523 = vmatpush1.bf16.msra.mxu0 %v3522_v25  ;;  %v146_v7 = vld [vmem:[%s6998_s23 + $0x218] sm:$0xff]  ;;  %v149_v8 = vld [vmem:[%s6998_s23 + $0x230] sm:$0xff]  ;;  %v3702_v9 = vpack.c.bf16 %v84_v4, %v81_v3  ;;  %v135_v10 = vld [vmem:[%s6998_s23 + $0x1c0] sm:$0xff]  ;;  %v3550_v15 = vpack.c.bf16 %v142_v6, %v139_v1 }
  0x19   :  { %3525 = vmatprep.subr.bf16.mxu0 %v3524_v26  ;;  %3701 = vmatprep.subr.bf16.mxu1 %v3700_v2  ;;  %v138_v11 = vld [vmem:[%s6998_s23 + $0x1d8] sm:$0xff]  ;;  %v87_v12 = vld [vmem:[%s6998_s23 + $0x40] sm:$0xff]  ;;  %v145_v16 = vld [vmem:[%s6998_s23 + $0x210] sm:$0xff]  ;;  %v3552_v20 = vpack.c.bf16 %v149_v8, %v146_v7 }
  0x1a   :  { %3703 = vmatpush3.bf16.msra.mxu1 %v3702_v9  ;;  %v3704_v13 = vpack.c.bf16 %v138_v11, %v135_v10  ;;  %v90_v14 = vld [vmem:[%s6998_s23 + $0x58] sm:$0xff]  ;;  %v148_v17 = vld [vmem:[%s6998_s23 + $0x228] sm:$0xff]  ;;  %v141_v19 = vld [vmem:[%s6998_s23 + $0x1f0] sm:$0xff] }
  0x1b   :  { %v3706_v18 = vpack.c.bf16 %v90_v14, %v87_v12  ;;  %v144_v21 = vld [vmem:[%s6998_s23 + $0x208] sm:$0xff]  ;;  %v93_v22 = vld [vmem:[%s6998_s23 + $0x70] sm:$0xff]  ;;  %v155_v25 = vld [vmem:[%s6998_s23 + $0x260] sm:$0xff]  ;;  %v3554_v30 = vpack.c.bf16 %v148_v17, %v145_v16 }
  0x1c   :  { %3527 = vmatpush1.bf16.msra.mxu0 %v3526_v31  ;;  %3705 = vmatprep.subr.bf16.mxu1 %v3704_v13  ;;  %v96_v23 = vld [vmem:[%s6998_s23 + $0x88] sm:$0xff]  ;;  %v3708_v26 = vpack.c.bf16 %v144_v21, %v141_v19  ;;  %v147_v28 = vld [vmem:[%s6998_s23 + $0x220] sm:$0xff]  ;;  %v150_v29 = vld [vmem:[%s6998_s23 + $0x238] sm:$0xff] }
  0x1d   :  { %3529 = vmatprep.subr.bf16.mxu0 %v3528_v32  ;;  %v152_v24 = vld [vmem:[%s6998_s23 + $0x248] sm:$0xff]  ;;  %v3710_v27 = vpack.c.bf16 %v96_v23, %v93_v22  ;;  %v3712_v31 = vpack.c.bf16 %v150_v29, %v147_v28  ;;  %v99_v32 = vld [vmem:[%s6998_s23 + $0xa0] sm:$0xff]  ;;  %v102_v33 = vld [vmem:[%s6998_s23 + $0xb8] sm:$0xff] }
  0x1e   :  { %3707 = vmatpush3.bf16.msra.mxu1 %v3706_v18  ;;  %v3556_v34 = vpack.c.bf16 %v155_v25, %v152_v24  ;;  %v151_v35 = vld [vmem:[%s6998_s23 + $0x240] sm:$0xff]  ;;  %v154_v36 = vld [vmem:[%s6998_s23 + $0x258] sm:$0xff]  ;;  %v153_v39 = vld [vmem:[%s6998_s23 + $0x250] sm:$0xff]  ;;  %v3714_v41 = vpack.c.bf16 %v102_v33, %v99_v32 }
  0x1f   :  { %3709 = vmatprep.subr.bf16.mxu1 %v3708_v26  ;;  %v156_v40 = vld [vmem:[%s6998_s23 + $0x268] sm:$0xff]  ;;  %v3558_v42 = vpack.c.bf16 %v154_v36, %v151_v35  ;;  %v157_v43 = vld [vmem:[%s6998_s23 + $0x270] sm:$0xff]  ;;  %v159_v49 = vld [vmem:[%s6998_s23 + $0x280] sm:$0xff] }
  0x20   :  { %3531 = vmatpush1.bf16.msra.mxu0 %v3530_v37  ;;  %v158_v37 = vld [vmem:[%s6998_s23 + $0x278] sm:$0xff]  ;;  %v108_v46 = vld [vmem:[%s6998_s23 + $0xe8] sm:$0xff]  ;;  %v167_v52 = vld [vmem:[%s6998_s23 + $0x2c0] sm:$0xff] }
  0x21   :  { %3533 = vmatprep.subr.bf16.mxu0 %v3532_v38  ;;  %v161_v38 = vld [vmem:[%s6998_s23 + $0x290] sm:$0xff]  ;;  %v160_v48 = vld [vmem:[%s6998_s23 + $0x288] sm:$0xff]  ;;  %v163_v55 = vld [vmem:[%s6998_s23 + $0x2a0] sm:$0xff] }
  0x22   :  { %3711 = vmatpush3.bf16.msra.mxu1 %v3710_v27  ;;  %v3560_v47 = vpack.c.bf16 %v161_v38, %v158_v37  ;;  %v3562_v54 = vpack.c.bf16 %v160_v48, %v157_v43  ;;  %v114_v58 = vld [vmem:[%s6998_s23 + $0x118] sm:$0xff]  ;;  %v165_v61 = vld [vmem:[%s6998_s23 + $0x2b0] sm:$0xff]  ;;  %v168_v62 = vld [vmem:[%s6998_s23 + $0x2c8] sm:$0xff] }
  0x23   :  { %3713 = vmatprep.subr.bf16.mxu1 %v3712_v31  ;;  %v166_v60 = vld [vmem:[%s6998_s23 + $0x2b8] sm:$0xff]  ;;  %v169_v3 = vld [vmem:[%s6998_s23 + $0x2d0] sm:$0xff]  ;;  %v3724_v4 = vpack.c.bf16 %v168_v62, %v165_v61  ;;  %v120_v6 = vld [vmem:[%s6998_s23 + $0x148] sm:$0xff] }
  0x24   :  { %3535 = vmatpush1.bf16.msra.mxu0 %v3534_v44  ;;  %v3716_v44 = vpack.c.bf16 %v156_v40, %v153_v39  ;;  %v170_v63 = vld [vmem:[%s6998_s23 + $0x2d8] sm:$0xff]  ;;  %v3566_v2 = vpack.c.bf16 %v166_v60, %v163_v55  ;;  %v172_v8 = vld [vmem:[%s6998_s23 + $0x2e8] sm:$0xff]  ;;  %v171_v9 = vld [vmem:[%s6998_s23 + $0x2e0] sm:$0xff] }
  0x25   :  { %3537 = vmatprep.subr.bf16.mxu0 %v3536_v45  ;;  %v105_v45 = vld [vmem:[%s6998_s23 + $0xd0] sm:$0xff]  ;;  %v174_v10 = vld [vmem:[%s6998_s23 + $0x2f8] sm:$0xff]  ;;  %v176_v11 = vld [vmem:[%s6998_s23 + $0x308] sm:$0xff]  ;;  %v3570_v14 = vpack.c.bf16 %v172_v8, %v169_v3 }
  0x26   :  { %3715 = vmatpush3.bf16.msra.mxu1 %v3714_v41  ;;  %v3718_v53 = vpack.c.bf16 %v108_v46, %v105_v45  ;;  %v179_v12 = vld [vmem:[%s6998_s23 + $0x320] sm:$0xff]  ;;  %v126_v17 = vld [vmem:[%s6998_s23 + $0x178] sm:$0xff]  ;;  %v185_v22 = vld [vmem:[%s6998_s23 + $0x350] sm:$0xff] }
  0x27   :  { %3717 = vmatprep.subr.bf16.mxu1 %v3716_v44  ;;  %v123_v16 = vld [vmem:[%s6998_s23 + $0x160] sm:$0xff]  ;;  %v3572_v18 = vpack.c.bf16 %v179_v12, %v176_v11  ;;  %v182_v21 = vld [vmem:[%s6998_s23 + $0x338] sm:$0xff]  ;;  %v225_v23 = vld [vmem:[%s6998_s23 + $0x490] sm:$0xff] }
  0x28   :  { %3539 = vmatpush1.bf16.msra.mxu0 %v3538_v50  ;;  %v162_v50 = vld [vmem:[%s6998_s23 + $0x298] sm:$0xff]  ;;  %v175_v19 = vld [vmem:[%s6998_s23 + $0x300] sm:$0xff]  ;;  %v228_v24 = vld [vmem:[%s6998_s23 + $0x4a8] sm:$0xff]  ;;  %v3730_v26 = vpack.c.bf16 %v126_v17, %v123_v16  ;;  %v3576_v31 = vpack.c.bf16 %v185_v22, %v182_v21 }
  0x29   :  { %3541 = vmatprep.subr.bf16.mxu0 %v3540_v51  ;;  %v164_v51 = vld [vmem:[%s6998_s23 + $0x2a8] sm:$0xff]  ;;  %v53_v25 = vld [vmem:[%s6980_s0] sm:$0xff]  ;;  %v181_v28 = vld [vmem:[%s6998_s23 + $0x330] sm:$0xff]  ;;  %v3732_v35 = vpack.c.bf16 %v228_v24, %v225_v23 }
  0x2a   :  { %v3564_v59 = vpack.c.bf16 %v167_v52, %v164_v51  ;;  %3719 = vmatpush3.bf16.msra.mxu1 %v3718_v53  ;;  %v177_v29 = vld [vmem:[%s6998_s23 + $0x310] sm:$0xff]  ;;  %v184_v32 = vld [vmem:[%s6998_s23 + $0x348] sm:$0xff]  ;;  %v191_v36 = vld [vmem:[%s6998_s23 + $0x380] sm:$0xff] }
  0x2b   :  { %v188_v33 = vld [vmem:[%s6998_s23 + $0x368] sm:$0xff]  ;;  %v231_v37 = vld [vmem:[%s6998_s23 + $0x4c0] sm:$0xff]  ;;  %v234_v38 = vld [vmem:[%s6998_s23 + $0x4d8] sm:$0xff] }
  0x2c   :  { %3543 = vmatpush1.bf16.msra.mxu0 %v3542_v56  ;;  %v3720_v56 = vpack.c.bf16 %v162_v50, %v159_v49  ;;  %v187_v39 = vld [vmem:[%s6998_s23 + $0x360] sm:$0xff]  ;;  %v190_v40 = vld [vmem:[%s6998_s23 + $0x378] sm:$0xff]  ;;  %v59_v43 = vld [vmem:[%s6980_s0 + $0x30] sm:$0xff]  ;;  %v3580_v46 = vpack.c.bf16 %v191_v36, %v188_v33  ;;  %v3736_v48 = vpack.c.bf16 %v234_v38, %v231_v37 }
  0x2d   :  { %3545 = vmatprep.subr.bf16.mxu0 %v3544_v57  ;;  %v111_v57 = vld [vmem:[%s6998_s23 + $0x100] sm:$0xff]  ;;  %v186_v45 = vld [vmem:[%s6998_s23 + $0x358] sm:$0xff]  ;;  %v237_v49 = vld [vmem:[%s6998_s23 + $0x4f0] sm:$0xff] }
  0x2e   :  { %v3722_v1 = vpack.c.bf16 %v114_v58, %v111_v57  ;;  %3721 = vmatprep.subr.bf16.mxu1 %v3720_v56  ;;  %v183_v44 = vld [vmem:[%s6998_s23 + $0x340] sm:$0xff]  ;;  %v240_v50 = vld [vmem:[%s6998_s23 + $0x508] sm:$0xff]  ;;  %v194_v51 = vld [vmem:[%s6998_s23 + $0x398] sm:$0xff] }
  0x2f   :  { %v197_v52 = vld [vmem:[%s6998_s23 + $0x3b0] sm:$0xff]  ;;  %v3738_v53 = vpack.c.bf16 %v186_v45, %v183_v44  ;;  %v3740_v56 = vpack.c.bf16 %v240_v50, %v237_v49  ;;  %v192_v58 = vld [vmem:[%s6998_s23 + $0x388] sm:$0xff]  ;;  %v243_v61 = vld [vmem:[%s6998_s23 + $0x520] sm:$0xff] }
  0x30   :  { %3547 = vmatpush1.bf16.msra.mxu0 %v3546_v0  ;;  %v173_v0 = vld [vmem:[%s6998_s23 + $0x2f0] sm:$0xff]  ;;  %3723 = vmatpush3.bf16.msra.mxu1 %v3722_v1  ;;  %v196_v60 = vld [vmem:[%s6998_s23 + $0x3a8] sm:$0xff]  ;;  %v246_v62 = vld [vmem:[%s6998_s23 + $0x538] sm:$0xff] }
  0x31   :  { %3549 = vmatprep.subr.bf16.mxu0 %v3548_v5  ;;  %v117_v5 = vld [vmem:[%s6998_s23 + $0x130] sm:$0xff]  ;;  %v3568_v7 = vpack.c.bf16 %v173_v0, %v170_v63  ;;  %3725 = vmatprep.subr.bf16.mxu1 %v3724_v4  ;;  %v200_v63 = vld [vmem:[%s6998_s23 + $0x3c8] sm:$0xff]  ;;  %v203_v0 = vld [vmem:[%s6998_s23 + $0x3e0] sm:$0xff]  ;;  %v3744_v4 = vpack.c.bf16 %v246_v62, %v243_v61 }
  0x32   :  { %v3726_v13 = vpack.c.bf16 %v120_v6, %v117_v5  ;;  %v193_v55 = vld [vmem:[%s6998_s23 + $0x390] sm:$0xff]  ;;  %v199_v3 = vld [vmem:[%s6998_s23 + $0x3c0] sm:$0xff]  ;;  %v198_v6 = vld [vmem:[%s6998_s23 + $0x3b8] sm:$0xff] }
  0x33   :  { %v189_v57 = vld [vmem:[%s6998_s23 + $0x370] sm:$0xff]  ;;  %v195_v5 = vld [vmem:[%s6998_s23 + $0x3a0] sm:$0xff]  ;;  %v202_v8 = vld [vmem:[%s6998_s23 + $0x3d8] sm:$0xff] }
  0x34   :  { %3551 = vmatpush1.bf16.msra.mxu0 %v3550_v15  ;;  %v3728_v15 = vpack.c.bf16 %v174_v10, %v171_v9  ;;  %3727 = vmatpush3.bf16.msra.mxu1 %v3726_v13  ;;  %v3742_v1 = vpack.c.bf16 %v192_v58, %v189_v57  ;;  %v249_v9 = vld [vmem:[%s6998_s23 + $0x550] sm:$0xff]  ;;  %v252_v10 = vld [vmem:[%s6998_s23 + $0x568] sm:$0xff]  ;;  %v206_v11 = vld [vmem:[%s6998_s23 + $0x3f8] sm:$0xff]  ;;  %v3746_v13 = vpack.c.bf16 %v198_v6, %v195_v5 }
  0x35   :  { %3553 = vmatprep.subr.bf16.mxu0 %v3552_v20  ;;  %v178_v20 = vld [vmem:[%s6998_s23 + $0x318] sm:$0xff]  ;;  %v209_v12 = vld [vmem:[%s6998_s23 + $0x410] sm:$0xff]  ;;  %v3748_v16 = vpack.c.bf16 %v252_v10, %v249_v9  ;;  %v255_v21 = vld [vmem:[%s6998_s23 + $0x580] sm:$0xff] }
  0x36   :  { %v3574_v27 = vpack.c.bf16 %v178_v20, %v175_v19  ;;  %3729 = vmatprep.subr.bf16.mxu1 %v3728_v15  ;;  %v205_v15 = vld [vmem:[%s6998_s23 + $0x3f0] sm:$0xff]  ;;  %v3592_v19 = vpack.c.bf16 %v209_v12, %v206_v11  ;;  %v208_v20 = vld [vmem:[%s6998_s23 + $0x408] sm:$0xff]  ;;  %v258_v22 = vld [vmem:[%s6998_s23 + $0x598] sm:$0xff] }
  0x37   :  { %v201_v17 = vld [vmem:[%s6998_s23 + $0x3d0] sm:$0xff]  ;;  %v212_v23 = vld [vmem:[%s6998_s23 + $0x428] sm:$0xff]  ;;  %v215_v24 = vld [vmem:[%s6998_s23 + $0x440] sm:$0xff] }
  0x38   :  { %3555 = vmatpush1.bf16.msra.mxu0 %v3554_v30  ;;  %v180_v30 = vld [vmem:[%s6998_s23 + $0x328] sm:$0xff]  ;;  %3731 = vmatpush3.bf16.msra.mxu1 %v3730_v26  ;;  %v3594_v26 = vpack.c.bf16 %v208_v20, %v205_v15  ;;  %v261_v33 = vld [vmem:[%s6998_s23 + $0x5b0] sm:$0xff]  ;;  %v267_v45 = vld [vmem:[%s6998_s23 + $0x5e0] sm:$0xff] }
  0x39   :  { %3557 = vmatprep.subr.bf16.mxu0 %v3556_v34  ;;  %v60_v34 = vld [vmem:[%s6980_s0 + $0x38] sm:$0xff]  ;;  %v3734_v41 = vpack.c.bf16 %v180_v30, %v177_v29  ;;  %3733 = vmatprep.subr.bf16.mxu1 %v3732_v35  ;;  %v207_v29 = vld [vmem:[%s6998_s23 + $0x400] sm:$0xff]  ;;  %v221_v36 = vld [vmem:[%s6998_s23 + $0x470] sm:$0xff] }
  0x3a   :  { %v210_v30 = vld [vmem:[%s6998_s23 + $0x418] sm:$0xff]  ;;  %v220_v44 = vld [vmem:[%s6998_s23 + $0x468] sm:$0xff]  ;;  %v321_v57 = vld [vmem:[%s6998_s23 + $0x790] sm:$0xff] }
  0x3b   :  { %680 = vmatmul.mubr.f32.vlgmr.msra.gmra.mrb[0].mxu1 %v53_v25  ;;  %v218_v35 = vld [vmem:[%s6998_s23 + $0x458] sm:$0xff]  ;;  %v3754_v37 = vpack.c.bf16 %v210_v30, %v207_v29  ;;  %v324_v58 = vld [vmem:[%s6998_s23 + $0x7a8] sm:$0xff]  ;;  %v327_v5 = vld [vmem:[%s6998_s23 + $0x7c0] sm:$0xff] }
  0x3c   :  { %3559 = vmatpush1.bf16.msra.mxu0 %v3558_v42  ;;  %v3578_v42 = vpack.c.bf16 %v184_v32, %v181_v28  ;;  %3735 = vmatpush3.bf16.msra.mxu1 %v3734_v41  ;;  %v3752_v28 = vpack.c.bf16 %v258_v22, %v255_v21  ;;  %v214_v32 = vld [vmem:[%s6998_s23 + $0x438] sm:$0xff]  ;;  %v213_v41 = vld [vmem:[%s6998_s23 + $0x430] sm:$0xff]  ;;  %v235_v9 = vld [vmem:[%s6998_s23 + $0x4e0] sm:$0xff] }
  0x3d   :  { %3561 = vmatprep.subr.bf16.mxu0 %v3560_v47  ;;  %v56_v47 = vld [vmem:[%s6980_s0 + $0x18] sm:$0xff]  ;;  %3737 = vmatprep.subr.bf16.mxu1 %v3736_v48  ;;  %v227_v48 = vld [vmem:[%s6998_s23 + $0x4a0] sm:$0xff]  ;;  %v245_v21 = vld [vmem:[%s6998_s23 + $0x530] sm:$0xff] }
  0x3e   :  { %684 = vmatprep.mubr.f32.mxu1 %v60_v34  ;;  %v330_v6 = vld [vmem:[%s6998_s23 + $0x7d8] sm:$0xff]  ;;  %v5029_v22 = vld [vmem:[%s6980_s0 + $0x48] sm:$0xff] }
  0x3f   :  { %685 = vmatmul.mubr.f32.gmra.mrb[2].mxu1 %v59_v43  ;;  %v238_v12 = vld [vmem:[%s6998_s23 + $0x4f8] sm:$0xff]  ;;  %v288_v29 = vld [vmem:[%s6998_s23 + $0x688] sm:$0xff] }
  0x40   :  { %3563 = vmatpush1.bf16.msra.mxu0 %v3562_v54  ;;  %v3582_v54 = vpack.c.bf16 %v190_v40, %v187_v39  ;;  %3739 = vmatpush3.bf16.msra.mxu1 %v3738_v53  ;;  %v217_v39 = vld [vmem:[%s6998_s23 + $0x450] sm:$0xff]  ;;  %v219_v53 = vld [vmem:[%s6998_s23 + $0x460] sm:$0xff]  ;;  %v282_v15 = vld [vmem:[%s6998_s23 + $0x658] sm:$0xff] }
  0x41   :  { %3565 = vmatprep.subr.bf16.mxu0 %v3564_v59  ;;  %v3584_v59 = vpack.c.bf16 %v197_v52, %v194_v51  ;;  %3741 = vmatprep.subr.bf16.mxu1 %v3740_v56  ;;  %v3602_v50 = vpack.c.bf16 %v220_v44, %v217_v39  ;;  %v223_v51 = vld [vmem:[%s6998_s23 + $0x480] sm:$0xff]  ;;  %v226_v56 = vld [vmem:[%s6998_s23 + $0x498] sm:$0xff] }
  0x42   :  { %754 = vmatprep.mubr.f32.mxu1 %v56_v47  ;;  %v3606_v62 = vpack.c.bf16 %v226_v56, %v223_v51  ;;  %v242_v20 = vld [vmem:[%s6998_s23 + $0x518] sm:$0xff]  ;;  %v247_v39 = vld [vmem:[%s6998_s23 + $0x540] sm:$0xff]  ;;  %v253_v51 = vld [vmem:[%s6998_s23 + $0x570] sm:$0xff] }
  0x43   :  { %v3616_v30 = vpack.c.bf16 %v245_v21, %v242_v20  ;;  %v250_v44 = vld [vmem:[%s6998_s23 + $0x558] sm:$0xff]  ;;  %v256_v56 = vld [vmem:[%s6998_s23 + $0x588] sm:$0xff]  ;;  %v275_v21 = vld [vmem:[%s6998_s23 + $0x620] sm:$0xff] }
  0x44   :  { %3567 = vmatpush1.bf16.msra.mxu0 %v3566_v2  ;;  %v3586_v2 = vpack.c.bf16 %v196_v60, %v193_v55  ;;  %3743 = vmatpush3.bf16.msra.mxu1 %v3742_v1  ;;  %v233_v60 = vld [vmem:[%s6998_s23 + $0x4d0] sm:$0xff]  ;;  %v272_v20 = vld [vmem:[%s6998_s23 + $0x608] sm:$0xff] }
  0x45   :  { %3569 = vmatprep.subr.bf16.mxu0 %v3568_v7  ;;  %v3588_v7 = vpack.c.bf16 %v203_v0, %v200_v63  ;;  %3745 = vmatprep.subr.bf16.mxu1 %v3744_v4  ;;  %v229_v63 = vld [vmem:[%s6998_s23 + $0x4b0] sm:$0xff]  ;;  %v3764_v0 = vpack.c.bf16 %v324_v58, %v321_v57  ;;  %v232_v4 = vld [vmem:[%s6998_s23 + $0x4c8] sm:$0xff]  ;;  %v351_v57 = vld [vmem:[%s6998_s23 + $0x880] sm:$0xff] }
  0x46   :  { %v273_v1 = vld [vmem:[%s6998_s23 + $0x610] sm:$0xff]  ;;  %v3610_v11 = vpack.c.bf16 %v232_v4, %v229_v63  ;;  %v354_v58 = vld [vmem:[%s6998_s23 + $0x898] sm:$0xff]  ;;  %v259_v63 = vld [vmem:[%s6998_s23 + $0x5a0] sm:$0xff] }
  0x47   :  { %v262_v4 = vld [vmem:[%s6998_s23 + $0x5b8] sm:$0xff] }
  0x48   :  { %3571 = vmatpush1.bf16.msra.mxu0 %v3570_v14  ;;  %v3590_v14 = vpack.c.bf16 %v202_v8, %v199_v3  ;;  %3747 = vmatpush3.bf16.msra.mxu1 %v3746_v13  ;;  %v239_v8 = vld [vmem:[%s6998_s23 + $0x500] sm:$0xff]  ;;  %v3768_v13 = vpack.c.bf16 %v330_v6, %v327_v5  ;;  %v357_v5 = vld [vmem:[%s6998_s23 + $0x8b0] sm:$0xff]  ;;  %v360_v6 = vld [vmem:[%s6998_s23 + $0x8c8] sm:$0xff] }
  0x49   :  { %3573 = vmatprep.subr.bf16.mxu0 %v3572_v18  ;;  %v204_v18 = vld [vmem:[%s6998_s23 + $0x3e8] sm:$0xff]  ;;  %3749 = vmatprep.subr.bf16.mxu1 %v3748_v16 }
  0x4b   :  { %449 = vmatmul.mubr.f32.vlgmr.msra.gmra.mrb[0].mxu0 %v53_v25  ;;  %v3750_v25 = vpack.c.bf16 %v204_v18, %v201_v17  ;;  %v5011_v17 = vld [vmem:[%s6980_s0 + $0x10] sm:$0xff] }
  0x4c   :  { %3575 = vmatpush1.bf16.msra.mxu0 %v3574_v27  ;;  %454 = vmatprep.mubr.f32.mxu0 %v60_v34  ;;  %v211_v27 = vld [vmem:[%s6998_s23 + $0x420] sm:$0xff]  ;;  %v264_v34 = vld [vmem:[%s6998_s23 + $0x5c8] sm:$0xff]  ;;  %v333_v18 = vld [vmem:[%s6998_s23 + $0x7f0] sm:$0xff] }
  0x4d   :  { %3577 = vmatprep.subr.bf16.mxu0 %v3576_v31  ;;  %v3596_v31 = vpack.c.bf16 %v215_v24, %v212_v23  ;;  %3751 = vmatpush3.bf16.msra.mxu1 %v3750_v25  ;;  %v3598_v38 = vpack.c.bf16 %v214_v32, %v211_v27  ;;  %v3756_v40 = vpack.c.bf16 %v264_v34, %v261_v33  ;;  %v241_v23 = vld [vmem:[%s6998_s23 + $0x510] sm:$0xff]  ;;  %v342_v32 = vld [vmem:[%s6998_s23 + $0x838] sm:$0xff]  ;;  %v5053_v33 = vld [vmem:[%s6980_s0 + $0x40] sm:$0xff] }
  0x4e   :  { %3753 = vmatprep.subr.bf16.mxu1 %v3752_v28  ;;  %v3614_v25 = vpack.c.bf16 %v238_v12, %v235_v9  ;;  %v285_v28 = vld [vmem:[%s6998_s23 + $0x670] sm:$0xff]  ;;  %v248_v34 = vld [vmem:[%s6998_s23 + $0x548] sm:$0xff]  ;;  %v3788_v12 = vpack.c.bf16 %v360_v6, %v357_v5 }
  0x4f   :  { %455 = vmatmul.mubr.f32.gmra.mrb[2].mxu0 %v59_v43  ;;  %v3600_v43 = vpack.c.bf16 %v221_v36, %v218_v35  ;;  %v251_v35 = vld [vmem:[%s6998_s23 + $0x560] sm:$0xff]  ;;  %v5064_v36 = vld [vmem:[%s6980_s0 + $0x28] sm:$0xff]  ;;  %v868_v5 = vld [vmem:[%s6981_s5 + $0xb0] sm:$0xff] }
  0x50   :  { %3579 = vmatpush1.bf16.msra.mxu0 %v3578_v42  ;;  %525 = vmatprep.mubr.f32.mxu0 %v56_v47  ;;  %v216_v42 = vld [vmem:[%s6998_s23 + $0x448] sm:$0xff] }
  0x51   :  { %3581 = vmatprep.subr.bf16.mxu0 %v3580_v46  ;;  %v270_v46 = vld [vmem:[%s6998_s23 + $0x5f8] sm:$0xff]  ;;  %v224_v47 = vld [vmem:[%s6998_s23 + $0x488] sm:$0xff]  ;;  %3755 = vmatpush3.bf16.msra.mxu1 %v3754_v37  ;;  %v3758_v49 = vpack.c.bf16 %v216_v42, %v213_v41  ;;  %v3774_v37 = vpack.c.bf16 %v288_v29, %v285_v28  ;;  %v291_v41 = vld [vmem:[%s6998_s23 + $0x6a0] sm:$0xff]  ;;  %v3636_v28 = vpack.c.bf16 %v275_v21, %v272_v20 }
  0x52   :  { %3757 = vmatprep.subr.bf16.mxu1 %v3756_v40  ;;  %v3760_v52 = vpack.c.bf16 %v270_v46, %v267_v45  ;;  %v3604_v55 = vpack.c.bf16 %v227_v48, %v224_v47  ;;  %v294_v42 = vld [vmem:[%s6998_s23 + $0x6b8] sm:$0xff]  ;;  %v345_v45 = vld [vmem:[%s6998_s23 + $0x850] sm:$0xff]  ;;  %v348_v46 = vld [vmem:[%s6998_s23 + $0x868] sm:$0xff] }
  0x53   :  { %v254_v47 = vld [vmem:[%s6998_s23 + $0x578] sm:$0xff]  ;;  %v257_v48 = vld [vmem:[%s6998_s23 + $0x590] sm:$0xff]  ;;  %v271_v29 = vld [vmem:[%s6998_s23 + $0x600] sm:$0xff] }
  0x54   :  { %3583 = vmatpush1.bf16.msra.mxu0 %v3582_v54  ;;  %v222_v54 = vld [vmem:[%s6998_s23 + $0x478] sm:$0xff]  ;;  %v296_v6 = vld [vmem:[%s6998_s23 + $0x6c8] sm:$0xff]  ;;  %v305_v21 = vld [vmem:[%s6998_s23 + $0x710] sm:$0xff] }
  0x55   :  { %3585 = vmatprep.subr.bf16.mxu0 %v3584_v59  ;;  %v230_v59 = vld [vmem:[%s6998_s23 + $0x4b8] sm:$0xff]  ;;  %3759 = vmatpush3.bf16.msra.mxu1 %v3758_v49  ;;  %v3762_v61 = vpack.c.bf16 %v222_v54, %v219_v53  ;;  %v3778_v49 = vpack.c.bf16 %v294_v42, %v291_v41  ;;  %v297_v53 = vld [vmem:[%s6998_s23 + $0x6d0] sm:$0xff]  ;;  %v300_v54 = vld [vmem:[%s6998_s23 + $0x6e8] sm:$0xff] }
  0x56   :  { %3761 = vmatprep.subr.bf16.mxu1 %v3760_v52  ;;  %v3608_v3 = vpack.c.bf16 %v233_v60, %v230_v59  ;;  %v3780_v52 = vpack.c.bf16 %v348_v46, %v345_v45  ;;  %v260_v59 = vld [vmem:[%s6998_s23 + $0x5a8] sm:$0xff]  ;;  %v263_v60 = vld [vmem:[%s6998_s23 + $0x5c0] sm:$0xff]  ;;  %v277_v42 = vld [vmem:[%s6998_s23 + $0x630] sm:$0xff] }
  0x57   :  { %v284_v45 = vld [vmem:[%s6998_s23 + $0x668] sm:$0xff]  ;;  %v287_v46 = vld [vmem:[%s6998_s23 + $0x680] sm:$0xff]  ;;  %v302_v20 = vld [vmem:[%s6998_s23 + $0x6f8] sm:$0xff] }
  0x58   :  { %3587 = vmatpush1.bf16.msra.mxu0 %v3586_v2  ;;  %v276_v2 = vld [vmem:[%s6998_s23 + $0x628] sm:$0xff] }
  0x59   :  { %3589 = vmatprep.subr.bf16.mxu0 %v3588_v7  ;;  %v236_v7 = vld [vmem:[%s6998_s23 + $0x4e8] sm:$0xff]  ;;  %3763 = vmatpush3.bf16.msra.mxu1 %v3762_v61  ;;  %v3766_v10 = vpack.c.bf16 %v276_v2, %v273_v1  ;;  %v3782_v61 = vpack.c.bf16 %v300_v54, %v297_v53  ;;  %v303_v1 = vld [vmem:[%s6998_s23 + $0x700] sm:$0xff]  ;;  %v306_v2 = vld [vmem:[%s6998_s23 + $0x718] sm:$0xff]  ;;  %v3644_v54 = vpack.c.bf16 %v287_v46, %v284_v45 }
  0x5a   :  { %3765 = vmatprep.subr.bf16.mxu1 %v3764_v0  ;;  %v3612_v16 = vpack.c.bf16 %v239_v8, %v236_v7  ;;  %v3784_v0 = vpack.c.bf16 %v354_v58, %v351_v57  ;;  %v266_v7 = vld [vmem:[%s6998_s23 + $0x5d8] sm:$0xff]  ;;  %v269_v8 = vld [vmem:[%s6998_s23 + $0x5f0] sm:$0xff]  ;;  %v3786_v9 = vpack.c.bf16 %v306_v2, %v303_v1  ;;  %v855_v53 = vld [vmem:[%s6981_s5 + $0x48] sm:$0xff] }
  0x5b   :  { %v290_v57 = vld [vmem:[%s6998_s23 + $0x698] sm:$0xff]  ;;  %v293_v58 = vld [vmem:[%s6998_s23 + $0x6b0] sm:$0xff]  ;;  %v858_v2 = vld [vmem:[%s6981_s5 + $0x60] sm:$0xff] }
  0x5c   :  { %3591 = vmatpush1.bf16.msra.mxu0 %v3590_v14  ;;  %v279_v14 = vld [vmem:[%s6998_s23 + $0x640] sm:$0xff]  ;;  %755 = vmatmul.mubr.f32.vlgmr.msra.gmra.mrb[4].mxu1 %v5011_v17  ;;  %v883_v45 = vld [vmem:[%s6981_s5 + $0x128] sm:$0xff] }
  0x5d   :  { %3593 = vmatprep.subr.bf16.mxu0 %v3592_v19  ;;  %v336_v19 = vld [vmem:[%s6998_s23 + $0x808] sm:$0xff]  ;;  %3767 = vmatpush3.bf16.msra.mxu1 %v3766_v10  ;;  %v3770_v24 = vpack.c.bf16 %v282_v15, %v279_v14  ;;  %v3630_v10 = vpack.c.bf16 %v262_v4, %v259_v63  ;;  %v3632_v15 = vpack.c.bf16 %v269_v8, %v266_v7  ;;  %v865_v4 = vld [vmem:[%s6981_s5 + $0x98] sm:$0xff]  ;;  %v299_v7 = vld [vmem:[%s6998_s23 + $0x6e0] sm:$0xff] }
  0x5e   :  { %759 = vmatprep.mubr.f32.mxu1 %v5029_v22  ;;  %3769 = vmatprep.subr.bf16.mxu1 %v3768_v13  ;;  %v3772_v27 = vpack.c.bf16 %v336_v19, %v333_v18  ;;  %v309_v13 = vld [vmem:[%s6998_s23 + $0x730] sm:$0xff]  ;;  %v312_v14 = vld [vmem:[%s6998_s23 + $0x748] sm:$0xff]  ;;  %v363_v18 = vld [vmem:[%s6998_s23 + $0x8e0] sm:$0xff] }
  0x5f   :  { %v366_v19 = vld [vmem:[%s6998_s23 + $0x8f8] sm:$0xff]  ;;  %v5285_v8 = vld [vmem:[%s6982_s1 + $0x8] sm:$0xff]  ;;  %v886_v46 = vld [vmem:[%s6981_s5 + $0x140] sm:$0xff] }
  0x60   :  { %3595 = vmatpush1.bf16.msra.mxu0 %v3594_v26  ;;  %v244_v26 = vld [vmem:[%s6998_s23 + $0x528] sm:$0xff]  ;;  %760 = vmatmul.mubr.f32.gmra.mrb[6].mxu1 %v5053_v33 }
  0x61   :  { %3597 = vmatprep.subr.bf16.mxu0 %v3596_v31  ;;  %v339_v31 = vld [vmem:[%s6998_s23 + $0x820] sm:$0xff]  ;;  %3771 = vmatpush3.bf16.msra.mxu1 %v3770_v24 }
  0x62   :  { %829 = vmatprep.mubr.f32.mxu1 %v5064_v36  ;;  %3773 = vmatprep.subr.bf16.mxu1 %v3772_v27  ;;  %v3776_v40 = vpack.c.bf16 %v342_v32, %v339_v31  ;;  %v318_v27 = vld [vmem:[%s6998_s23 + $0x778] sm:$0xff]  ;;  %v281_v32 = vld [vmem:[%s6998_s23 + $0x650] sm:$0xff] }
  0x63   :  { %v278_v31 = vld [vmem:[%s6998_s23 + $0x638] sm:$0xff] }
  0x64   :  { %3599 = vmatpush1.bf16.msra.mxu0 %v3598_v38  ;;  %v3618_v38 = vpack.c.bf16 %v244_v26, %v241_v23  ;;  %v3790_v23 = vpack.c.bf16 %v312_v14, %v309_v13  ;;  %v315_v26 = vld [vmem:[%s6998_s23 + $0x760] sm:$0xff]  ;;  %v3640_v41 = vpack.c.bf16 %v281_v32, %v278_v31  ;;  %v864_v13 = vld [vmem:[%s6981_s5 + $0x90] sm:$0xff]  ;;  %v867_v14 = vld [vmem:[%s6981_s5 + $0xa8] sm:$0xff] }
  0x65   :  { %3601 = vmatprep.subr.bf16.mxu0 %v3600_v43  ;;  %v3620_v43 = vpack.c.bf16 %v251_v35, %v248_v34  ;;  %3775 = vmatpush3.bf16.msra.mxu1 %v3774_v37  ;;  %v847_v34 = vld [vmem:[%s6981_s5 + $0x8] sm:$0xff]  ;;  %v850_v35 = vld [vmem:[%s6981_s5 + $0x20] sm:$0xff]  ;;  %v3794_v37 = vpack.c.bf16 %v318_v27, %v315_v26  ;;  %v877_v31 = vld [vmem:[%s6981_s5 + $0xf8] sm:$0xff] }
  0x66   :  { %3777 = vmatprep.subr.bf16.mxu1 %v3776_v40  ;;  %v849_v40 = vld [vmem:[%s6981_s5 + $0x18] sm:$0xff]  ;;  %v870_v27 = vld [vmem:[%s6981_s5 + $0xc0] sm:$0xff]  ;;  %v880_v32 = vld [vmem:[%s6981_s5 + $0x110] sm:$0xff] }
  0x68   :  { %3603 = vmatpush1.bf16.msra.mxu0 %v3602_v50  ;;  %v3622_v50 = vpack.c.bf16 %v250_v44, %v247_v39  ;;  %v846_v39 = vld [vmem:[%s6981_s5] sm:$0xff]  ;;  %v3796_v44 = vpack.c.bf16 %v850_v35, %v847_v34  ;;  %v308_v34 = vld [vmem:[%s6998_s23 + $0x728] sm:$0xff] }
  0x69   :  { %3605 = vmatprep.subr.bf16.mxu0 %v3604_v55  ;;  %v3624_v55 = vpack.c.bf16 %v257_v48, %v254_v47  ;;  %3779 = vmatpush3.bf16.msra.mxu1 %v3778_v49  ;;  %v283_v47 = vld [vmem:[%s6998_s23 + $0x660] sm:$0xff]  ;;  %v3798_v48 = vpack.c.bf16 %v849_v40, %v846_v39  ;;  %v853_v49 = vld [vmem:[%s6981_s5 + $0x38] sm:$0xff]  ;;  %v3816_v40 = vpack.c.bf16 %v880_v32, %v877_v31  ;;  %v907_v31 = vld [vmem:[%s6981_s5 + $0x1e8] sm:$0xff] }
  0x6a   :  { %3781 = vmatprep.subr.bf16.mxu1 %v3780_v52  ;;  %v852_v52 = vld [vmem:[%s6981_s5 + $0x30] sm:$0xff]  ;;  %v311_v35 = vld [vmem:[%s6998_s23 + $0x740] sm:$0xff] }
  0x6b   :  { %v307_v39 = vld [vmem:[%s6998_s23 + $0x720] sm:$0xff] }
  0x6c   :  { %3607 = vmatpush1.bf16.msra.mxu0 %v3606_v62  ;;  %v3626_v62 = vpack.c.bf16 %v256_v56, %v253_v51  ;;  %v862_v56 = vld [vmem:[%s6981_s5 + $0x80] sm:$0xff] }
  0x6d   :  { %3609 = vmatprep.subr.bf16.mxu0 %v3608_v3  ;;  %v3628_v3 = vpack.c.bf16 %v263_v60, %v260_v59  ;;  %3783 = vmatpush3.bf16.msra.mxu1 %v3782_v61  ;;  %v289_v60 = vld [vmem:[%s6998_s23 + $0x690] sm:$0xff]  ;;  %v292_v61 = vld [vmem:[%s6998_s23 + $0x6a8] sm:$0xff]  ;;  %v910_v32 = vld [vmem:[%s6981_s5 + $0x200] sm:$0xff] }
  0x6e   :  { %3785 = vmatprep.subr.bf16.mxu1 %v3784_v0  ;;  %v5255_v0 = vld [vmem:[%s6980_s0 + $0x58] sm:$0xff] }
  0x70   :  { %3611 = vmatpush1.bf16.msra.mxu0 %v3610_v11  ;;  %v265_v11 = vld [vmem:[%s6998_s23 + $0x5d0] sm:$0xff] }
  0x71   :  { %3613 = vmatprep.subr.bf16.mxu0 %v3612_v16  ;;  %v268_v16 = vld [vmem:[%s6998_s23 + $0x5e8] sm:$0xff]  ;;  %3787 = vmatpush3.bf16.msra.mxu1 %v3786_v9 }
  0x72   :  { %v3634_v24 = vpack.c.bf16 %v268_v16, %v265_v11  ;;  %3789 = vmatprep.subr.bf16.mxu1 %v3788_v12  ;;  %v295_v11 = vld [vmem:[%s6998_s23 + $0x6c0] sm:$0xff]  ;;  %v3808_v12 = vpack.c.bf16 %v868_v5, %v865_v4  ;;  %v298_v16 = vld [vmem:[%s6998_s23 + $0x6d8] sm:$0xff]  ;;  %v895_v4 = vld [vmem:[%s6981_s5 + $0x188] sm:$0xff] }
  0x73   :  { %v898_v5 = vld [vmem:[%s6981_s5 + $0x1a0] sm:$0xff] }
  0x74   :  { %3615 = vmatpush1.bf16.msra.mxu0 %v3614_v25  ;;  %v3792_v25 = vpack.c.bf16 %v366_v19, %v363_v18  ;;  %v871_v18 = vld [vmem:[%s6981_s5 + $0xc8] sm:$0xff]  ;;  %v874_v19 = vld [vmem:[%s6981_s5 + $0xe0] sm:$0xff] }
  0x75   :  { %3617 = vmatprep.subr.bf16.mxu0 %v3616_v30  ;;  %v274_v30 = vld [vmem:[%s6998_s23 + $0x618] sm:$0xff]  ;;  %3791 = vmatpush3.bf16.msra.mxu1 %v3790_v23  ;;  %v3810_v23 = vpack.c.bf16 %v867_v14, %v864_v13  ;;  %v3812_v26 = vpack.c.bf16 %v874_v19, %v871_v18  ;;  %v894_v13 = vld [vmem:[%s6981_s5 + $0x180] sm:$0xff]  ;;  %v904_v19 = vld [vmem:[%s6981_s5 + $0x1d0] sm:$0xff] }
  0x76   :  { %3793 = vmatprep.subr.bf16.mxu1 %v3792_v25  ;;  %v301_v25 = vld [vmem:[%s6998_s23 + $0x6f0] sm:$0xff]  ;;  %v897_v14 = vld [vmem:[%s6981_s5 + $0x198] sm:$0xff] }
  0x77   :  { %v901_v18 = vld [vmem:[%s6981_s5 + $0x1b8] sm:$0xff] }
  0x78   :  { %3619 = vmatpush1.bf16.msra.mxu0 %v3618_v38  ;;  %v3638_v38 = vpack.c.bf16 %v274_v30, %v271_v29  ;;  %v3656_v29 = vpack.c.bf16 %v305_v21, %v302_v20  ;;  %v304_v30 = vld [vmem:[%s6998_s23 + $0x708] sm:$0xff]  ;;  %v335_v21 = vld [vmem:[%s6998_s23 + $0x800] sm:$0xff] }
  0x79   :  { %3621 = vmatprep.subr.bf16.mxu0 %v3620_v43  ;;  %v280_v43 = vld [vmem:[%s6998_s23 + $0x648] sm:$0xff]  ;;  %3795 = vmatpush3.bf16.msra.mxu1 %v3794_v37 }
  0x7a   :  { %v3642_v51 = vpack.c.bf16 %v280_v43, %v277_v42  ;;  %3797 = vmatprep.subr.bf16.mxu1 %v3796_v44  ;;  %v879_v42 = vld [vmem:[%s6981_s5 + $0x108] sm:$0xff]  ;;  %v3660_v43 = vpack.c.bf16 %v311_v35, %v308_v34  ;;  %v310_v44 = vld [vmem:[%s6998_s23 + $0x738] sm:$0xff]  ;;  %v341_v35 = vld [vmem:[%s6998_s23 + $0x830] sm:$0xff] }
  0x7b   :  { %v332_v20 = vld [vmem:[%s6998_s23 + $0x7e8] sm:$0xff]  ;;  %v338_v34 = vld [vmem:[%s6998_s23 + $0x818] sm:$0xff] }
  0x7c   :  { %3623 = vmatpush1.bf16.msra.mxu0 %v3622_v50  ;;  %v856_v50 = vld [vmem:[%s6981_s5 + $0x50] sm:$0xff] }
  0x7d   :  { %3625 = vmatprep.subr.bf16.mxu0 %v3624_v55  ;;  %v5229_v55 = vld [vmem:[%s6980_s0 + $0x20] sm:$0xff]  ;;  %v3800_v59 = vpack.c.bf16 %v856_v50, %v853_v49  ;;  %v3662_v50 = vpack.c.bf16 %v310_v44, %v307_v39  ;;  %v337_v39 = vld [vmem:[%s6998_s23 + $0x810] sm:$0xff]  ;;  %v340_v44 = vld [vmem:[%s6998_s23 + $0x828] sm:$0xff] }
  0x7e   :  { %830 = vmatmul.mubr.f32.vlgmr.msra.gmra.mrb[8].mxu1 %v5229_v55 }
  0x7f   :  { %3799 = vmatpush1.bf16.msra.mxu1 %v3798_v48  ;;  %834 = vmatprep.mubr.f32.mxu1 %v5255_v0  ;;  %v317_v48 = vld [vmem:[%s6998_s23 + $0x770] sm:$0xff] }
  0x80   :  { %3627 = vmatpush1.bf16.msra.mxu0 %v3626_v62  ;;  %v3802_v62 = vpack.c.bf16 %v855_v53, %v852_v52  ;;  %3801 = vmatprep.subr.bf16.mxu1 %v3800_v59  ;;  %v882_v52 = vld [vmem:[%s6981_s5 + $0x120] sm:$0xff]  ;;  %v885_v53 = vld [vmem:[%s6981_s5 + $0x138] sm:$0xff] }
  0x81   :  { %3629 = vmatprep.subr.bf16.mxu0 %v3628_v3  ;;  %v3648_v3 = vpack.c.bf16 %v293_v58, %v290_v57  ;;  %v892_v57 = vld [vmem:[%s6981_s5 + $0x170] sm:$0xff]  ;;  %v320_v58 = vld [vmem:[%s6998_s23 + $0x788] sm:$0xff]  ;;  %v323_v59 = vld [vmem:[%s6998_s23 + $0x7a0] sm:$0xff] }
  0x83   :  { %3803 = vmatpush1.bf16.msra.mxu1 %v3802_v62  ;;  %v319_v62 = vld [vmem:[%s6998_s23 + $0x780] sm:$0xff] }
  0x84   :  { %3631 = vmatpush1.bf16.msra.mxu0 %v3630_v10  ;;  %v3650_v10 = vpack.c.bf16 %v292_v61, %v289_v60  ;;  %v3822_v60 = vpack.c.bf16 %v885_v53, %v882_v52  ;;  %v912_v52 = vld [vmem:[%s6981_s5 + $0x210] sm:$0xff]  ;;  %v915_v53 = vld [vmem:[%s6981_s5 + $0x228] sm:$0xff] }
  0x85   :  { %3633 = vmatprep.subr.bf16.mxu0 %v3632_v15  ;;  %v3652_v15 = vpack.c.bf16 %v299_v7, %v296_v6  ;;  %v326_v6 = vld [vmem:[%s6998_s23 + $0x7b8] sm:$0xff]  ;;  %v329_v7 = vld [vmem:[%s6998_s23 + $0x7d0] sm:$0xff] }
  0x88   :  { %3635 = vmatpush1.bf16.msra.mxu0 %v3634_v24  ;;  %v3654_v24 = vpack.c.bf16 %v298_v16, %v295_v11  ;;  %v325_v11 = vld [vmem:[%s6998_s23 + $0x7b0] sm:$0xff]  ;;  %v328_v16 = vld [vmem:[%s6998_s23 + $0x7c8] sm:$0xff] }
  0x89   :  { %3637 = vmatprep.subr.bf16.mxu0 %v3636_v28  ;;  %v873_v28 = vld [vmem:[%s6981_s5 + $0xd8] sm:$0xff] }
  0x8a   :  { %v3814_v37 = vpack.c.bf16 %v873_v28, %v870_v27  ;;  %v900_v27 = vld [vmem:[%s6981_s5 + $0x1b0] sm:$0xff]  ;;  %v903_v28 = vld [vmem:[%s6981_s5 + $0x1c8] sm:$0xff] }
  0x8b   :  { %526 = vmatmul.mubr.f32.vlgmr.msra.gmra.mrb[0].mxu0 %v5011_v17  ;;  %v286_v17 = vld [vmem:[%s6998_s23 + $0x678] sm:$0xff] }
  0x8c   :  { %3639 = vmatpush1.bf16.msra.mxu0 %v3638_v38  ;;  %531 = vmatprep.mubr.f32.mxu0 %v5029_v22  ;;  %v859_v22 = vld [vmem:[%s6981_s5 + $0x68] sm:$0xff]  ;;  %v3646_v63 = vpack.c.bf16 %v286_v17, %v283_v47  ;;  %v3658_v38 = vpack.c.bf16 %v304_v30, %v301_v25  ;;  %v314_v47 = vld [vmem:[%s6998_s23 + $0x758] sm:$0xff]  ;;  %v3820_v17 = vpack.c.bf16 %v886_v46, %v883_v45  ;;  %v331_v25 = vld [vmem:[%s6998_s23 + $0x7e0] sm:$0xff] }
  0x8d   :  { %3641 = vmatprep.subr.bf16.mxu0 %v3640_v41  ;;  %v3804_v1 = vpack.c.bf16 %v862_v56, %v859_v22  ;;  %v876_v41 = vld [vmem:[%s6981_s5 + $0xf0] sm:$0xff]  ;;  %v316_v22 = vld [vmem:[%s6998_s23 + $0x768] sm:$0xff]  ;;  %v889_v56 = vld [vmem:[%s6981_s5 + $0x158] sm:$0xff] }
  0x8e   :  { %v3818_v49 = vpack.c.bf16 %v879_v42, %v876_v41  ;;  %v334_v30 = vld [vmem:[%s6998_s23 + $0x7f8] sm:$0xff]  ;;  %v906_v41 = vld [vmem:[%s6981_s5 + $0x1e0] sm:$0xff]  ;;  %v916_v46 = vld [vmem:[%s6981_s5 + $0x230] sm:$0xff] }
  0x8f   :  { %532 = vmatmul.mubr.f32.gmra.mrb[2].mxu0 %v5053_v33  ;;  %v861_v33 = vld [vmem:[%s6981_s5 + $0x78] sm:$0xff]  ;;  %3805 = vmatprep.subr.bf16.mxu1 %v3804_v1  ;;  %v888_v1 = vld [vmem:[%s6981_s5 + $0x150] sm:$0xff] }
  0x90   :  { %3643 = vmatpush1.bf16.msra.mxu0 %v3642_v51  ;;  %602 = vmatprep.mubr.f32.mxu0 %v5064_v36  ;;  %v5266_v36 = vld [vmem:[%s6980_s0 + $0x50] sm:$0xff]  ;;  %v3806_v9 = vpack.c.bf16 %v861_v33, %v858_v2  ;;  %v891_v2 = vld [vmem:[%s6981_s5 + $0x168] sm:$0xff]  ;;  %v3668_v33 = vpack.c.bf16 %v323_v59, %v320_v58  ;;  %v909_v42 = vld [vmem:[%s6981_s5 + $0x1f8] sm:$0xff] }
  0x91   :  { %3645 = vmatprep.subr.bf16.mxu0 %v3644_v54  ;;  %835 = vmatmul.mubr.f32.gmra.mrb[10].mxu1 %v5266_v36  ;;  %v313_v51 = vld [vmem:[%s6998_s23 + $0x750] sm:$0xff]  ;;  %v3664_v54 = vpack.c.bf16 %v317_v48, %v314_v47  ;;  %v913_v45 = vld [vmem:[%s6981_s5 + $0x218] sm:$0xff]  ;;  %v344_v47 = vld [vmem:[%s6998_s23 + $0x848] sm:$0xff] }
  0x92   :  { %1215 = vmatprep.mubr.f32.mxu1 %v5285_v8  ;;  %3807 = vmatpush1.bf16.msra.mxu1 %v3806_v9  ;;  %v3666_v61 = vpack.c.bf16 %v316_v22, %v313_v51  ;;  %v3826_v9 = vpack.c.bf16 %v891_v2, %v888_v1  ;;  %v347_v48 = vld [vmem:[%s6998_s23 + $0x860] sm:$0xff]  ;;  %v346_v22 = vld [vmem:[%s6998_s23 + $0x858] sm:$0xff]  ;;  %v353_v59 = vld [vmem:[%s6998_s23 + $0x890] sm:$0xff] }
  0x93   :  { %3809 = vmatprep.subr.bf16.mxu1 %v3808_v12  ;;  %v3828_v12 = vpack.c.bf16 %v898_v5, %v895_v4  ;;  %v343_v51 = vld [vmem:[%s6998_s23 + $0x840] sm:$0xff]  ;;  %v350_v58 = vld [vmem:[%s6998_s23 + $0x878] sm:$0xff]  ;;  %v928_v5 = vld [vmem:[%s6981_s5 + $0x290] sm:$0xff] }
  0x94   :  { %3647 = vmatpush1.bf16.msra.mxu0 %v3646_v63  ;;  %v3824_v63 = vpack.c.bf16 %v892_v57, %v889_v56  ;;  %v919_v56 = vld [vmem:[%s6981_s5 + $0x248] sm:$0xff]  ;;  %v922_v57 = vld [vmem:[%s6981_s5 + $0x260] sm:$0xff]  ;;  %v921_v2 = vld [vmem:[%s6981_s5 + $0x258] sm:$0xff] }
  0x95   :  { %3649 = vmatprep.subr.bf16.mxu0 %v3648_v3  ;;  %v322_v3 = vld [vmem:[%s6998_s23 + $0x798] sm:$0xff]  ;;  %v918_v1 = vld [vmem:[%s6981_s5 + $0x240] sm:$0xff] }
  0x96   :  { %3811 = vmatpush1.bf16.msra.mxu1 %v3810_v23  ;;  %v3830_v23 = vpack.c.bf16 %v897_v14, %v894_v13  ;;  %v925_v4 = vld [vmem:[%s6981_s5 + $0x278] sm:$0xff]  ;;  %v924_v13 = vld [vmem:[%s6981_s5 + $0x270] sm:$0xff]  ;;  %v927_v14 = vld [vmem:[%s6981_s5 + $0x288] sm:$0xff] }
  0x97   :  { %3813 = vmatprep.subr.bf16.mxu1 %v3812_v26  ;;  %v3832_v26 = vpack.c.bf16 %v904_v19, %v901_v18  ;;  %v931_v18 = vld [vmem:[%s6981_s5 + $0x2a8] sm:$0xff]  ;;  %v934_v19 = vld [vmem:[%s6981_s5 + $0x2c0] sm:$0xff] }
  0x98   :  { %3651 = vmatpush1.bf16.msra.mxu0 %v3650_v10  ;;  %v3670_v10 = vpack.c.bf16 %v322_v3, %v319_v62  ;;  %v349_v62 = vld [vmem:[%s6998_s23 + $0x870] sm:$0xff]  ;;  %v352_v3 = vld [vmem:[%s6998_s23 + $0x888] sm:$0xff] }
  0x99   :  { %3653 = vmatprep.subr.bf16.mxu0 %v3652_v15  ;;  %v3672_v15 = vpack.c.bf16 %v329_v7, %v326_v6  ;;  %v356_v6 = vld [vmem:[%s6998_s23 + $0x8a8] sm:$0xff]  ;;  %v359_v7 = vld [vmem:[%s6998_s23 + $0x8c0] sm:$0xff] }
  0x9a   :  { %3815 = vmatpush1.bf16.msra.mxu1 %v3814_v37  ;;  %v3834_v37 = vpack.c.bf16 %v903_v28, %v900_v27  ;;  %v930_v27 = vld [vmem:[%s6981_s5 + $0x2a0] sm:$0xff]  ;;  %v933_v28 = vld [vmem:[%s6981_s5 + $0x2b8] sm:$0xff] }
  0x9b   :  { %3817 = vmatprep.subr.bf16.mxu1 %v3816_v40  ;;  %v3836_v40 = vpack.c.bf16 %v910_v32, %v907_v31  ;;  %v937_v31 = vld [vmem:[%s6981_s5 + $0x2d8] sm:$0xff]  ;;  %v940_v32 = vld [vmem:[%s6981_s5 + $0x2f0] sm:$0xff] }
  0x9c   :  { %3655 = vmatpush1.bf16.msra.mxu0 %v3654_v24  ;;  %v3674_v24 = vpack.c.bf16 %v328_v16, %v325_v11  ;;  %v355_v11 = vld [vmem:[%s6998_s23 + $0x8a0] sm:$0xff]  ;;  %v358_v16 = vld [vmem:[%s6998_s23 + $0x8b8] sm:$0xff] }
  0x9d   :  { %3657 = vmatprep.subr.bf16.mxu0 %v3656_v29  ;;  %v3676_v29 = vpack.c.bf16 %v335_v21, %v332_v20  ;;  %v362_v20 = vld [vmem:[%s6998_s23 + $0x8d8] sm:$0xff]  ;;  %v365_v21 = vld [vmem:[%s6998_s23 + $0x8f0] sm:$0xff] }
  0x9e   :  { %3819 = vmatpush1.bf16.msra.mxu1 %v3818_v49  ;;  %v3838_v49 = vpack.c.bf16 %v909_v42, %v906_v41  ;;  %v939_v41 = vld [vmem:[%s6981_s5 + $0x2e8] sm:$0xff] }
  0x9f   :  { %3821 = vmatprep.subr.bf16.mxu1 %v3820_v17  ;;  %v3840_v17 = vpack.c.bf16 %v916_v46, %v913_v45  ;;  %v902_v45 = vld [vmem:[%s6981_s5 + $0x1c0] sm:$0xff]  ;;  %v905_v46 = vld [vmem:[%s6981_s5 + $0x1d8] sm:$0xff] }
  0xa0   :  { %3659 = vmatpush1.bf16.msra.mxu0 %v3658_v38  ;;  %v3678_v38 = vpack.c.bf16 %v334_v30, %v331_v25  ;;  %v361_v25 = vld [vmem:[%s6998_s23 + $0x8d0] sm:$0xff]  ;;  %v364_v30 = vld [vmem:[%s6998_s23 + $0x8e8] sm:$0xff] }
  0xa1   :  { %3661 = vmatprep.subr.bf16.mxu0 %v3660_v43  ;;  %v3680_v43 = vpack.c.bf16 %v341_v35, %v338_v34  ;;  %v896_v34 = vld [vmem:[%s6981_s5 + $0x190] sm:$0xff]  ;;  %v899_v35 = vld [vmem:[%s6981_s5 + $0x1a8] sm:$0xff] }
  0xa2   :  { %3823 = vmatpush1.bf16.msra.mxu1 %v3822_v60  ;;  %v3842_v60 = vpack.c.bf16 %v915_v53, %v912_v52  ;;  %v3988_v42 = vpack.c.bf16 %v899_v35, %v896_v34  ;;  %v3992_v52 = vpack.c.bf16 %v905_v46, %v902_v45  ;;  %v854_v53 = vld [vmem:[%s6981_s5 + $0x40] sm:$0xff]  ;;  %v929_v35 = vld [vmem:[%s6981_s5 + $0x298] sm:$0xff]  ;;  %v976_v46 = vld [vmem:[%s6981_s5 + $0x410] sm:$0xff] }
  0xa3   :  { %3825 = vmatprep.subr.bf16.mxu1 %v3824_v63  ;;  %v3844_v63 = vpack.c.bf16 %v922_v57, %v919_v56  ;;  %v911_v57 = vld [vmem:[%s6981_s5 + $0x208] sm:$0xff]  ;;  %v926_v34 = vld [vmem:[%s6981_s5 + $0x280] sm:$0xff]  ;;  %v973_v45 = vld [vmem:[%s6981_s5 + $0x3f8] sm:$0xff] }
  0xa4   :  { %3663 = vmatpush1.bf16.msra.mxu0 %v3662_v50  ;;  %v3682_v50 = vpack.c.bf16 %v340_v44, %v337_v39  ;;  %v3856_v39 = vpack.c.bf16 %v940_v32, %v937_v31  ;;  %v851_v44 = vld [vmem:[%s6981_s5 + $0x28] sm:$0xff]  ;;  %v970_v32 = vld [vmem:[%s6981_s5 + $0x3e0] sm:$0xff] }
  0xa5   :  { %3665 = vmatprep.subr.bf16.mxu0 %v3664_v54  ;;  %v3684_v54 = vpack.c.bf16 %v347_v48, %v344_v47  ;;  %v943_v47 = vld [vmem:[%s6981_s5 + $0x308] sm:$0xff]  ;;  %v946_v48 = vld [vmem:[%s6981_s5 + $0x320] sm:$0xff] }
  0xa6   :  { %3827 = vmatpush1.bf16.msra.mxu1 %v3826_v9  ;;  %v3846_v9 = vpack.c.bf16 %v921_v2, %v918_v1  ;;  %v3860_v56 = vpack.c.bf16 %v946_v48, %v943_v47  ;;  %v948_v1 = vld [vmem:[%s6981_s5 + $0x330] sm:$0xff]  ;;  %v967_v31 = vld [vmem:[%s6981_s5 + $0x3c8] sm:$0xff] }
  0xa7   :  { %3829 = vmatprep.subr.bf16.mxu1 %v3828_v12  ;;  %v3848_v12 = vpack.c.bf16 %v928_v5, %v925_v4  ;;  %v958_v4 = vld [vmem:[%s6981_s5 + $0x380] sm:$0xff]  ;;  %v932_v47 = vld [vmem:[%s6981_s5 + $0x2b0] sm:$0xff]  ;;  %v935_v48 = vld [vmem:[%s6981_s5 + $0x2c8] sm:$0xff] }
  0xa8   :  { %3667 = vmatpush1.bf16.msra.mxu0 %v3666_v61  ;;  %v3686_v61 = vpack.c.bf16 %v346_v22, %v343_v51  ;;  %v942_v51 = vld [vmem:[%s6981_s5 + $0x300] sm:$0xff]  ;;  %v908_v22 = vld [vmem:[%s6981_s5 + $0x1f0] sm:$0xff] }
  0xa9   :  { %3669 = vmatprep.subr.bf16.mxu0 %v3668_v33  ;;  %v3688_v33 = vpack.c.bf16 %v353_v59, %v350_v58  ;;  %v949_v58 = vld [vmem:[%s6981_s5 + $0x338] sm:$0xff]  ;;  %v952_v59 = vld [vmem:[%s6981_s5 + $0x350] sm:$0xff]  ;;  %v3996_v2 = vpack.c.bf16 %v911_v57, %v908_v22  ;;  %v914_v5 = vld [vmem:[%s6981_s5 + $0x220] sm:$0xff] }
  0xaa   :  { %3831 = vmatpush1.bf16.msra.mxu1 %v3830_v23  ;;  %v3850_v23 = vpack.c.bf16 %v927_v14, %v924_v13  ;;  %v954_v13 = vld [vmem:[%s6981_s5 + $0x360] sm:$0xff]  ;;  %v887_v22 = vld [vmem:[%s6981_s5 + $0x148] sm:$0xff] }
  0xab   :  { %3833 = vmatprep.subr.bf16.mxu1 %v3832_v26  ;;  %v3852_v26 = vpack.c.bf16 %v934_v19, %v931_v18  ;;  %v920_v18 = vld [vmem:[%s6981_s5 + $0x250] sm:$0xff]  ;;  %v923_v19 = vld [vmem:[%s6981_s5 + $0x268] sm:$0xff]  ;;  %v982_v57 = vld [vmem:[%s6981_s5 + $0x440] sm:$0xff] }
  0xac   :  { %3671 = vmatpush1.bf16.msra.mxu0 %v3670_v10  ;;  %v3690_v10 = vpack.c.bf16 %v352_v3, %v349_v62  ;;  %v955_v3 = vld [vmem:[%s6981_s5 + $0x368] sm:$0xff] }
  0xad   :  { %3673 = vmatprep.subr.bf16.mxu0 %v3672_v15  ;;  %v3692_v15 = vpack.c.bf16 %v359_v7, %v356_v6  ;;  %v917_v6 = vld [vmem:[%s6981_s5 + $0x238] sm:$0xff]  ;;  %v866_v7 = vld [vmem:[%s6981_s5 + $0xa0] sm:$0xff] }
  0xae   :  { %3835 = vmatpush1.bf16.msra.mxu1 %v3834_v37  ;;  %v3854_v37 = vpack.c.bf16 %v933_v28, %v930_v27  ;;  %v4000_v14 = vpack.c.bf16 %v917_v6, %v914_v5  ;;  %v960_v27 = vld [vmem:[%s6981_s5 + $0x390] sm:$0xff]  ;;  %v963_v28 = vld [vmem:[%s6981_s5 + $0x3a8] sm:$0xff] }
  0xaf   :  { %3837 = vmatprep.subr.bf16.mxu1 %v3836_v40  ;;  %v936_v40 = vld [vmem:[%s6981_s5 + $0x2d0] sm:$0xff]  ;;  %v995_v6 = vld [vmem:[%s6981_s5 + $0x4a8] sm:$0xff] }
  0xb0   :  { %3675 = vmatpush1.bf16.msra.mxu0 %v3674_v24  ;;  %v3694_v24 = vpack.c.bf16 %v358_v16, %v355_v11  ;;  %v869_v11 = vld [vmem:[%s6981_s5 + $0xb8] sm:$0xff]  ;;  %v964_v16 = vld [vmem:[%s6981_s5 + $0x3b0] sm:$0xff] }
  0xb1   :  { %3677 = vmatprep.subr.bf16.mxu0 %v3676_v29  ;;  %v3696_v29 = vpack.c.bf16 %v365_v21, %v362_v20  ;;  %v872_v20 = vld [vmem:[%s6981_s5 + $0xd0] sm:$0xff]  ;;  %v875_v21 = vld [vmem:[%s6981_s5 + $0xe8] sm:$0xff] }
  0xb2   :  { %3839 = vmatpush1.bf16.msra.mxu1 %v3838_v49  ;;  %v3858_v49 = vpack.c.bf16 %v939_v41, %v936_v40  ;;  %v3876_v40 = vpack.c.bf16 %v970_v32, %v967_v31  ;;  %v966_v41 = vld [vmem:[%s6981_s5 + $0x3c0] sm:$0xff]  ;;  %v992_v5 = vld [vmem:[%s6981_s5 + $0x490] sm:$0xff]  ;;  %v1007_v32 = vld [vmem:[%s6981_s5 + $0x508] sm:$0xff] }
  0xb3   :  { %3841 = vmatprep.subr.bf16.mxu1 %v3840_v17  ;;  %v945_v17 = vld [vmem:[%s6981_s5 + $0x318] sm:$0xff] }
  0xb4   :  { %3679 = vmatpush1.bf16.msra.mxu0 %v3678_v38  ;;  %v3698_v38 = vpack.c.bf16 %v364_v30, %v361_v25  ;;  %v5697_v25 = vld [vmem:[%s6982_s1 + $0x30] sm:$0xff]  ;;  %v5708_v30 = vld [vmem:[%s6982_s1 + $0x18] sm:$0xff] }
  0xb5   :  { %3681 = vmatprep.subr.bf16.mxu0 %v3680_v43  ;;  %v848_v43 = vld [vmem:[%s6981_s5 + $0x10] sm:$0xff] }
  0xb6   :  { %3843 = vmatpush1.bf16.msra.mxu1 %v3842_v60  ;;  %v860_v60 = vld [vmem:[%s6981_s5 + $0x70] sm:$0xff] }
  0xb7   :  { %3845 = vmatprep.subr.bf16.mxu1 %v3844_v63  ;;  %v863_v63 = vld [vmem:[%s6981_s5 + $0x88] sm:$0xff] }
  0xb8   :  { %3683 = vmatpush1.bf16.msra.mxu0 %v3682_v50  ;;  %v3990_v50 = vpack.c.bf16 %v851_v44, %v848_v43  ;;  %v4008_v43 = vpack.c.bf16 %v929_v35, %v926_v34  ;;  %v881_v44 = vld [vmem:[%s6981_s5 + $0x118] sm:$0xff]  ;;  %v1000_v35 = vld [vmem:[%s6981_s5 + $0x4d0] sm:$0xff] }
  0xb9   :  { %3685 = vmatprep.subr.bf16.mxu0 %v3684_v54  ;;  %v857_v54 = vld [vmem:[%s6981_s5 + $0x58] sm:$0xff] }
  0xba   :  { %3847 = vmatpush1.bf16.msra.mxu1 %v3846_v9  ;;  %v3994_v62 = vpack.c.bf16 %v857_v54, %v854_v53  ;;  %v975_v53 = vld [vmem:[%s6981_s5 + $0x408] sm:$0xff]  ;;  %v4012_v54 = vpack.c.bf16 %v935_v48, %v932_v47  ;;  %v997_v34 = vld [vmem:[%s6981_s5 + $0x4b8] sm:$0xff] }
  0xbb   :  { %3849 = vmatprep.subr.bf16.mxu1 %v3848_v12  ;;  %v3868_v12 = vpack.c.bf16 %v958_v4, %v955_v3  ;;  %v985_v3 = vld [vmem:[%s6981_s5 + $0x458] sm:$0xff]  ;;  %v988_v4 = vld [vmem:[%s6981_s5 + $0x470] sm:$0xff] }
  0xbc   :  { %3687 = vmatpush1.bf16.msra.mxu0 %v3686_v61  ;;  %v3862_v61 = vpack.c.bf16 %v945_v17, %v942_v51  ;;  %v884_v51 = vld [vmem:[%s6981_s5 + $0x130] sm:$0xff]  ;;  %v3880_v17 = vpack.c.bf16 %v976_v46, %v973_v45  ;;  %v1010_v45 = vld [vmem:[%s6981_s5 + $0x520] sm:$0xff]  ;;  %v1013_v46 = vld [vmem:[%s6981_s5 + $0x538] sm:$0xff] }
  0xbd   :  { %3689 = vmatprep.subr.bf16.mxu0 %v3688_v33  ;;  %v5641_v33 = vld [vmem:[%s6982_s1] sm:$0xff] }
  0xbe   :  { %3851 = vmatpush1.bf16.msra.mxu1 %v3850_v23 }
  0xbf   :  { %3853 = vmatprep.subr.bf16.mxu1 %v3852_v26 }
  0xc0   :  { %3691 = vmatpush1.bf16.msra.mxu0 %v3690_v10  ;;  %v3998_v10 = vpack.c.bf16 %v863_v63, %v860_v60 }
  0xc1   :  { %3693 = vmatprep.subr.bf16.mxu0 %v3692_v15  ;;  %v5673_v15 = vld [vmem:[%s6982_s1 + $0x38] sm:$0xff] }
  0xc2   :  { %3855 = vmatpush1.bf16.msra.mxu1 %v3854_v37  ;;  %v3874_v37 = vpack.c.bf16 %v963_v28, %v960_v27  ;;  %v950_v27 = vld [vmem:[%s6981_s5 + $0x340] sm:$0xff]  ;;  %v953_v28 = vld [vmem:[%s6981_s5 + $0x358] sm:$0xff] }
  0xc3   :  { %3857 = vmatprep.subr.bf16.mxu1 %v3856_v39  ;;  %v878_v39 = vld [vmem:[%s6981_s5 + $0x100] sm:$0xff] }
  0xc4   :  { %3695 = vmatpush1.bf16.msra.mxu0 %v3694_v24  ;;  %v4002_v24 = vpack.c.bf16 %v869_v11, %v866_v7  ;;  %v984_v11 = vld [vmem:[%s6981_s5 + $0x450] sm:$0xff] }
  0xc5   :  { %3697 = vmatprep.subr.bf16.mxu0 %v3696_v29  ;;  %v4004_v29 = vpack.c.bf16 %v923_v19, %v920_v18  ;;  %v991_v18 = vld [vmem:[%s6981_s5 + $0x488] sm:$0xff]  ;;  %v994_v19 = vld [vmem:[%s6981_s5 + $0x4a0] sm:$0xff] }
  0xc6   :  { %3859 = vmatpush1.bf16.msra.mxu1 %v3858_v49  ;;  %v3892_v31 = vpack.c.bf16 %v994_v19, %v991_v18  ;;  %v980_v18 = vld [vmem:[%s6981_s5 + $0x430] sm:$0xff] }
  0xc7   :  { %3861 = vmatprep.subr.bf16.mxu1 %v3860_v56  ;;  %v979_v56 = vld [vmem:[%s6981_s5 + $0x428] sm:$0xff] }
  0xc8   :  { %3699 = vmatpush1.bf16.msra.mxu0 %v3698_v38  ;;  %v4006_v38 = vpack.c.bf16 %v875_v21, %v872_v20  ;;  %v3884_v63 = vpack.c.bf16 %v982_v57, %v979_v56 }
  0xc9   :  { %3989 = vmatprep.subr.bf16.mxu0 %v3988_v42  ;;  %1216 = vmatmul.mubr.f32.vlgmr.msra.gmra.mrb[12].mxu1 %v5641_v33  ;;  %v969_v42 = vld [vmem:[%s6981_s5 + $0x3d8] sm:$0xff] }
  0xca   :  { %3863 = vmatpush1.bf16.msra.mxu1 %v3862_v61  ;;  %1221 = vmatprep.mubr.f32.mxu1 %v5673_v15  ;;  %v3878_v49 = vpack.c.bf16 %v969_v42, %v966_v41  ;;  %v4014_v61 = vpack.c.bf16 %v887_v22, %v884_v51  ;;  %v999_v41 = vld [vmem:[%s6981_s5 + $0x4c8] sm:$0xff]  ;;  %v1002_v51 = vld [vmem:[%s6981_s5 + $0x4e0] sm:$0xff] }
  0xcb   :  { %603 = vmatmul.mubr.f32.vlgmr.msra.gmra.mrb[0].mxu0 %v5229_v55  ;;  %v951_v55 = vld [vmem:[%s6981_s5 + $0x348] sm:$0xff] }
  0xcc   :  { %3991 = vmatpush3.bf16.msra.mxu0 %v3990_v50  ;;  %608 = vmatprep.mubr.f32.mxu0 %v5255_v0  ;;  %v3864_v0 = vpack.c.bf16 %v952_v59, %v949_v58  ;;  %v3866_v9 = vpack.c.bf16 %v951_v55, %v948_v1  ;;  %v4010_v50 = vpack.c.bf16 %v881_v44, %v878_v39  ;;  %v938_v58 = vld [vmem:[%s6981_s5 + $0x2e0] sm:$0xff]  ;;  %v941_v59 = vld [vmem:[%s6981_s5 + $0x2f8] sm:$0xff]  ;;  %v956_v39 = vld [vmem:[%s6981_s5 + $0x370] sm:$0xff] }
  0xcd   :  { %3993 = vmatprep.subr.bf16.mxu0 %v3992_v52  ;;  %1222 = vmatmul.mubr.f32.gmra.mrb[14].mxu1 %v5697_v25  ;;  %v972_v52 = vld [vmem:[%s6981_s5 + $0x3f0] sm:$0xff]  ;;  %v978_v1 = vld [vmem:[%s6981_s5 + $0x420] sm:$0xff]  ;;  %v981_v55 = vld [vmem:[%s6981_s5 + $0x438] sm:$0xff] }
  0xce   :  { %3865 = vmatprep.subr.bf16.mxu1 %v3864_v0  ;;  %1292 = vmatprep.mubr.f32.mxu1 %v5708_v30  ;;  %v3882_v60 = vpack.c.bf16 %v975_v53, %v972_v52  ;;  %v893_v0 = vld [vmem:[%s6981_s5 + $0x178] sm:$0xff]  ;;  %v3886_v7 = vpack.c.bf16 %v981_v55, %v978_v1  ;;  %v959_v42 = vld [vmem:[%s6981_s5 + $0x388] sm:$0xff]  ;;  %v1006_v44 = vld [vmem:[%s6981_s5 + $0x500] sm:$0xff] }
  0xcf   :  { %609 = vmatmul.mubr.f32.gmra.mrb[2].mxu0 %v5266_v36  ;;  %v957_v36 = vld [vmem:[%s6981_s5 + $0x378] sm:$0xff]  ;;  %3867 = vmatpush1.bf16.msra.mxu1 %v3866_v9  ;;  %v4030_v48 = vpack.c.bf16 %v959_v42, %v956_v39  ;;  %v1012_v53 = vld [vmem:[%s6981_s5 + $0x530] sm:$0xff]  ;;  %v1019_v22 = vld [vmem:[%s6981_s5 + $0x568] sm:$0xff] }
  0xd0   :  { %3995 = vmatpush3.bf16.msra.mxu0 %v3994_v62  ;;  %1446 = vmatprep.mubr.f32.mxu0 %v5285_v8  ;;  %v961_v8 = vld [vmem:[%s6981_s5 + $0x398] sm:$0xff]  ;;  %v3870_v23 = vpack.c.bf16 %v957_v36, %v954_v13  ;;  %v890_v62 = vld [vmem:[%s6981_s5 + $0x160] sm:$0xff]  ;;  %v4020_v13 = vpack.c.bf16 %v995_v6, %v992_v5  ;;  %v944_v36 = vld [vmem:[%s6981_s5 + $0x310] sm:$0xff] }
  0xd1   :  { %3997 = vmatprep.subr.bf16.mxu0 %v3996_v2  ;;  %3869 = vmatprep.subr.bf16.mxu1 %v3868_v12  ;;  %v3872_v26 = vpack.c.bf16 %v964_v16, %v961_v8  ;;  %v4016_v2 = vpack.c.bf16 %v941_v59, %v938_v58  ;;  %v4018_v9 = vpack.c.bf16 %v893_v0, %v890_v62  ;;  %v987_v12 = vld [vmem:[%s6981_s5 + $0x468] sm:$0xff]  ;;  %v998_v8 = vld [vmem:[%s6981_s5 + $0x4c0] sm:$0xff]  ;;  %v1001_v16 = vld [vmem:[%s6981_s5 + $0x4d8] sm:$0xff] }
  0xd2   :  { %v3890_v20 = vpack.c.bf16 %v987_v12, %v984_v11  ;;  %v965_v52 = vld [vmem:[%s6981_s5 + $0x3b8] sm:$0xff]  ;;  %v968_v58 = vld [vmem:[%s6981_s5 + $0x3d0] sm:$0xff]  ;;  %v1015_v1 = vld [vmem:[%s6981_s5 + $0x548] sm:$0xff] }
  0xd3   :  { %3871 = vmatpush1.bf16.msra.mxu1 %v3870_v23  ;;  %v990_v23 = vld [vmem:[%s6981_s5 + $0x480] sm:$0xff]  ;;  %v1025_v0 = vld [vmem:[%s6981_s5 + $0x598] sm:$0xff]  ;;  %v1088_v42 = vld [vmem:[%s6981_s5 + $0x790] sm:$0xff] }
  0xd4   :  { %3999 = vmatpush3.bf16.msra.mxu0 %v3998_v10  ;;  %3873 = vmatprep.subr.bf16.mxu1 %v3872_v26  ;;  %v3888_v10 = vpack.c.bf16 %v988_v4, %v985_v3  ;;  %v4024_v26 = vpack.c.bf16 %v1001_v16, %v998_v8  ;;  %v1018_v55 = vld [vmem:[%s6981_s5 + $0x560] sm:$0xff]  ;;  %v977_v11 = vld [vmem:[%s6981_s5 + $0x418] sm:$0xff] }
  0xd5   :  { %4001 = vmatprep.subr.bf16.mxu0 %v4000_v14  ;;  %v947_v14 = vld [vmem:[%s6981_s5 + $0x328] sm:$0xff]  ;;  %v974_v5 = vld [vmem:[%s6981_s5 + $0x400] sm:$0xff]  ;;  %v3908_v6 = vpack.c.bf16 %v1018_v55, %v1015_v1  ;;  %v1021_v12 = vld [vmem:[%s6981_s5 + $0x578] sm:$0xff] }
  0xd6   :  { %v4022_v21 = vpack.c.bf16 %v947_v14, %v944_v36  ;;  %v1028_v36 = vld [vmem:[%s6981_s5 + $0x5b0] sm:$0xff]  ;;  %v1031_v14 = vld [vmem:[%s6981_s5 + $0x5c8] sm:$0xff]  ;;  %v4042_v16 = vpack.c.bf16 %v977_v11, %v974_v5  ;;  %v1045_v1 = vld [vmem:[%s6981_s5 + $0x638] sm:$0xff] }
  0xd7   :  { %3875 = vmatpush1.bf16.msra.mxu1 %v3874_v37  ;;  %v1048_v55 = vld [vmem:[%s6981_s5 + $0x650] sm:$0xff]  ;;  %v1055_v5 = vld [vmem:[%s6981_s5 + $0x688] sm:$0xff] }
  0xd8   :  { %4003 = vmatpush3.bf16.msra.mxu0 %v4002_v24  ;;  %3877 = vmatprep.subr.bf16.mxu1 %v3876_v40  ;;  %v993_v24 = vld [vmem:[%s6981_s5 + $0x498] sm:$0xff]  ;;  %v996_v40 = vld [vmem:[%s6981_s5 + $0x4b0] sm:$0xff]  ;;  %v3928_v11 = vpack.c.bf16 %v1048_v55, %v1045_v1 }
  0xd9   :  { %4005 = vmatprep.subr.bf16.mxu0 %v4004_v29  ;;  %v1004_v29 = vld [vmem:[%s6981_s5 + $0x4f0] sm:$0xff]  ;;  %v3894_v37 = vpack.c.bf16 %v993_v24, %v990_v23  ;;  %v3898_v47 = vpack.c.bf16 %v999_v41, %v996_v40  ;;  %v4044_v23 = vpack.c.bf16 %v1031_v14, %v1028_v36  ;;  %v983_v24 = vld [vmem:[%s6981_s5 + $0x448] sm:$0xff]  ;;  %v989_v40 = vld [vmem:[%s6981_s5 + $0x478] sm:$0xff] }
  0xda   :  { %v1033_v41 = vld [vmem:[%s6981_s5 + $0x5d8] sm:$0xff]  ;;  %v1106_v36 = vld [vmem:[%s6981_s5 + $0x820] sm:$0xff] }
  0xdb   :  { %3879 = vmatpush1.bf16.msra.mxu1 %v3878_v49  ;;  %v962_v49 = vld [vmem:[%s6981_s5 + $0x3a0] sm:$0xff]  ;;  %v1109_v14 = vld [vmem:[%s6981_s5 + $0x838] sm:$0xff] }
  0xdc   :  { %4007 = vmatpush3.bf16.msra.mxu0 %v4006_v38  ;;  %3881 = vmatprep.subr.bf16.mxu1 %v3880_v17  ;;  %v4026_v38 = vpack.c.bf16 %v953_v28, %v950_v27  ;;  %v1005_v17 = vld [vmem:[%s6981_s5 + $0x4f8] sm:$0xff]  ;;  %v4034_v57 = vpack.c.bf16 %v965_v52, %v962_v49  ;;  %v1030_v27 = vld [vmem:[%s6981_s5 + $0x5c0] sm:$0xff]  ;;  %v1040_v49 = vld [vmem:[%s6981_s5 + $0x610] sm:$0xff] }
  0xdd   :  { %4009 = vmatprep.subr.bf16.mxu0 %v4008_v43  ;;  %v3896_v43 = vpack.c.bf16 %v1000_v35, %v997_v34  ;;  %v3902_v56 = vpack.c.bf16 %v1005_v17, %v1002_v51  ;;  %v1034_v28 = vld [vmem:[%s6981_s5 + $0x5e0] sm:$0xff]  ;;  %v1097_v17 = vld [vmem:[%s6981_s5 + $0x7d8] sm:$0xff] }
  0xde   :  { %v986_v34 = vld [vmem:[%s6981_s5 + $0x460] sm:$0xff] }
  0xdf   :  { %3883 = vmatpush1.bf16.msra.mxu1 %v3882_v60  ;;  %v1008_v60 = vld [vmem:[%s6981_s5 + $0x510] sm:$0xff]  ;;  %v1094_v51 = vld [vmem:[%s6981_s5 + $0x7c0] sm:$0xff] }
  0xe0   :  { %4011 = vmatpush3.bf16.msra.mxu0 %v4010_v50  ;;  %3885 = vmatprep.subr.bf16.mxu1 %v3884_v63  ;;  %v971_v63 = vld [vmem:[%s6981_s5 + $0x3e8] sm:$0xff]  ;;  %v1042_v52 = vld [vmem:[%s6981_s5 + $0x620] sm:$0xff] }
  0xe1   :  { %4013 = vmatprep.subr.bf16.mxu0 %v4012_v54  ;;  %v1016_v54 = vld [vmem:[%s6981_s5 + $0x550] sm:$0xff]  ;;  %v4038_v4 = vpack.c.bf16 %v971_v63, %v968_v58  ;;  %v4056_v58 = vpack.c.bf16 %v1097_v17, %v1094_v51  ;;  %v1103_v63 = vld [vmem:[%s6981_s5 + $0x808] sm:$0xff]  ;;  %v1069_v51 = vld [vmem:[%s6981_s5 + $0x6f8] sm:$0xff] }
  0xe2   :  { %v4036_v62 = vpack.c.bf16 %v1019_v22, %v1016_v54  ;;  %v74_v22 = vld [vmem:[%s6982_s1 + $0x48] sm:$0xff]  ;;  %v1072_v17 = vld [vmem:[%s6981_s5 + $0x710] sm:$0xff] }
  0xe3   :  { %3887 = vmatpush1.bf16.msra.mxu1 %v3886_v7  ;;  %v1014_v7 = vld [vmem:[%s6981_s5 + $0x540] sm:$0xff] }
  0xe4   :  { %4015 = vmatpush3.bf16.msra.mxu0 %v4014_v61  ;;  %3889 = vmatprep.subr.bf16.mxu1 %v3888_v10  ;;  %v1011_v61 = vld [vmem:[%s6981_s5 + $0x528] sm:$0xff] }
  0xe5   :  { %4017 = vmatprep.subr.bf16.mxu0 %v4016_v2  ;;  %v1022_v2 = vld [vmem:[%s6981_s5 + $0x580] sm:$0xff]  ;;  %v3906_v3 = vpack.c.bf16 %v1011_v61, %v1008_v60  ;;  %v1049_v60 = vld [vmem:[%s6981_s5 + $0x658] sm:$0xff]  ;;  %v1100_v61 = vld [vmem:[%s6981_s5 + $0x7f0] sm:$0xff] }
  0xe6   :  { %v4040_v10 = vpack.c.bf16 %v1025_v0, %v1022_v2  ;;  %v73_v2 = vld [vmem:[%s6982_s1 + $0x40] sm:$0xff]  ;;  %v1052_v0 = vld [vmem:[%s6981_s5 + $0x670] sm:$0xff] }
  0xe7   :  { %3891 = vmatpush1.bf16.msra.mxu1 %v3890_v20  ;;  %v1020_v20 = vld [vmem:[%s6981_s5 + $0x570] sm:$0xff] }
  0xe8   :  { %4019 = vmatpush3.bf16.msra.mxu0 %v4018_v9  ;;  %3893 = vmatprep.subr.bf16.mxu1 %v3892_v31  ;;  %v1017_v9 = vld [vmem:[%s6981_s5 + $0x558] sm:$0xff] }
  0xe9   :  { %4021 = vmatprep.subr.bf16.mxu0 %v4020_v13  ;;  %v1024_v13 = vld [vmem:[%s6981_s5 + $0x590] sm:$0xff]  ;;  %v3910_v8 = vpack.c.bf16 %v1017_v9, %v1014_v7  ;;  %v1047_v7 = vld [vmem:[%s6981_s5 + $0x648] sm:$0xff]  ;;  %v4060_v9 = vpack.c.bf16 %v1103_v63, %v1100_v61  ;;  %v1078_v61 = vld [vmem:[%s6981_s5 + $0x740] sm:$0xff] }
  0xea   :  { %v3912_v19 = vpack.c.bf16 %v1024_v13, %v1021_v12  ;;  %v1051_v12 = vld [vmem:[%s6981_s5 + $0x668] sm:$0xff]  ;;  %v1054_v13 = vld [vmem:[%s6981_s5 + $0x680] sm:$0xff]  ;;  %v1133_v63 = vld [vmem:[%s6981_s5 + $0x8f8] sm:$0xff] }
  0xeb   :  { %1447 = vmatmul.mubr.f32.vlgmr.msra.gmra.mrb[4].mxu0 %v5641_v33  ;;  %v4028_v33 = vpack.c.bf16 %v1007_v32, %v1004_v29  ;;  %3895 = vmatpush1.bf16.msra.mxu1 %v3894_v37  ;;  %v1037_v29 = vld [vmem:[%s6981_s5 + $0x5f8] sm:$0xff]  ;;  %v4046_v32 = vpack.c.bf16 %v983_v24, %v980_v18  ;;  %v1026_v37 = vld [vmem:[%s6981_s5 + $0x5a0] sm:$0xff] }
  0xec   :  { %4023 = vmatpush3.bf16.msra.mxu0 %v4022_v21  ;;  %1451 = vmatprep.mubr.f32.mxu0 %v5673_v15  ;;  %v1003_v15 = vld [vmem:[%s6981_s5 + $0x4e8] sm:$0xff]  ;;  %v4048_v39 = vpack.c.bf16 %v1037_v29, %v1034_v28  ;;  %v1058_v18 = vld [vmem:[%s6981_s5 + $0x6a0] sm:$0xff]  ;;  %v1061_v24 = vld [vmem:[%s6981_s5 + $0x6b8] sm:$0xff] }
  0xed   :  { %4025 = vmatprep.subr.bf16.mxu0 %v4024_v26  ;;  %v3900_v50 = vpack.c.bf16 %v1006_v44, %v1003_v15  ;;  %3897 = vmatprep.subr.bf16.mxu1 %v3896_v43  ;;  %v1023_v21 = vld [vmem:[%s6981_s5 + $0x588] sm:$0xff]  ;;  %v4050_v44 = vpack.c.bf16 %v989_v40, %v986_v34  ;;  %v1112_v28 = vld [vmem:[%s6981_s5 + $0x850] sm:$0xff] }
  0xee   :  { %v1027_v26 = vld [vmem:[%s6981_s5 + $0x5a8] sm:$0xff]  ;;  %v3914_v31 = vpack.c.bf16 %v1023_v21, %v1020_v20  ;;  %v1050_v20 = vld [vmem:[%s6981_s5 + $0x660] sm:$0xff]  ;;  %v1053_v21 = vld [vmem:[%s6981_s5 + $0x678] sm:$0xff] }
  0xef   :  { %1452 = vmatmul.mubr.f32.gmra.mrb[6].mxu0 %v5697_v25  ;;  %v4032_v25 = vpack.c.bf16 %v1013_v46, %v1010_v45  ;;  %3899 = vmatpush1.bf16.msra.mxu1 %v3898_v47  ;;  %v3916_v35 = vpack.c.bf16 %v1030_v27, %v1027_v26  ;;  %v1091_v43 = vld [vmem:[%s6981_s5 + $0x7a8] sm:$0xff]  ;;  %v1032_v46 = vld [vmem:[%s6981_s5 + $0x5d0] sm:$0xff]  ;;  %v1057_v26 = vld [vmem:[%s6981_s5 + $0x698] sm:$0xff] }
  0xf0   :  { %4027 = vmatpush3.bf16.msra.mxu0 %v4026_v38  ;;  %1521 = vmatprep.mubr.f32.mxu0 %v5708_v30  ;;  %v1009_v30 = vld [vmem:[%s6981_s5 + $0x518] sm:$0xff]  ;;  %v1035_v47 = vld [vmem:[%s6981_s5 + $0x5e8] sm:$0xff]  ;;  %v1060_v27 = vld [vmem:[%s6981_s5 + $0x6b0] sm:$0xff] }
  0xf1   :  { %4029 = vmatprep.subr.bf16.mxu0 %v4028_v33  ;;  %3901 = vmatprep.subr.bf16.mxu1 %v3900_v50  ;;  %v3904_v59 = vpack.c.bf16 %v1012_v53, %v1009_v30  ;;  %v1029_v38 = vld [vmem:[%s6981_s5 + $0x5b8] sm:$0xff]  ;;  %v1036_v33 = vld [vmem:[%s6981_s5 + $0x5f0] sm:$0xff]  ;;  %v1043_v50 = vld [vmem:[%s6981_s5 + $0x628] sm:$0xff]  ;;  %v3922_v53 = vpack.c.bf16 %v1035_v47, %v1032_v46 }
  0xf2   :  { %v3918_v15 = vpack.c.bf16 %v1029_v38, %v1026_v37  ;;  %v3920_v45 = vpack.c.bf16 %v1036_v33, %v1033_v41  ;;  %v67_v30 = vld [vmem:[%s6982_s1 + $0x10] sm:$0xff]  ;;  %v4054_v54 = vpack.c.bf16 %v1043_v50, %v1040_v49  ;;  %v1115_v29 = vld [vmem:[%s6981_s5 + $0x868] sm:$0xff]  ;;  %v1066_v33 = vld [vmem:[%s6981_s5 + $0x6e0] sm:$0xff] }
  0xf3   :  { %3903 = vmatpush1.bf16.msra.mxu1 %v3902_v56  ;;  %v1038_v56 = vld [vmem:[%s6981_s5 + $0x600] sm:$0xff]  ;;  %v1064_v34 = vld [vmem:[%s6981_s5 + $0x6d0] sm:$0xff]  ;;  %v1059_v38 = vld [vmem:[%s6981_s5 + $0x6a8] sm:$0xff] }
  0xf4   :  { %4031 = vmatpush3.bf16.msra.mxu0 %v4030_v48  ;;  %3905 = vmatprep.subr.bf16.mxu1 %v3904_v59  ;;  %v4052_v48 = vpack.c.bf16 %v1091_v43, %v1088_v42  ;;  %v1046_v59 = vld [vmem:[%s6981_s5 + $0x640] sm:$0xff]  ;;  %v1056_v37 = vld [vmem:[%s6981_s5 + $0x690] sm:$0xff]  ;;  %v1067_v40 = vld [vmem:[%s6981_s5 + $0x6e8] sm:$0xff] }
  0xf5   :  { %4033 = vmatprep.subr.bf16.mxu0 %v4032_v25  ;;  %v1039_v25 = vld [vmem:[%s6981_s5 + $0x608] sm:$0xff]  ;;  %v1118_v42 = vld [vmem:[%s6981_s5 + $0x880] sm:$0xff]  ;;  %v1121_v43 = vld [vmem:[%s6981_s5 + $0x898] sm:$0xff] }
  0xf6   :  { %v1063_v41 = vld [vmem:[%s6981_s5 + $0x6c8] sm:$0xff]  ;;  %v1062_v47 = vld [vmem:[%s6981_s5 + $0x6c0] sm:$0xff]  ;;  %v4072_v49 = vpack.c.bf16 %v1121_v43, %v1118_v42  ;;  %v1073_v50 = vld [vmem:[%s6981_s5 + $0x718] sm:$0xff] }
  0xf7   :  { %3907 = vmatpush1.bf16.msra.mxu1 %v3906_v3  ;;  %v3940_v46 = vpack.c.bf16 %v1066_v33, %v1063_v41  ;;  %v1093_v41 = vld [vmem:[%s6981_s5 + $0x7b8] sm:$0xff]  ;;  %v1096_v33 = vld [vmem:[%s6981_s5 + $0x7d0] sm:$0xff] }
  0xf8   :  { %4035 = vmatpush3.bf16.msra.mxu0 %v4034_v57  ;;  %3909 = vmatprep.subr.bf16.mxu1 %v3908_v6  ;;  %v1041_v57 = vld [vmem:[%s6981_s5 + $0x618] sm:$0xff]  ;;  %v1044_v6 = vld [vmem:[%s6981_s5 + $0x630] sm:$0xff] }
  0xf9   :  { %4037 = vmatprep.subr.bf16.mxu0 %v4036_v62  ;;  %v3924_v62 = vpack.c.bf16 %v1042_v52, %v1039_v25  ;;  %v3926_v3 = vpack.c.bf16 %v1041_v57, %v1038_v56  ;;  %v1124_v25 = vld [vmem:[%s6981_s5 + $0x8b0] sm:$0xff]  ;;  %v1127_v52 = vld [vmem:[%s6981_s5 + $0x8c8] sm:$0xff] }
  0xfa   :  { %v1068_v56 = vld [vmem:[%s6981_s5 + $0x6f0] sm:$0xff]  ;;  %v1071_v57 = vld [vmem:[%s6981_s5 + $0x708] sm:$0xff] }
  0xfb   :  { %3911 = vmatpush1.bf16.msra.mxu1 %v3910_v8  ;;  %v3930_v8 = vpack.c.bf16 %v1047_v7, %v1044_v6  ;;  %v3946_v1 = vpack.c.bf16 %v1071_v57, %v1068_v56  ;;  %v1085_v6 = vld [vmem:[%s6981_s5 + $0x778] sm:$0xff]  ;;  %v1108_v56 = vld [vmem:[%s6981_s5 + $0x830] sm:$0xff]  ;;  %v1621_v57 = vld [vmem:[%s6983_s7 + $0x40] sm:$0xff] }
  0xfc   :  { %4039 = vmatpush3.bf16.msra.mxu0 %v4038_v4  ;;  %3913 = vmatprep.subr.bf16.mxu1 %v3912_v19  ;;  %v4058_v4 = vpack.c.bf16 %v1049_v60, %v1046_v59  ;;  %v3932_v19 = vpack.c.bf16 %v1054_v13, %v1051_v12  ;;  %v1079_v59 = vld [vmem:[%s6981_s5 + $0x748] sm:$0xff]  ;;  %v1081_v7 = vld [vmem:[%s6981_s5 + $0x758] sm:$0xff] }
  0xfd   :  { %4041 = vmatprep.subr.bf16.mxu0 %v4040_v10  ;;  %v70_v10 = vld [vmem:[%s6982_s1 + $0x28] sm:$0xff] }
  0xfe   :  { %v1075_v60 = vld [vmem:[%s6981_s5 + $0x728] sm:$0xff] }
  0xff   :  { %3915 = vmatpush1.bf16.msra.mxu1 %v3914_v31  ;;  %v3934_v31 = vpack.c.bf16 %v1053_v21, %v1050_v20  ;;  %v1614_v12 = vld [vmem:[%s6983_s7 + $0x8] sm:$0xff]  ;;  %v1615_v21 = vld [vmem:[%s6983_s7 + $0x10] sm:$0xff] }
 0x100   :  { %4043 = vmatpush3.bf16.msra.mxu0 %v4042_v16  ;;  %3917 = vmatprep.subr.bf16.mxu1 %v3916_v35  ;;  %v4062_v16 = vpack.c.bf16 %v1055_v5, %v1052_v0  ;;  %v3936_v35 = vpack.c.bf16 %v1060_v27, %v1057_v26  ;;  %v3948_v0 = vpack.c.bf16 %v1078_v61, %v1075_v60  ;;  %v1090_v26 = vld [vmem:[%s6981_s5 + $0x7a0] sm:$0xff]  ;;  %v369_v60 = vlaneseq }
 0x101   :  { %4045 = vmatprep.subr.bf16.mxu0 %v4044_v23  ;;  %v4064_v23 = vpack.c.bf16 %v1109_v14, %v1106_v36 }
 0x103   :  { %3919 = vmatpush1.bf16.msra.mxu1 %v3918_v15  ;;  %v3938_v15 = vpack.c.bf16 %v1059_v38, %v1056_v37  ;;  %v1617_v37 = vld [vmem:[%s6983_s7 + $0x20] sm:$0xff] }
 0x104   :  { %4047 = vmatpush3.bf16.msra.mxu0 %v4046_v32  ;;  %3921 = vmatprep.subr.bf16.mxu1 %v3920_v45  ;;  %v4066_v32 = vpack.c.bf16 %v1061_v24, %v1058_v18  ;;  %v1070_v45 = vld [vmem:[%s6981_s5 + $0x700] sm:$0xff]  ;;  %v1080_v18 = vld [vmem:[%s6981_s5 + $0x750] sm:$0xff]  ;;  %v1087_v24 = vld [vmem:[%s6981_s5 + $0x788] sm:$0xff] }
 0x105   :  { %4049 = vmatprep.subr.bf16.mxu0 %v4048_v39  ;;  %v4068_v39 = vpack.c.bf16 %v1115_v29, %v1112_v28  ;;  %v6219_v28 = vld [vmem:[%s6982_s1 + $0x20] sm:$0xff]  ;;  %v3956_v38 = vpack.c.bf16 %v1090_v26, %v1087_v24  ;;  %v1123_v24 = vld [vmem:[%s6981_s5 + $0x8a8] sm:$0xff] }
 0x106   :  { %v1086_v29 = vld [vmem:[%s6981_s5 + $0x780] sm:$0xff] }
 0x107   :  { %3923 = vmatpush1.bf16.msra.mxu1 %v3922_v53  ;;  %v4074_v53 = vpack.c.bf16 %v1073_v50, %v1070_v45  ;;  %v1095_v45 = vld [vmem:[%s6981_s5 + $0x7c8] sm:$0xff]  ;;  %v1102_v50 = vld [vmem:[%s6981_s5 + $0x800] sm:$0xff] }
 0x108   :  { %4051 = vmatpush3.bf16.msra.mxu0 %v4050_v44  ;;  %3925 = vmatprep.subr.bf16.mxu1 %v3924_v62  ;;  %v4070_v44 = vpack.c.bf16 %v1067_v40, %v1064_v34  ;;  %v1130_v62 = vld [vmem:[%s6981_s5 + $0x8e0] sm:$0xff]  ;;  %v6230_v34 = vld [vmem:[%s6982_s1 + $0x58] sm:$0xff]  ;;  %v1618_v40 = vld [vmem:[%s6983_s7 + $0x28] sm:$0xff] }
 0x109   :  { %4053 = vmatprep.subr.bf16.mxu0 %v4052_v48  ;;  %v1065_v48 = vld [vmem:[%s6981_s5 + $0x6d8] sm:$0xff]  ;;  %v4080_v5 = vpack.c.bf16 %v1133_v63, %v1130_v62  ;;  %v1104_v62 = vld [vmem:[%s6981_s5 + $0x810] sm:$0xff]  ;;  %v1107_v63 = vld [vmem:[%s6981_s5 + $0x828] sm:$0xff] }
 0x10a   :  { %1293 = vmatmul.mubr.f32.vlgmr.msra.gmra.mrb[12].mxu1 %v67_v30  ;;  %v1126_v26 = vld [vmem:[%s6981_s5 + $0x8c0] sm:$0xff] }
 0x10b   :  { %1522 = vmatmul.mubr.f32.vlgmr.msra.gmra.mrb[8].mxu0 %v67_v30  ;;  %3927 = vmatpush1.bf16.msra.mxu1 %v3926_v3  ;;  %v3942_v30 = vpack.c.bf16 %v1065_v48, %v1062_v47  ;;  %v1074_v3 = vld [vmem:[%s6981_s5 + $0x720] sm:$0xff]  ;;  %v3960_v48 = vpack.c.bf16 %v1096_v33, %v1093_v41  ;;  %v1132_v41 = vld [vmem:[%s6981_s5 + $0x8f0] sm:$0xff] }
 0x10c   :  { %4055 = vmatpush3.bf16.msra.mxu0 %v4054_v54  ;;  %1526 = vmatprep.mubr.f32.mxu0 %v74_v22  ;;  %v1076_v54 = vld [vmem:[%s6981_s5 + $0x730] sm:$0xff]  ;;  %v77_v47 = vld [vmem:[%s6984_s2] sm:$0xff] }
 0x10d   :  { %4057 = vmatprep.subr.bf16.mxu0 %v4056_v58  ;;  %3929 = vmatprep.subr.bf16.mxu1 %v3928_v11  ;;  %v4076_v58 = vpack.c.bf16 %v1127_v52, %v1124_v25  ;;  %v4078_v55 = vpack.c.bf16 %v1079_v59, %v1076_v54  ;;  %v1613_v11 = vld [vmem:[%s6983_s7] sm:$0xff] }
 0x10e   :  { %1298 = vmatprep.mubr.f32.mxu1 %v74_v22  ;;  %v3944_v22 = vpack.c.bf16 %v1072_v17, %v1069_v51  ;;  %v4084_v20 = vpack.c.bf16 %v1614_v12, %v1613_v11  ;;  %v1619_v51 = vld [vmem:[%s6983_s7 + $0x30] sm:$0xff]  ;;  %v1620_v17 = vld [vmem:[%s6983_s7 + $0x38] sm:$0xff] }
 0x10f   :  { %1527 = vmatmul.mubr.f32.gmra.mrb[10].mxu0 %v73_v2  ;;  %3931 = vmatpush1.bf16.msra.mxu1 %v3930_v8  ;;  %v4096_v54 = vpack.c.bf16 %v1620_v17, %v1619_v51  ;;  %v1117_v11 = vld [vmem:[%s6981_s5 + $0x878] sm:$0xff]  ;;  %v1120_v12 = vld [vmem:[%s6981_s5 + $0x890] sm:$0xff] }
 0x110   :  { %4059 = vmatpush3.bf16.msra.mxu0 %v4058_v4  ;;  %1596 = vmatprep.mubr.f32.mxu0 %v70_v10  ;;  %v1077_v4 = vld [vmem:[%s6981_s5 + $0x738] sm:$0xff]  ;;  %v1823_v17 = vld [vmem:[%s6986_s11 + $0x10] sm:$0xff] }
 0x111   :  { %4061 = vmatprep.subr.bf16.mxu0 %v4060_v9  ;;  %3933 = vmatprep.subr.bf16.mxu1 %v3932_v19  ;;  %v1084_v9 = vld [vmem:[%s6981_s5 + $0x770] sm:$0xff]  ;;  %v3950_v36 = vpack.c.bf16 %v1077_v4, %v1074_v3  ;;  %v1083_v19 = vld [vmem:[%s6981_s5 + $0x768] sm:$0xff]  ;;  %v1624_v3 = vld [vmem:[%s6983_s7 + $0x58] sm:$0xff]  ;;  %v3970_v4 = vpack.c.bf16 %v1107_v63, %v1104_v62 }
 0x112   :  { %1299 = vmatmul.mubr.f32.gmra.mrb[14].mxu1 %v73_v2  ;;  %v1082_v2 = vld [vmem:[%s6981_s5 + $0x760] sm:$0xff]  ;;  %v3954_v27 = vpack.c.bf16 %v1083_v19, %v1080_v18  ;;  %v3976_v18 = vpack.c.bf16 %v1120_v12, %v1117_v11  ;;  %v1116_v19 = vld [vmem:[%s6981_s5 + $0x870] sm:$0xff]  ;;  %v1832_v62 = vld [vmem:[%s6986_s11 + $0x58] sm:$0xff] }
 0x113   :  { %1369 = vmatprep.mubr.f32.mxu1 %v70_v10  ;;  %3935 = vmatpush1.bf16.msra.mxu1 %v3934_v31  ;;  %v3097_v10 = vpop.f32.mrb[0].mxu1  ;;  %v4082_v8 = vpack.c.bf16 %v1085_v6, %v1082_v2  ;;  %v1089_v31 = vld [vmem:[%s6981_s5 + $0x798] sm:$0xff]  ;;  %v1114_v2 = vld [vmem:[%s6981_s5 + $0x860] sm:$0xff]  ;;  %v1895_v12 = vld [vmem:[%s6986_s11 + $0x250] sm:$0xff] }
 0x114   :  { %4063 = vmatpush3.bf16.msra.mxu0 %v4062_v16  ;;  %3937 = vmatprep.subr.bf16.mxu1 %v3936_v35  ;;  %v3098_v13 = vpop.f32.mrb[1].mxu1  ;;  %v3952_v16 = vpack.c.bf16 %v1084_v9, %v1081_v7  ;;  %v3958_v43 = vpack.c.bf16 %v1089_v31, %v1086_v29  ;;  %v1110_v7 = vld [vmem:[%s6981_s5 + $0x840] sm:$0xff]  ;;  %v1113_v9 = vld [vmem:[%s6981_s5 + $0x858] sm:$0xff]  ;;  %v1627_v29 = vld [vmem:[%s6983_s7 + $0x70] sm:$0xff] }
 0x115   :  { %4065 = vmatprep.subr.bf16.mxu0 %v4064_v23  ;;  %v6196_v14 = vadd.f32 %v3098_v13, %v3097_v10  ;;  %v1616_v23 = vld [vmem:[%s6983_s7 + $0x18] sm:$0xff]  ;;  %v1841_v11 = vld [vmem:[%s6986_s11 + $0xa0] sm:$0xff] }
 0x116   :  { %v4088_v35 = vpack.c.bf16 %v1616_v23, %v1615_v21  ;;  %v6343_v21 = vld [vmem:[%s6985_s4] sm:$0x7]  ;;  %v1628_v31 = vld [vmem:[%s6983_s7 + $0x78] sm:$0xff] }
 0x117   :  { %3939 = vmatpush1.bf16.msra.mxu1 %v3938_v15  ;;  %v6251_v15 = vld [vmem:[%s6982_s1 + $0x50] sm:$0xff] }
 0x118   :  { %4067 = vmatpush3.bf16.msra.mxu0 %v4066_v32  ;;  %3941 = vmatprep.subr.bf16.mxu1 %v3940_v46  ;;  %v3100_v32 = vpop.f32.mrb[2].mxu1  ;;  %v4092_v46 = vpack.c.bf16 %v1618_v40, %v1617_v37  ;;  %v1122_v37 = vld [vmem:[%s6981_s5 + $0x8a0] sm:$0xff]  ;;  %v1129_v40 = vld [vmem:[%s6981_s5 + $0x8d8] sm:$0xff] }
 0x119   :  { %4069 = vmatprep.subr.bf16.mxu0 %v4068_v39  ;;  %v3101_v39 = vpop.f32.mrb[3].mxu1 }
 0x11a   :  { %v6244_v42 = vadd.f32 %v3101_v39, %v3100_v32  ;;  %v4112_v39 = vpack.c.bf16 %v1628_v31, %v1627_v29  ;;  %v1910_v29 = vld [vmem:[%s6986_s11 + $0x2c8] sm:$0xff] }
 0x11b   :  { %3943 = vmatpush1.bf16.msra.mxu1 %v3942_v30  ;;  %v1098_v30 = vld [vmem:[%s6981_s5 + $0x7e0] sm:$0xff] }
 0x11c   :  { %4071 = vmatpush3.bf16.msra.mxu0 %v4070_v44  ;;  %3945 = vmatprep.subr.bf16.mxu1 %v3944_v22  ;;  %v1092_v44 = vld [vmem:[%s6981_s5 + $0x7b0] sm:$0xff]  ;;  %v1105_v22 = vld [vmem:[%s6981_s5 + $0x818] sm:$0xff] }
 0x11d   :  { %4073 = vmatprep.subr.bf16.mxu0 %v4072_v49  ;;  %v1099_v49 = vld [vmem:[%s6981_s5 + $0x7e8] sm:$0xff]  ;;  %v3962_v25 = vpack.c.bf16 %v1095_v45, %v1092_v44  ;;  %v3968_v61 = vpack.c.bf16 %v1108_v56, %v1105_v22  ;;  %v1871_v44 = vld [vmem:[%s6986_s11 + $0x190] sm:$0xff]  ;;  %v1880_v22 = vld [vmem:[%s6986_s11 + $0x1d8] sm:$0xff] }
 0x11e   :  { %v3964_v52 = vpack.c.bf16 %v1102_v50, %v1099_v49  ;;  %v1874_v45 = vld [vmem:[%s6986_s11 + $0x1a8] sm:$0xff]  ;;  %v3984_v49 = vpack.c.bf16 %v1132_v41, %v1129_v40 }
 0x11f   :  { %3947 = vmatpush1.bf16.msra.mxu1 %v3946_v1  ;;  %v1131_v50 = vld [vmem:[%s6981_s5 + $0x8e8] sm:$0xff]  ;;  %v4218_v51 = vpack.c.bf16 %v1874_v45, %v1871_v44  ;;  %v1868_v44 = vld [vmem:[%s6986_s11 + $0x178] sm:$0xff] }
 0x120   :  { %4075 = vmatpush3.bf16.msra.mxu0 %v4074_v53  ;;  %3949 = vmatprep.subr.bf16.mxu1 %v3948_v0  ;;  %v1101_v53 = vld [vmem:[%s6981_s5 + $0x7f8] sm:$0xff]  ;;  %v1623_v0 = vld [vmem:[%s6983_s7 + $0x50] sm:$0xff] }
 0x121   :  { %4077 = vmatprep.subr.bf16.mxu0 %v4076_v58  ;;  %v1622_v58 = vld [vmem:[%s6983_s7 + $0x48] sm:$0xff]  ;;  %v3966_v59 = vpack.c.bf16 %v1101_v53, %v1098_v30  ;;  %v4104_v10 = vpack.c.bf16 %v1624_v3, %v1623_v0  ;;  %v1835_v3 = vld [vmem:[%s6986_s11 + $0x70] sm:$0xff] }
 0x122   :  { %v4100_v1 = vpack.c.bf16 %v1622_v58, %v1621_v57 }
 0x123   :  { %3951 = vmatpush1.bf16.msra.mxu1 %v3950_v36  ;;  %v1625_v36 = vld [vmem:[%s6983_s7 + $0x60] sm:$0xff] }
 0x124   :  { %4079 = vmatpush3.bf16.msra.mxu0 %v4078_v55  ;;  %3953 = vmatprep.subr.bf16.mxu1 %v3952_v16  ;;  %v1111_v55 = vld [vmem:[%s6981_s5 + $0x848] sm:$0xff]  ;;  %v3974_v16 = vpack.c.bf16 %v1113_v9, %v1110_v7  ;;  %v1892_v7 = vld [vmem:[%s6986_s11 + $0x238] sm:$0xff] }
 0x125   :  { %4081 = vmatprep.subr.bf16.mxu0 %v4080_v5  ;;  %v6311_v5 = vshrl.u32 %v369_v60, 7  ;;  %v3972_v6 = vpack.c.bf16 %v1114_v2, %v1111_v55  ;;  %v1886_v55 = vld [vmem:[%s6986_s11 + $0x208] sm:$0xff] }
 0x127   :  { %3955 = vmatpush1.bf16.msra.mxu1 %v3954_v27  ;;  %v6326_v13 = vsub.s32 2, %v6311_v5 }
 0x128   :  { %4083 = vmatpush3.bf16.msra.mxu0 %v4082_v8  ;;  %3957 = vmatprep.subr.bf16.mxu1 %v3956_v38  ;;  %v1626_v8 = vld [vmem:[%s6983_s7 + $0x68] sm:$0xff]  ;;  %v1125_v38 = vld [vmem:[%s6981_s5 + $0x8b8] sm:$0xff] }
 0x129   :  { %4085 = vmatprep.subr.bf16.mxu0 %v4084_v20  ;;  %v4108_v23 = vpack.c.bf16 %v1626_v8, %v1625_v36  ;;  %v380_v27 = vrot.slane %v6343_v21, %v6326_v13 }
 0x12b   :  { %1597 = vmatmul.mubr.f32.vlgmr.msra.gmra.mrb[12].mxu0 %v6219_v28  ;;  %3959 = vmatpush1.bf16.msra.mxu1 %v3958_v43  ;;  %v682_v33 = vadd.f32 %v6196_v14, %v380_v27  ;;  %v1128_v14 = vld [vmem:[%s6981_s5 + $0x8d0] sm:$0xff] }
 0x12c   :  { %4087 = vmatpush3.bf16.msra.mxu0 %v4084_v20  ;;  %1601 = vmatprep.mubr.f32.mxu0 %v6230_v34  ;;  %v1119_v20 = vld [vmem:[%s6981_s5 + $0x888] sm:$0xff]  ;;  %v3986_v57 = vpack.c.bf16 %v1131_v50, %v1128_v14 }
 0x12d   :  { %4089 = vmatprep.subr.bf16.mxu0 %v4088_v35  ;;  %3961 = vmatprep.subr.bf16.mxu1 %v3960_v48  ;;  %v3978_v32 = vpack.c.bf16 %v1119_v20, %v1116_v19  ;;  %v1901_v19 = vld [vmem:[%s6986_s11 + $0x280] sm:$0xff] }
 0x12f   :  { %1602 = vmatmul.mubr.f32.gmra.mrb[14].mxu0 %v6251_v15  ;;  %3963 = vmatpush1.bf16.msra.mxu1 %v3962_v25  ;;  %v3135_v43 = vpop.f32.mrb[4].mxu1  ;;  %v1826_v25 = vld [vmem:[%s6986_s11 + $0x28] sm:$0xff] }
 0x130   :  { %4091 = vmatpush3.bf16.msra.mxu0 %v4088_v35  ;;  %3423 = vmatprep.mubr.f32.mxu0 %v77_v47  ;;  %v3980_v35 = vpack.c.bf16 %v1126_v26, %v1123_v24  ;;  %v3982_v47 = vpack.c.bf16 %v1125_v38, %v1122_v37  ;;  %v1853_v24 = vld [vmem:[%s6986_s11 + $0x100] sm:$0xff]  ;;  %v1856_v26 = vld [vmem:[%s6986_s11 + $0x118] sm:$0xff]  ;;  %v1862_v37 = vld [vmem:[%s6986_s11 + $0x148] sm:$0xff] }
 0x131   :  { %4093 = vmatprep.subr.bf16.mxu0 %v4092_v46  ;;  %3965 = vmatprep.subr.bf16.mxu1 %v3964_v52  ;;  %v687_v52 = vadd.f32 %v6244_v42, %v380_v27  ;;  %v78_v42 = vld [vmem:[%s6984_s2 + $0x8] sm:$0xff]  ;;  %v1907_v27 = vld [vmem:[%s6986_s11 + $0x2b0] sm:$0xff]  ;;  %v4240_v31 = vpack.c.bf16 %v1856_v26, %v1853_v24  ;;  %v1913_v38 = vld [vmem:[%s6986_s11 + $0x2e0] sm:$0xff] }
 0x133   :  { %3967 = vmatpush1.bf16.msra.mxu1 %v3966_v59  ;;  %v4220_v59 = vpack.c.bf16 %v1826_v25, %v1823_v17 }
 0x134   :  { %4095 = vmatpush3.bf16.msra.mxu0 %v4092_v46  ;;  %3969 = vmatprep.subr.bf16.mxu1 %v3968_v61  ;;  %v3136_v46 = vpop.f32.mrb[5].mxu1  ;;  %v1829_v61 = vld [vmem:[%s6986_s11 + $0x40] sm:$0xff] }
 0x135   :  { %4097 = vmatprep.subr.bf16.mxu0 %v4096_v54  ;;  %v3137_v48 = vadd.f32 %v3136_v46, %v3135_v43  ;;  %v3138_v53 = vpop.f32.mrb[6].mxu1  ;;  %v4224_v2 = vpack.c.bf16 %v1832_v62, %v1829_v61  ;;  %v1865_v43 = vld [vmem:[%s6986_s11 + $0x160] sm:$0xff]  ;;  %v1919_v46 = vld [vmem:[%s6986_s11 + $0x310] sm:$0xff]  ;;  %v6518_v61 = vsub.s32 1, %v6311_v5 }
 0x136   :  { %v3139_v56 = vpop.f32.mrb[7].mxu1 }
 0x137   :  { %3971 = vmatpush1.bf16.msra.mxu1 %v3970_v4  ;;  %v6391_v30 = vadd.f32 %v3137_v48, %v682_v33  ;;  %v3140_v58 = vadd.f32 %v3139_v56, %v3138_v53  ;;  %v1838_v4 = vld [vmem:[%s6986_s11 + $0x88] sm:$0xff]  ;;  %v1713_v53 = vld [vmem:[%s6987_s9] sm:$0xff]  ;;  %v1716_v56 = vld [vmem:[%s6987_s9 + $0x18] sm:$0xff] }
 0x138   :  { %4099 = vmatpush3.bf16.msra.mxu0 %v4096_v54  ;;  %3973 = vmatprep.subr.bf16.mxu1 %v3972_v6  ;;  %v1877_v54 = vld [vmem:[%s6986_s11 + $0x1c0] sm:$0xff]  ;;  %v4228_v9 = vpack.c.bf16 %v1838_v4, %v1835_v3 }
 0x139   :  { %4101 = vmatprep.subr.bf16.mxu0 %v4100_v1  ;;  %v4222_v60 = vpack.c.bf16 %v1880_v22, %v1877_v54  ;;  %v6408_v63 = vadd.f32 %v3140_v58, %v687_v52  ;;  %v1889_v6 = vld [vmem:[%s6986_s11 + $0x220] sm:$0xff]  ;;  %v1714_v54 = vld [vmem:[%s6987_s9 + $0x8] sm:$0xff] }
 0x13a   :  { %v4116_v22 = vpack.c.bf16 %v1714_v54, %v1713_v53  ;;  %v1717_v58 = vld [vmem:[%s6987_s9 + $0x20] sm:$0xff] }
 0x13b   :  { %3975 = vmatpush1.bf16.msra.mxu1 %v3974_v16  ;;  %v1847_v16 = vld [vmem:[%s6986_s11 + $0xd0] sm:$0xff] }
 0x13c   :  { %4103 = vmatpush3.bf16.msra.mxu0 %v4100_v1  ;;  %3977 = vmatprep.subr.bf16.mxu1 %v3976_v18  ;;  %v1883_v1 = vld [vmem:[%s6986_s11 + $0x1f0] sm:$0xff]  ;;  %v1850_v18 = vld [vmem:[%s6986_s11 + $0xe8] sm:$0xff] }
 0x13d   :  { %4105 = vmatprep.subr.bf16.mxu0 %v4104_v10  ;;  %v4226_v0 = vpack.c.bf16 %v1886_v55, %v1883_v1  ;;  %v4236_v20 = vpack.c.bf16 %v1850_v18, %v1847_v16  ;;  %v1719_v1 = vld [vmem:[%s6987_s9 + $0x30] sm:$0xff]  ;;  %v1720_v55 = vld [vmem:[%s6987_s9 + $0x38] sm:$0xff]  ;;  %v1725_v16 = vld [vmem:[%s6987_s9 + $0x60] sm:$0xf] }
 0x13e   :  { %v1925_v18 = vld [vmem:[%s6986_s11 + $0x340] sm:$0xff] }
 0x13f   :  { %3979 = vmatpush1.bf16.msra.mxu1 %v3978_v32  ;;  %v4242_v32 = vpack.c.bf16 %v1910_v29, %v1907_v27  ;;  %v1931_v29 = vld [vmem:[%s6986_s11 + $0x370] sm:$0xff] }
 0x140   :  { %4107 = vmatpush3.bf16.msra.mxu0 %v4104_v10  ;;  %3981 = vmatprep.subr.bf16.mxu1 %v3980_v35  ;;  %v4230_v10 = vpack.c.bf16 %v1892_v7, %v1889_v6  ;;  %v1859_v35 = vld [vmem:[%s6986_s11 + $0x130] sm:$0xff]  ;;  %v1721_v7 = vld [vmem:[%s6987_s9 + $0x40] sm:$0xff] }
 0x141   :  { %4109 = vmatprep.subr.bf16.mxu0 %v4108_v23  ;;  %v4244_v40 = vpack.c.bf16 %v1862_v37, %v1859_v35 }
 0x143   :  { %3983 = vmatpush1.bf16.msra.mxu1 %v3982_v47  ;;  %v1922_v47 = vld [vmem:[%s6986_s11 + $0x328] sm:$0xff] }
 0x144   :  { %4111 = vmatpush3.bf16.msra.mxu0 %v4108_v23  ;;  %3985 = vmatprep.subr.bf16.mxu1 %v3984_v49  ;;  %v4248_v49 = vpack.c.bf16 %v1868_v44, %v1865_v43 }
 0x145   :  { %4113 = vmatprep.subr.bf16.mxu0 %v4112_v39 }
 0x147   :  { %3987 = vmatpush1.bf16.msra.mxu1 %v3986_v57 }
 0x148   :  { %4115 = vmatpush3.bf16.msra.mxu0 %v4112_v39  ;;  %v1916_v39 = vld [vmem:[%s6986_s11 + $0x2f8] sm:$0xff]  ;;  %4117 = vmatprep.subr.bf16.mxu1 %v4116_v22 }
 0x149   :  { %4219 = vmatprep.subr.bf16.mxu0 %v4218_v51  ;;  %v4246_v33 = vpack.c.bf16 %v1916_v39, %v1913_v38  ;;  %v6492_v51 = vpack.c.bf16 %v1922_v47, %v1919_v46  ;;  %v1134_v47 = vld [vmem:[%s6988_s6] sm:$0x7] }
 0x14a   :  { %1370 = vmatmul.mubr.f32.vlgmr.msra.gmra.mrb[12].mxu1 %v6219_v28  ;;  %v1844_v28 = vld [vmem:[%s6986_s11 + $0xb8] sm:$0xff] }
 0x14b   :  { %3424 = vmatmul.mubr.f32.vlgmr.msra.gmra.mrb[16].mxu0 %v78_v42  ;;  %1375 = vmatprep.mubr.f32.mxu1 %v6230_v34  ;;  %v1898_v34 = vld [vmem:[%s6986_s11 + $0x268] sm:$0xff]  ;;  %v4232_v36 = vpack.c.bf16 %v1844_v28, %v1841_v11  ;;  %v1723_v11 = vld [vmem:[%s6987_s9 + $0x50] sm:$0xff]  ;;  %v1724_v28 = vld [vmem:[%s6987_s9 + $0x58] sm:$0xff] }
 0x14c   :  { %4221 = vmatpush3.bf16.msra.mxu0 %v4220_v59  ;;  %v4234_v8 = vpack.c.bf16 %v1898_v34, %v1895_v12  ;;  %v1718_v42 = vld [vmem:[%s6987_s9 + $0x28] sm:$0xff]  ;;  %4119 = vmatpush3.bf16.msra.mxu1 %v4116_v22 }
 0x14d   :  { %4223 = vmatprep.subr.bf16.mxu0 %v4222_v60  ;;  %v4124_v59 = vpack.c.bf16 %v1718_v42, %v1717_v58  ;;  %v6515_v60 = vsub.s32 0, %v6311_v5 }
 0x14e   :  { %1376 = vmatmul.mubr.f32.gmra.mrb[14].mxu1 %v6251_v15  ;;  %v1904_v15 = vld [vmem:[%s6986_s11 + $0x298] sm:$0xff] }
 0x14f   :  { %v4238_v23 = vpack.c.bf16 %v1904_v15, %v1901_v19  ;;  %v372_v62 = vrot.slane %v6343_v21, %v6515_v60  ;;  %v1928_v19 = vld [vmem:[%s6986_s11 + $0x358] sm:$0xff]  ;;  %v1822_v15 = vld [vmem:[%s6986_s11 + $0x8] sm:$0xff] }
 0x150   :  { %4225 = vmatpush3.bf16.msra.mxu0 %v4224_v2  ;;  %v4254_v24 = vpack.c.bf16 %v1928_v19, %v1925_v18  ;;  %v1831_v18 = vld [vmem:[%s6986_s11 + $0x50] sm:$0xff] }
 0x151   :  { %4227 = vmatprep.subr.bf16.mxu0 %v4226_v0  ;;  %v3173_v41 = vpop.f32.mrb[8].mxu1  ;;  %v4128_v0 = vpack.c.bf16 %v1720_v55, %v1719_v1  ;;  %v3039_v1 = vld [vmem:[%s6989_s8] ss:$0 sm:$0xff] }
 0x152   :  { %v3174_v45 = vpop.f32.mrb[9].mxu1 }
 0x153   :  { %v3175_v48 = vadd.f32 %v3174_v45, %v3173_v41 }
 0x154   :  { %4229 = vmatpush3.bf16.msra.mxu0 %v4228_v9 }
 0x155   :  { %4231 = vmatprep.subr.bf16.mxu0 %v4230_v10  ;;  %v832_v14 = vadd.f32 %v3175_v48, %v6391_v30  ;;  %v1715_v30 = vld [vmem:[%s6987_s9 + $0x10] sm:$0xff]  ;;  %v1147_v48 = vrot.slane %v1134_v47, %v6326_v13 }
 0x156   :  { %v4120_v57 = vpack.c.bf16 %v1716_v56, %v1715_v30 }
 0x158   :  { %4233 = vmatpush3.bf16.msra.mxu0 %v4232_v36  ;;  %4121 = vmatprep.subr.bf16.mxu1 %v4120_v57  ;;  %v4136_v36 = vpack.c.bf16 %v1724_v28, %v1723_v11 }
 0x159   :  { %4235 = vmatprep.subr.bf16.mxu0 %v4234_v8  ;;  %4123 = vmatpush3.bf16.msra.mxu1 %v4120_v57 }
 0x15a   :  { %4125 = vmatprep.subr.bf16.mxu1 %v4124_v59 }
 0x15c   :  { %4237 = vmatpush3.bf16.msra.mxu0 %v4236_v20  ;;  %v1825_v20 = vld [vmem:[%s6986_s11 + $0x20] sm:$0xff] }
 0x15d   :  { %4239 = vmatprep.subr.bf16.mxu0 %v4238_v23  ;;  %4127 = vmatpush3.bf16.msra.mxu1 %v4124_v59  ;;  %v4140_v26 = vpack.c.bf16 %v1825_v20, %v1822_v15 }
 0x15e   :  { %4129 = vmatprep.subr.bf16.mxu1 %v4128_v0 }
 0x160   :  { %4241 = vmatpush3.bf16.msra.mxu0 %v4240_v31  ;;  %v1934_v31 = vld [vmem:[%s6986_s11 + $0x388] sm:$0xf] }
 0x161   :  { %4243 = vmatprep.subr.bf16.mxu0 %v4242_v32  ;;  %4131 = vmatpush3.bf16.msra.mxu1 %v4128_v0  ;;  %v4258_v37 = vpack.c.bf16 %v1934_v31, %v1931_v29  ;;  %v1834_v31 = vld [vmem:[%s6986_s11 + $0x68] sm:$0xff] }
 0x164   :  { %4245 = vmatpush3.bf16.msra.mxu0 %v4244_v40  ;;  %v3176_v50 = vpop.f32.mrb[10].mxu1 }
 0x165   :  { %4247 = vmatprep.subr.bf16.mxu0 %v4246_v33  ;;  %v3177_v17 = vpop.f32.mrb[11].mxu1 }
 0x166   :  { %v3178_v25 = vadd.f32 %v3177_v17, %v3176_v50 }
 0x168   :  { %4249 = vmatpush3.bf16.msra.mxu0 %v4248_v49  ;;  %v837_v52 = vadd.f32 %v3178_v25, %v6408_v63  ;;  %v376_v63 = vrot.slane %v6343_v21, %v6518_v61  ;;  %v1722_v21 = vld [vmem:[%s6987_s9 + $0x48] sm:$0xff] }
 0x169   :  { %4251 = vmatprep.subr.bf16.mxu0 %v6492_v51  ;;  %v4132_v10 = vpack.c.bf16 %v1722_v21, %v1721_v7 }
 0x16b   :  { %4133 = vmatprep.subr.bf16.mxu1 %v4132_v10 }
 0x16c   :  { %4135 = vmatpush3.bf16.msra.mxu1 %v4132_v10 }
 0x16d   :  { %4137 = vmatprep.subr.bf16.mxu1 %v4136_v36 }
 0x170   :  { %4139 = vmatpush3.bf16.msra.mxu1 %v4136_v36  ;;  %v1821_v36 = vld [vmem:[%s6986_s11] sm:$0xff] }
 0x171   :  { %3450 = vmatprep.subr.msk.mxu1 %vm1740_vm0, %v1725_v16 }
 0x174   :  { %3451 = vmatpush3.msk.msra.mxu1 %vm1740_vm0, %v1725_v16  ;;  %v1828_v16 = vld [vmem:[%s6986_s11 + $0x38] sm:$0xff]  ;;  %vm4281_vm0 = vmpackc.low %vm2954_vm15, %vm4365_vm2 }
 0x175   :  { %4141 = vmatprep.subr.bf16.mxu1 %v4140_v26  ;;  %v4144_v20 = vpack.c.bf16 %v1831_v18, %v1828_v16  ;;  %v1830_v26 = vld [vmem:[%s6986_s11 + $0x48] sm:$0xff]  ;;  %v1869_v18 = vld [vmem:[%s6986_s11 + $0x180] sm:$0xff] }
 0x19e   :  { %v604_v2 = vpop.f32.mrb[0].mxu0 }
 0x19f   :  { %v4286_v3 = vadd.f32 %v604_v2, %v372_v62  ;;  %v606_v4 = vpop.f32.mrb[1].mxu0  ;;  %v1139_v2 = vrot.slane %v1134_v47, %v6515_v60 }
 0x1a0   :  { %v4287_v6 = vadd.f32 %v606_v4, %v376_v63  ;;  %v1143_v4 = vrot.slane %v1134_v47, %v6518_v61  ;;  %v1840_v47 = vld [vmem:[%s6986_s11 + $0x98] sm:$0xff] }
 0x1a2   :  { %4321 = vtanh.f32 %v4287_v6  ;;  %v610_v9 = vpop.f32.mrb[2].mxu0 }
 0x1a3   :  { %4323 = vtanh.f32 %v4286_v3  ;;  %v4288_v12 = vadd.f32 %v610_v9, %v372_v62  ;;  %v612_v34 = vpop.f32.mrb[3].mxu0 }
 0x1a4   :  { %v4289_v8 = vadd.f32 %v612_v34, %v376_v63  ;;  %4325 = vtanh.f32 %v832_v14 }
 0x1a6   :  { %4327 = vtanh.f32 %v4289_v8  ;;  %v1824_v8 = vld [vmem:[%s6986_s11 + $0x18] sm:$0xff] }
 0x1a7   :  { %4329 = vtanh.f32 %v4288_v12  ;;  %v4142_v19 = vpack.c.bf16 %v1824_v8, %v1821_v36  ;;  %v1873_v36 = vld [vmem:[%s6986_s11 + $0x1a0] sm:$0xff] }
 0x1a8   :  { %4331 = vtanh.f32 %v837_v52 }
 0x1ac   :  { %v6558_v23 = vpop.eup %4321 }
 0x1ad   :  { %v6560_v27 = vpop.eup %4323  ;;  %2169 = vmatprep.mubr.f32.mxu0 %v6558_v23 }
 0x1ae   :  { %2170 = vmatmul.mubr.f32.vlgmr.msra.gmra.mrb[18].mxu0 %v6560_v27  ;;  %v6571_v32 = vpop.eup %4325 }
 0x1af   :  { %4253 = vmatpush3.bf16.msra.mxu0 %v6492_v51 }
 0x1b0   :  { %v6574_v35 = vpop.eup %4327  ;;  %4255 = vmatprep.subr.bf16.mxu0 %v4254_v24 }
 0x1b1   :  { %v6576_v38 = vpop.eup %4329  ;;  %2174 = vmatprep.mubr.f32.mxu0 %v6574_v35 }
 0x1b2   :  { %2175 = vmatmul.mubr.f32.gmra.mrb[20].mxu0 %v6576_v38  ;;  %v6590_v40 = vpop.eup %4331 }
 0x1b3   :  { %4257 = vmatpush3.bf16.msra.mxu0 %v4254_v24  ;;  %3467 = vmatprep.mubr.msk.f32.mxu0 %vm1935_vm1, %v6571_v32  ;;  %v1827_v24 = vld [vmem:[%s6986_s11 + $0x30] sm:$0xff] }
 0x1b4   :  { %4260 = vmatprep.subr.msk.bf16.mxu0 %vm6581_vm3, %v4258_v37 }
 0x1b7   :  { %4263 = vmatpush3.bf16.msk.msra.mxu0 %vm6581_vm3, %v4258_v37  ;;  %v1837_v37 = vld [vmem:[%s6986_s11 + $0x80] sm:$0xff] }
 0x1ba   :  { %3468 = vmatmul.mubr.msk.f32.vlgmr.msra.gmra.mrb[22].mxu0 %vm1935_vm1, %v6590_v40 }
 0x1be   :  { %v3211_v41 = vpop.f32.mrb[4].mxu0 }
 0x1bf   :  { %v3212_v33 = vpop.f32.mrb[5].mxu0 }
 0x1c0   :  { %v3213_v43 = vadd.f32 %v3212_v33, %v3211_v41 }
 0x1c2   :  { %v3214_v44 = vpop.f32.mrb[6].mxu0  ;;  %v1449_v50 = vadd.f32 %v3213_v43, %v1147_v48  ;;  %v4146_v43 = vpack.c.bf16 %v1830_v26, %v1827_v24 }
 0x1c3   :  { %v3215_v45 = vpop.f32.mrb[7].mxu0 }
 0x1c4   :  { %v3216_v46 = vadd.f32 %v3215_v45, %v3214_v44  ;;  %v4148_v44 = vpack.c.bf16 %v1837_v37, %v1834_v31  ;;  %v1833_v45 = vld [vmem:[%s6986_s11 + $0x60] sm:$0xff]  ;;  %v1878_v31 = vld [vmem:[%s6986_s11 + $0x1c8] sm:$0xff] }
 0x1c5   :  { %v1882_v37 = vld [vmem:[%s6986_s11 + $0x1e8] sm:$0xff] }
 0x1c6   :  { %v1454_v53 = vadd.f32 %v3216_v46, %v1147_v48  ;;  %v1836_v46 = vld [vmem:[%s6986_s11 + $0x78] sm:$0xff]  ;;  %v4366_v48 = vmov 0.0  }
 0x1de   :  { %v3249_v49 = vpop.f32.mrb[8].mxu0 }
 0x1df   :  { %v3250_v14 = vpop.f32.mrb[9].mxu0 }
 0x1e0   :  { %v3251_v51 = vadd.f32 %v3250_v14, %v3249_v49  ;;  %v4150_v49 = vpack.c.bf16 %v1836_v46, %v1833_v45  ;;  %v1884_v45 = vld [vmem:[%s6986_s11 + $0x1f8] sm:$0xff] }
 0x1e1   :  { %v1888_v46 = vld [vmem:[%s6986_s11 + $0x218] sm:$0xff] }
 0x1e2   :  { %v1524_v17 = vadd.f32 %v3251_v51, %v1449_v50  ;;  %v3252_v25 = vpop.f32.mrb[10].mxu0  ;;  %v1839_v50 = vld [vmem:[%s6986_s11 + $0x90] sm:$0xff]  ;;  %v1842_v51 = vld [vmem:[%s6986_s11 + $0xa8] sm:$0xff] }
 0x1e3   :  { %v3253_v52 = vpop.f32.mrb[11].mxu0 }
 0x1e4   :  { %v3254_v54 = vadd.f32 %v3253_v52, %v3252_v25  ;;  %v1849_v25 = vld [vmem:[%s6986_s11 + $0xe0] sm:$0xff]  ;;  %v4154_v52 = vpack.c.bf16 %v1842_v51, %v1839_v50  ;;  %v1890_v50 = vld [vmem:[%s6986_s11 + $0x228] sm:$0xff] }
 0x1e5   :  { %v1894_v51 = vld [vmem:[%s6986_s11 + $0x248] sm:$0xff] }
 0x1e6   :  { %v1529_v30 = vadd.f32 %v3254_v54, %v1454_v53  ;;  %v1845_v54 = vld [vmem:[%s6986_s11 + $0xc0] sm:$0xff] }
 0x1fe   :  { %v3287_v22 = vpop.f32.mrb[12].mxu0 }
 0x1ff   :  { %v3288_v56 = vpop.f32.mrb[13].mxu0 }
 0x200   :  { %v3289_v57 = vadd.f32 %v3288_v56, %v3287_v22  ;;  %v1852_v22 = vld [vmem:[%s6986_s11 + $0xf8] sm:$0xff]  ;;  %v1855_v56 = vld [vmem:[%s6986_s11 + $0x110] sm:$0xff] }
 0x202   :  { %v6600_v58 = vadd.f32 %v3289_v57, %v1524_v17  ;;  %v3290_v42 = vpop.f32.mrb[14].mxu0  ;;  %v1846_v17 = vld [vmem:[%s6986_s11 + $0xc8] sm:$0xff] }
 0x203   :  { %v3291_v59 = vpop.f32.mrb[15].mxu0  ;;  %v4156_v53 = vpack.c.bf16 %v1849_v25, %v1846_v17  ;;  %v1897_v17 = vld [vmem:[%s6986_s11 + $0x260] sm:$0xff] }
 0x204   :  { %v3292_v62 = vadd.f32 %v3291_v59, %v3290_v42  ;;  %v4160_v42 = vpack.c.bf16 %v1855_v56, %v1852_v22  ;;  %v1851_v59 = vld [vmem:[%s6986_s11 + $0xf0] sm:$0xff] }
 0x205   :  { %v1903_v22 = vld [vmem:[%s6986_s11 + $0x290] sm:$0xff] }
 0x206   :  { %v6602_v63 = vadd.f32 %v3292_v62, %v1529_v30  ;;  %v1848_v30 = vld [vmem:[%s6986_s11 + $0xd8] sm:$0xff]  ;;  %v1854_v62 = vld [vmem:[%s6986_s11 + $0x108] sm:$0xff] }
 0x207   :  { %v4158_v57 = vpack.c.bf16 %v1848_v30, %v1845_v54  ;;  %v1896_v54 = vld [vmem:[%s6986_s11 + $0x258] sm:$0xff] }
 0x208   :  { %v1900_v30 = vld [vmem:[%s6986_s11 + $0x278] sm:$0xff] }
 0x21d   :  { %v1371_v7 = vpop.f32.mrb[12].mxu1 }
 0x21e   :  { %v3425_v55 = vpop.f32.mrb[16].mxu0  ;;  %v4290_v21 = vadd.f32 %v1371_v7, %v1139_v2  ;;  %v1373_v9 = vpop.f32.mrb[13].mxu1  ;;  %v1867_v7 = vld [vmem:[%s6986_s11 + $0x170] sm:$0xff] }
 0x21f   :  { %v1708_v0 = vadd.f32 %v3425_v55, %v3039_v1  ;;  %v1702_v3 = vpop.f32.mrb[17].mxu0  ;;  %v4291_v10 = vadd.f32 %v1373_v9, %v1143_v4  ;;  %v1861_v55 = vld [vmem:[%s6986_s11 + $0x140] sm:$0xff] }
 0x220   :  { %v1703_v6 = vadd.f32 %v3039_v1, %v1702_v3  ;;  %v1858_v1 = vld [vmem:[%s6986_s11 + $0x128] sm:$0xff]  ;;  %v1857_v3 = vld [vmem:[%s6986_s11 + $0x120] sm:$0xff] }
 0x221   :  { %v1377_v11 = vpop.f32.mrb[14].mxu1 }
 0x222   :  { %4333 = vtanh.f32 %v1703_v6  ;;  %v6609_v28 = vadd.f32 %v1377_v11, %v1139_v2  ;;  %v1379_v12 = vpop.f32.mrb[15].mxu1  ;;  %v4162_v2 = vpack.c.bf16 %v1854_v62, %v1851_v59  ;;  %v1864_v6 = vld [vmem:[%s6986_s11 + $0x158] sm:$0xff]  ;;  %v1866_v11 = vld [vmem:[%s6986_s11 + $0x168] sm:$0xff] }
 0x223   :  { %4335 = vtanh.f32 %v1708_v0  ;;  %v6611_v34 = vadd.f32 %v1379_v12, %v1143_v4  ;;  %v4164_v0 = vpack.c.bf16 %v1861_v55, %v1858_v1  ;;  %v1860_v4 = vld [vmem:[%s6986_s11 + $0x138] sm:$0xff]  ;;  %v4168_v9 = vpack.c.bf16 %v1867_v7, %v1864_v6  ;;  %v1870_v12 = vld [vmem:[%s6986_s11 + $0x188] sm:$0xff]  ;;  %v1909_v1 = vld [vmem:[%s6986_s11 + $0x2c0] sm:$0xff] }
 0x224   :  { %4337 = vtanh.f32 %v4290_v21  ;;  %v4166_v21 = vpack.c.bf16 %v1860_v4, %v1857_v3  ;;  %v4172_v16 = vpack.c.bf16 %v1873_v36, %v1870_v12  ;;  %v1902_v59 = vld [vmem:[%s6986_s11 + $0x288] sm:$0xff]  ;;  %v1908_v3 = vld [vmem:[%s6986_s11 + $0x2b8] sm:$0xff]  ;;  %v1915_v6 = vld [vmem:[%s6986_s11 + $0x2f0] sm:$0xff] }
 0x225   :  { %4339 = vtanh.f32 %v4291_v10  ;;  %v1863_v10 = vld [vmem:[%s6986_s11 + $0x150] sm:$0xff]  ;;  %v1906_v62 = vld [vmem:[%s6986_s11 + $0x2a8] sm:$0xff]  ;;  %v1912_v4 = vld [vmem:[%s6986_s11 + $0x2d8] sm:$0xff] }
 0x226   :  { %v4170_v8 = vpack.c.bf16 %v1866_v11, %v1863_v10  ;;  %v1914_v10 = vld [vmem:[%s6986_s11 + $0x2e8] sm:$0xff]  ;;  %v1921_v12 = vld [vmem:[%s6986_s11 + $0x320] sm:$0xff]  ;;  %4341 = vtanh.f32 %v6600_v58 }
 0x227   :  { %v1918_v11 = vld [vmem:[%s6986_s11 + $0x308] sm:$0xff]  ;;  %4343 = vtanh.f32 %v6611_v34 }
 0x228   :  { %4345 = vtanh.f32 %v6609_v28 }
 0x229   :  { %4347 = vtanh.f32 %v6602_v63 }
 0x22c   :  { %v4334_v15 = vpop.eup %4333 }
 0x22d   :  { %v4336_v29 = vpop.eup %4335  ;;  %3452 = vmatprep.mubr.msk.f32.mxu1 %vm1733_vm4, %v4334_v15  ;;  %v1876_v15 = vld [vmem:[%s6986_s11 + $0x1b8] sm:$0xff] }
 0x22e   :  { %v4338_v41 = vpop.eup %4337  ;;  %3453 = vmatmul.mubr.msk.f32.vlgmr.msra.gmra.mrb[16].mxu1 %vm1733_vm4, %v4336_v29  ;;  %v1875_v29 = vld [vmem:[%s6986_s11 + $0x1b0] sm:$0xff] }
 0x22f   :  { %v4340_v33 = vpop.eup %4339  ;;  %4143 = vmatpush1.bf16.msra.mxu1 %v4142_v19  ;;  %2015 = vmatprep.mubr.f32.mxu1 %v6558_v23  ;;  %v1843_v23 = vld [vmem:[%s6986_s11 + $0xb0] sm:$0xff]  ;;  %v1872_v19 = vld [vmem:[%s6986_s11 + $0x198] sm:$0xff] }
 0x230   :  { %4145 = vmatprep.subr.bf16.mxu1 %v4144_v20  ;;  %2261 = vmatprep.subr.mxu0 %v4340_v33  ;;  %v4152_v14 = vpack.c.bf16 %v1843_v23, %v1840_v47  ;;  %v1879_v20 = vld [vmem:[%s6986_s11 + $0x1d0] sm:$0xff]  ;;  %v4174_v24 = vpack.c.bf16 %v1872_v19, %v1869_v18  ;;  %v4178_v33 = vpack.c.bf16 %v1878_v31, %v1875_v29  ;;  %v1920_v18 = vld [vmem:[%s6986_s11 + $0x318] sm:$0xff]  ;;  %v1926_v29 = vld [vmem:[%s6986_s11 + $0x348] sm:$0xff] }
 0x231   :  { %2262 = vmatpush1.xpose.msra.mxu0 %v4338_v41  ;;  %v4176_v26 = vpack.c.bf16 %v1879_v20, %v1876_v15  ;;  %v1885_v41 = vld [vmem:[%s6986_s11 + $0x200] sm:$0xff]  ;;  %v1891_v47 = vld [vmem:[%s6986_s11 + $0x230] sm:$0xff]  ;;  %v1924_v19 = vld [vmem:[%s6986_s11 + $0x338] sm:$0xff] }
 0x232   :  { %3470 = vmatprep.subr.mxu0 %v4366_v48  ;;  %v1927_v15 = vld [vmem:[%s6986_s11 + $0x350] sm:$0xff]  ;;  %v1930_v31 = vld [vmem:[%s6986_s11 + $0x368] sm:$0xff] }
 0x233   :  { %4147 = vmatpush1.bf16.msra.mxu1 %v4146_v43  ;;  %v4180_v43 = vpack.c.bf16 %v1885_v41, %v1882_v37  ;;  %v1933_v37 = vld [vmem:[%s6986_s11 + $0x380] sm:$0xf] }
 0x234   :  { %4149 = vmatprep.subr.bf16.mxu1 %v4148_v44  ;;  %v1881_v44 = vld [vmem:[%s6986_s11 + $0x1e0] sm:$0xff] }
 0x235   :  { %v4182_v23 = vpack.c.bf16 %v1884_v45, %v1881_v44  ;;  %v1932_v44 = vld [vmem:[%s6986_s11 + $0x378] sm:$0xf] }
 0x237   :  { %4151 = vmatpush1.bf16.msra.mxu1 %v4150_v49  ;;  %v4184_v49 = vpack.c.bf16 %v1891_v47, %v1888_v46 }
 0x238   :  { %4153 = vmatprep.subr.bf16.mxu1 %v4152_v14  ;;  %v1887_v14 = vld [vmem:[%s6986_s11 + $0x210] sm:$0xff] }
 0x239   :  { %v4186_v25 = vpack.c.bf16 %v1890_v50, %v1887_v14 }
 0x23b   :  { %4155 = vmatpush1.bf16.msra.mxu1 %v4154_v52  ;;  %v4188_v52 = vpack.c.bf16 %v1897_v17, %v1894_v51 }
 0x23c   :  { %4157 = vmatprep.subr.bf16.mxu1 %v4156_v53  ;;  %v1893_v53 = vld [vmem:[%s6986_s11 + $0x240] sm:$0xff] }
 0x23d   :  { %v4190_v56 = vpack.c.bf16 %v1896_v54, %v1893_v53 }
 0x23f   :  { %4159 = vmatpush1.bf16.msra.mxu1 %v4158_v57  ;;  %v4192_v57 = vpack.c.bf16 %v1903_v22, %v1900_v30 }
 0x240   :  { %4161 = vmatprep.subr.bf16.mxu1 %v4160_v42  ;;  %v1899_v42 = vld [vmem:[%s6986_s11 + $0x270] sm:$0xff] }
 0x241   :  { %v4194_v55 = vpack.c.bf16 %v1902_v59, %v1899_v42 }
 0x243   :  { %4163 = vmatpush1.bf16.msra.mxu1 %v4162_v2  ;;  %v4196_v2 = vpack.c.bf16 %v1909_v1, %v1906_v62 }
 0x244   :  { %4165 = vmatprep.subr.bf16.mxu1 %v4164_v0  ;;  %v1905_v0 = vld [vmem:[%s6986_s11 + $0x2a0] sm:$0xff] }
 0x245   :  { %v4198_v7 = vpack.c.bf16 %v1908_v3, %v1905_v0  ;;  %v2430_v0 = vsub.s32 3, %v6311_v5 }
 0x247   :  { %4167 = vmatpush1.bf16.msra.mxu1 %v4166_v21  ;;  %v4200_v21 = vpack.c.bf16 %v1915_v6, %v1912_v4  ;;  %v2437_v6 = vsub.s32 4, %v6311_v5 }
 0x248   :  { %4169 = vmatprep.subr.bf16.mxu1 %v4168_v9  ;;  %v1911_v9 = vld [vmem:[%s6986_s11 + $0x2d0] sm:$0xff] }
 0x249   :  { %v4202_v36 = vpack.c.bf16 %v1914_v10, %v1911_v9 }
 0x24b   :  { %4171 = vmatpush1.bf16.msra.mxu1 %v4170_v8  ;;  %v4204_v8 = vpack.c.bf16 %v1921_v12, %v1918_v11  ;;  %v2451_v12 = vsub.s32 6, %v6311_v5 }
 0x24c   :  { %4173 = vmatprep.subr.bf16.mxu1 %v4172_v16  ;;  %v1917_v16 = vld [vmem:[%s6986_s11 + $0x300] sm:$0xff] }
 0x24d   :  { %v4206_v20 = vpack.c.bf16 %v1920_v18, %v1917_v16 }
 0x24f   :  { %4175 = vmatpush1.bf16.msra.mxu1 %v4174_v24  ;;  %v4208_v24 = vpack.c.bf16 %v1927_v15, %v1924_v19  ;;  %v2458_v19 = vsub.s32 7, %v6311_v5 }
 0x250   :  { %4177 = vmatprep.subr.bf16.mxu1 %v4176_v26  ;;  %v1923_v26 = vld [vmem:[%s6986_s11 + $0x330] sm:$0xff] }
 0x251   :  { %v4210_v41 = vpack.c.bf16 %v1926_v29, %v1923_v26  ;;  %v2840_v29 = vld [vmem:[%s6990_s12 + $0x18] sm:$0xff] }
 0x253   :  { %4179 = vmatpush1.bf16.msra.mxu1 %v4178_v33  ;;  %v4212_v33 = vpack.c.bf16 %v1933_v37, %v1930_v31 }
 0x254   :  { %4181 = vmatprep.subr.bf16.mxu1 %v4180_v43  ;;  %v1929_v43 = vld [vmem:[%s6986_s11 + $0x360] sm:$0xff] }
 0x255   :  { %v4215_v45 = vpack.c.bf16 %v1932_v44, %v1929_v43  ;;  %v2843_v44 = vld [vmem:[%s6990_s12 + $0x30] sm:$0x3] }
 0x257   :  { %4183 = vmatpush1.bf16.msra.mxu1 %v4182_v23 }
 0x258   :  { %4185 = vmatprep.subr.bf16.mxu1 %v4184_v49 }
 0x25b   :  { %4187 = vmatpush1.bf16.msra.mxu1 %v4186_v25  ;;  %v4342_v25 = vpop.eup %4341 }
 0x25c   :  { %4189 = vmatprep.subr.bf16.mxu1 %v4188_v52  ;;  %v4344_v52 = vpop.eup %4343 }
 0x25d   :  { %v4346_v54 = vpop.eup %4345 }
 0x25e   :  { %v4348_v28 = vpop.eup %4347 }
 0x25f   :  { %4191 = vmatpush1.bf16.msra.mxu1 %v4190_v56 }
 0x260   :  { %4193 = vmatprep.subr.bf16.mxu1 %v4192_v57 }
 0x263   :  { %4195 = vmatpush1.bf16.msra.mxu1 %v4194_v55 }
 0x264   :  { %4197 = vmatprep.subr.bf16.mxu1 %v4196_v2 }
 0x267   :  { %4199 = vmatpush1.bf16.msra.mxu1 %v4198_v7 }
 0x268   :  { %4201 = vmatprep.subr.bf16.mxu1 %v4200_v21  ;;  %v2444_v21 = vsub.s32 5, %v6311_v5  ;;  %v2839_v5 = vld [vmem:[%s6990_s12 + $0x10] sm:$0xff] }
 0x269   :  { %v4268_v31 = vpack.c.bf16 %v2840_v29, %v2839_v5 }
 0x26b   :  { %4203 = vmatpush1.bf16.msra.mxu1 %v4202_v36 }
 0x26c   :  { %4205 = vmatprep.subr.bf16.mxu1 %v4204_v8 }
 0x26e   :  { %2016 = vmatmul.mubr.f32.vlgmr.msra.gmra.mrb[18].mxu1 %v6560_v27 }
 0x26f   :  { %2021 = vmatprep.mubr.f32.mxu1 %v6574_v35  ;;  %4207 = vmatpush1.bf16.msra.mxu1 %v4206_v20 }
 0x270   :  { %4209 = vmatprep.subr.bf16.mxu1 %v4208_v24  ;;  %v2838_v24 = vld [vmem:[%s6990_s12 + $0x8] sm:$0xff] }
 0x272   :  { %2022 = vmatmul.mubr.f32.gmra.mrb[20].mxu1 %v6576_v38 }
 0x273   :  { %4211 = vmatpush1.bf16.msra.mxu1 %v4210_v41  ;;  %2092 = vmatprep.mubr.f32.mxu1 %v4366_v48  ;;  %v2841_v41 = vld [vmem:[%s6990_s12 + $0x20] sm:$0xff] }
 0x274   :  { %4214 = vmatprep.subr.msk.bf16.mxu1 %vm6581_vm3, %v4212_v33  ;;  %v2842_v33 = vld [vmem:[%s6990_s12 + $0x28] sm:$0xff] }
 0x275   :  { %v4272_v43 = vpack.c.bf16 %v2842_v33, %v2841_v41 }
 0x277   :  { %4217 = vmatpush1.bf16.msk.msra.mxu1 %vm6581_vm3, %v4215_v45  ;;  %v3040_v45 = vld [vmem:[%s6991_s10] ss:$0 sm:$0xff] }
 0x27a   :  { %3046 = vmatmul.mubr.msk.f32.vlgmr.msra.gmra.mrb[18].mxu1 %vm1935_vm1, %v6571_v32 }
 0x27b   :  { %2098 = vmatprep.mubr.f32.mxu1 %v4366_v48 }
 0x27e   :  { %3047 = vmatmul.mubr.msk.f32.gmra.mrb[20].mxu1 %vm1935_vm1, %v6590_v40 }
 0x281   :  { %v3358_v27 = vpop.f32.mrb[18].mxu0 }
 0x282   :  { %v3359_v35 = vpop.f32.mrb[19].mxu0 }
 0x283   :  { %v3360_v38 = vadd.f32 %v3359_v35, %v3358_v27 }
 0x285   :  { %v3361_v46 = vpop.f32.mrb[20].mxu0 }
 0x286   :  { %v3362_v47 = vpop.f32.mrb[21].mxu0 }
 0x287   :  { %v3363_v23 = vadd.f32 %v3362_v47, %v3361_v46 }
 0x28d   :  { %v3469_v49 = vpop.f32.mrb[22].mxu0 }
 0x28e   :  { %v2252_v14 = vadd.f32 %v3469_v49, %v3363_v23  ;;  %v2246_v50 = vpop.f32.mrb[23].mxu0 }
 0x28f   :  { %v2247_v51 = vadd.f32 %v3360_v38, %v2246_v50 }
 0x301   :  { %v6850_v39 = vpop.f32.mrb[16].mxu1 }
 0x302   :  { %v6852_v17 = vpop.f32.mrb[17].mxu1  ;;  %v1816_v35 = vadd.f32 %v6850_v39, %v3040_v45 }
 0x303   :  { %v1811_v27 = vadd.f32 %v3040_v45, %v6852_v17 }
 0x34d   :  { %v2094_v32 = vpop.f32.mrb[18].mxu1 }
 0x34e   :  { %v2096_v40 = vpop.f32.mrb[19].mxu1 }
 0x34f   :  { %2325 = vmatprep.mubr.f32.mxu0 %v2096_v40 }
 0x350   :  { %2326 = vmatmul.mubr.f32.vlgmr.msra.gmra.mrb[24].mxu0 %v2094_v32 }
 0x351   :  { %3471 = vmatpush3.xpose.msk.msra.mxu0 %vm1935_vm1, %v4342_v25  ;;  %v2100_v53 = vpop.f32.mrb[20].mxu1  ;;  %3472 = vmatprep.mubr.msk.f32.mxu0 %vm4367_vm5, %v4366_v48 }
 0x352   :  { %2534 = vmatprep.subr.mxu0 %v4344_v52  ;;  %v2102_v58 = vpop.f32.mrb[21].mxu1 }
 0x358   :  { %3473 = vmatmul.mubr.msk.f32.vlgmr.msra.gmra.mrb[24].mxu0 %vm1935_vm1, %v2247_v51 }
 0x359   :  { %2535 = vmatpush1.xpose.msra.mxu0 %v4346_v54  ;;  %2598 = vmatprep.mubr.f32.mxu0 %v2102_v58 }
 0x35a   :  { %3475 = vmatprep.subr.mxu0 %v4366_v48 }
 0x35c   :  { %2599 = vmatmul.mubr.f32.vlgmr.msra.gmra.mrb[26].mxu0 %v2100_v53 }
 0x35d   :  { %3476 = vmatpush3.xpose.msk.msra.mxu0 %vm1935_vm1, %v4348_v28  ;;  %3477 = vmatprep.mubr.msk.f32.mxu0 %vm4367_vm5, %v4366_v48 }
 0x364   :  { %3478 = vmatmul.mubr.msk.f32.vlgmr.msra.gmra.mrb[26].mxu0 %vm1935_vm1, %v2252_v14  ;;  %vm2947_vm1 = vcmask 244736  }
 0x42b   :  { %v2397_v34 = vpop.f32.mrb[24].mxu0 }
 0x42c   :  { %v3053_v30 = vmul.f32 -1.442695, %v2397_v34  ;;  %v3474_v63 = vpop.f32.mrb[25].mxu0 }
 0x42e   :  { %4349 = vpow2.f32 %v3053_v30 }
 0x437   :  { %v2670_v22 = vpop.f32.mrb[26].mxu0 }
 0x438   :  { %v4350_v56 = vpop.eup %4349  ;;  %v3056_v57 = vmul.f32 -1.442695, %v2670_v22  ;;  %v3479_v42 = vpop.f32.mrb[27].mxu0 }
 0x439   :  { %v2404_v59 = vadd.f32 1.0, %v4350_v56 }
 0x43a   :  { %4351 = vpow2.f32 %v3056_v57 }
 0x43b   :  { %4353 = vrcp.f32 %v2404_v59 }
 0x444   :  { %v4352_v62 = vpop.eup %4351 }
 0x445   :  { %v4354_v1 = vpop.eup %4353  ;;  %v2677_v55 = vadd.f32 1.0, %v4352_v62 }
 0x446   :  { %v2424_v2 = vrot.slane %v4354_v1, %v6326_v13  ;;  %v2410_v48 = vrot.slane %v4354_v1, %v6515_v60  ;;  %v2431_v3 = vrot.slane %v4354_v1, %v2430_v0  ;;  %v2417_v4 = vrot.slane %v4354_v1, %v6518_v61 }
 0x447   :  { %4355 = vrcp.f32 %v2677_v55  ;;  %v2438_v7 = vrot.slane %v4354_v1, %v2437_v6  ;;  %v2445_v10 = vrot.slane %v4354_v1, %v2444_v21  ;;  %v2452_v36 = vrot.slane %v4354_v1, %v2451_v12 }
 0x448   :  { %2426 = vbcast.lane.b32.xlu1 %v2424_v2, 256  ;;  %2412 = vbcast.lane.b32.xlu0 %v2410_v48, 256  ;;  %v2459_v20 = vrot.slane %v4354_v1, %v2458_v19  ;;  %4357 = vtanh.f32 %v1811_v27 }
 0x449   :  { %4359 = vtanh.f32 %v1816_v35 }
 0x44c   :  { %2433 = vbcast.lane.b32.xlu1 %v2431_v3, 256  ;;  %2419 = vbcast.lane.b32.xlu0 %v2417_v4, 256 }
 0x450   :  { %2440 = vbcast.lane.b32.xlu1 %v2438_v7, 256 }
 0x451   :  { %v4356_v9 = vpop.eup %4355 }
 0x452   :  { %v2690_v11 = vrot.slane %v4356_v9, %v6518_v61  ;;  %v2697_v8 = vrot.slane %v4356_v9, %v6326_v13  ;;  %v2704_v16 = vrot.slane %v4356_v9, %v2430_v0  ;;  %v2683_v18 = vrot.slane %v4356_v9, %v6515_v60  ;;  %v2837_v61 = vld [vmem:[%s6990_s12] sm:$0xff]  ;;  %v6902_v38 = vpop.eup %4357 }
 0x453   :  { %v2711_v15 = vrot.slane %v4356_v9, %v2437_v6  ;;  %v4264_v13 = vpack.c.bf16 %v2838_v24, %v2837_v61  ;;  %v2718_v26 = vrot.slane %v4356_v9, %v2444_v21  ;;  %v2732_v60 = vrot.slane %v4356_v9, %v2458_v19  ;;  %v6914_v1 = vpop.eup %4359 }
 0x454   :  { %2447 = vbcast.lane.b32.xlu1 %v2445_v10, 256  ;;  %2692 = vbcast.lane.b32.xlu0 %v2690_v11, 256  ;;  %v2725_v37 = vrot.slane %v4356_v9, %v2451_v12 }
 0x455   :  { %4265 = vmatprep.subr.bf16.mxu0 %v4264_v13 }
 0x456   :  { %4267 = vmatpush3.bf16.msra.mxu0 %v4264_v13 }
 0x457   :  { %4269 = vmatprep.subr.bf16.mxu0 %v4268_v31 }
 0x458   :  { %2454 = vbcast.lane.b32.xlu1 %v2452_v36, 256  ;;  %2699 = vbcast.lane.b32.xlu0 %v2697_v8, 256 }
 0x45a   :  { %4271 = vmatpush3.bf16.msra.mxu0 %v4268_v31 }
 0x45b   :  { %4273 = vmatprep.subr.bf16.mxu0 %v4272_v43 }
 0x45c   :  { %2706 = vbcast.lane.b32.xlu0 %v2704_v16, 256  ;;  %2685 = vbcast.lane.b32.xlu1 %v2683_v18, 256 }
 0x45e   :  { %4275 = vmatpush3.bf16.msra.mxu0 %v4272_v43 }
 0x45f   :  { %3492 = vmatprep.subr.msk.mxu0 %vm2855_vm6, %v2843_v44 }
 0x460   :  { %2713 = vbcast.lane.b32.xlu0 %v2711_v15, 256  ;;  %2461 = vbcast.lane.b32.xlu1 %v2459_v20, 256 }
 0x462   :  { %3493 = vmatpush3.msk.msra.mxu0 %vm2855_vm6, %v2843_v44 }
 0x464   :  { %2720 = vbcast.lane.b32.xlu0 %v2718_v26, 256  ;;  %2734 = vbcast.lane.b32.xlu1 %v2732_v60, 256 }
 0x468   :  { %2727 = vbcast.lane.b32.xlu0 %v2725_v37, 256 }
 0x4ba   :  { %v2427_v46 = vpop.permute.xlu1 %2426  ;;  %v2413_v47 = vpop.permute.xlu0 %2412 }
 0x4bb   :  { %v2465_v23 = vmul.f32 %v6902_v38, %v2427_v46  ;;  %v2463_v49 = vmul.f32 %v6902_v38, %v2413_v47 }
 0x4bd   :  { %v2486_v14 = vsel %vm2471_vm7, %v2465_v23, -inf  ;;  %v2472_v50 = vsel %vm2471_vm7, %v2463_v49, -inf }
 0x4be   :  { %v2487_v51 = vrot.slane %v2486_v14, 4  ;;  %v2473_v32 = vrot.slane %v2472_v50, 4  ;;  %v2434_v17 = vpop.permute.xlu1 %2433  ;;  %v2420_v40 = vpop.permute.xlu0 %2419 }
 0x4bf   :  { %v2466_v39 = vmul.f32 %v6902_v38, %v2434_v17  ;;  %v2464_v25 = vmul.f32 %v6902_v38, %v2420_v40 }
 0x4c0   :  { %v2488_v52 = vmax.f32 %v2486_v14, %v2487_v51  ;;  %v2474_v53 = vmax.f32 %v2472_v50, %v2473_v32 }
 0x4c1   :  { %v2493_v58 = vsel %vm2471_vm7, %v2466_v39, -inf  ;;  %v2479_v54 = vsel %vm2471_vm7, %v2464_v25, -inf }
 0x4c2   :  { %v2475_v28 = vrot.slane %v2474_v53, 2  ;;  %v2494_v34 = vrot.slane %v2493_v58, 4  ;;  %v2480_v30 = vrot.slane %v2479_v54, 4  ;;  %v2441_v63 = vpop.permute.xlu1 %2440  ;;  %v2489_v22 = vrot.slane %v2488_v52, 2 }
 0x4c3   :  { %v2467_v56 = vmul.f32 %v6902_v38, %v2441_v63 }
 0x4c4   :  { %v2476_v57 = vmax.f32 %v2474_v53, %v2475_v28  ;;  %v2495_v42 = vmax.f32 %v2493_v58, %v2494_v34  ;;  %v2481_v59 = vmax.f32 %v2479_v54, %v2480_v30  ;;  %v2490_v3 = vmax.f32 %v2488_v52, %v2489_v22 }
 0x4c5   :  { %v2500_v62 = vsel %vm2471_vm7, %v2467_v56, -inf }
 0x4c6   :  { %v2496_v55 = vrot.slane %v2495_v42, 2  ;;  %v2482_v2 = vrot.slane %v2481_v59, 2  ;;  %v2448_v48 = vpop.permute.xlu1 %2447  ;;  %v2693_v0 = vpop.permute.xlu0 %2692  ;;  %v2501_v4 = vrot.slane %v2500_v62, 4  ;;  %v2477_v21 = vrot.slane %v2476_v57, 1 }
 0x4c7   :  { %v2468_v6 = vmul.f32 %v6902_v38, %v2448_v48  ;;  %v2737_v7 = vmul.f32 %v6914_v1, %v2693_v0  ;;  %v2491_v20 = vrot.slane %v2490_v3, 1 }
 0x4c8   :  { %v2483_v9 = vmax.f32 %v2481_v59, %v2482_v2  ;;  %v2497_v10 = vmax.f32 %v2495_v42, %v2496_v55  ;;  %v2502_v11 = vmax.f32 %v2500_v62, %v2501_v4  ;;  %v2478_v26 = vmax.f32 %v2476_v57, %v2477_v21 }
 0x4c9   :  { %v2507_v12 = vsel %vm2471_vm7, %v2468_v6, -inf  ;;  %v2751_v36 = vsel %vm2471_vm7, %v2737_v7, -inf  ;;  %v2492_v46 = vmax.f32 %v2490_v3, %v2491_v20 }
 0x4ca   :  { %v2484_v8 = vrot.slane %v2483_v9, 1  ;;  %v2508_v16 = vrot.slane %v2507_v12, 4  ;;  %v2752_v18 = vrot.slane %v2751_v36, 4  ;;  %v2455_v19 = vpop.permute.xlu1 %2454  ;;  %v2700_v15 = vpop.permute.xlu0 %2699  ;;  %v2503_v61 = vrot.slane %v2502_v11, 2 }
 0x4cb   :  { %v2469_v24 = vmul.f32 %v6902_v38, %v2455_v19  ;;  %v2738_v13 = vmul.f32 %v6914_v1, %v2700_v15  ;;  %v2498_v31 = vrot.slane %v2497_v10, 1 }
 0x4cc   :  { %v2485_v60 = vmax.f32 %v2483_v9, %v2484_v8  ;;  %v2509_v5 = vmax.f32 %v2507_v12, %v2508_v16  ;;  %v2753_v29 = vmax.f32 %v2751_v36, %v2752_v18  ;;  %v2504_v37 = vmax.f32 %v2502_v11, %v2503_v61 }
 0x4cd   :  { %v2514_v41 = vsel %vm2471_vm7, %v2469_v24, -inf  ;;  %v2758_v33 = vsel %vm2471_vm7, %v2738_v13, -inf  ;;  %v2499_v17 = vmax.f32 %v2497_v10, %v2498_v31 }
 0x4ce   :  { %v2510_v43 = vrot.slane %v2509_v5, 2  ;;  %v2754_v44 = vrot.slane %v2753_v29, 2  ;;  %v2515_v45 = vrot.slane %v2514_v41, 4  ;;  %v2707_v27 = vpop.permute.xlu0 %2706  ;;  %v2686_v35 = vpop.permute.xlu1 %2685  ;;  %v2809_v47 = vsel %vm2808_vm8, %v2485_v60, %v2478_v26 }
 0x4cf   :  { %v2759_v23 = vrot.slane %v2758_v33, 4  ;;  %v2739_v49 = vmul.f32 %v6914_v1, %v2707_v27  ;;  %v2505_v14 = vrot.slane %v2504_v37, 1  ;;  %v2736_v32 = vmul.f32 %v6914_v1, %v2686_v35 }
 0x4d0   :  { %v2511_v50 = vmax.f32 %v2509_v5, %v2510_v43  ;;  %v2516_v51 = vmax.f32 %v2514_v41, %v2515_v45  ;;  %v2811_v25 = vsel %vm2810_vm9, %v2492_v46, %v2809_v47  ;;  %v2755_v52 = vmax.f32 %v2753_v29, %v2754_v44 }
 0x4d1   :  { %v2760_v40 = vmax.f32 %v2758_v33, %v2759_v23  ;;  %v2765_v39 = vsel %vm2471_vm7, %v2739_v49, -inf  ;;  %v2744_v30 = vsel %vm2471_vm7, %v2736_v32, -inf  ;;  %v2506_v56 = vmax.f32 %v2504_v37, %v2505_v14 }
 0x4d2   :  { %v2517_v53 = vrot.slane %v2516_v51, 2  ;;  %v2766_v58 = vrot.slane %v2765_v39, 4  ;;  %v2714_v54 = vpop.permute.xlu0 %2713  ;;  %v2462_v28 = vpop.permute.xlu1 %2461  ;;  %v2512_v57 = vrot.slane %v2511_v50, 1  ;;  %v2745_v55 = vrot.slane %v2744_v30, 4 }
 0x4d3   :  { %v2761_v34 = vrot.slane %v2760_v40, 2  ;;  %v2740_v63 = vmul.f32 %v6914_v1, %v2714_v54  ;;  %v2470_v22 = vmul.f32 %v6902_v38, %v2462_v28  ;;  %v2756_v0 = vrot.slane %v2755_v52, 1 }
 0x4d4   :  { %v2518_v42 = vmax.f32 %v2516_v51, %v2517_v53  ;;  %v2767_v59 = vmax.f32 %v2765_v39, %v2766_v58  ;;  %v2813_v21 = vsel %vm2812_vm10, %v2499_v17, %v2811_v25  ;;  %v2746_v9 = vmax.f32 %v2744_v30, %v2745_v55 }
 0x4d5   :  { %v2762_v62 = vmax.f32 %v2760_v40, %v2761_v34  ;;  %v2772_v2 = vsel %vm2471_vm7, %v2740_v63, -inf  ;;  %v2521_v48 = vsel %vm2471_vm7, %v2470_v22, -inf  ;;  %v2513_v12 = vmax.f32 %v2511_v50, %v2512_v57 }
 0x4d6   :  { %v2773_v3 = vrot.slane %v2772_v2, 4  ;;  %v2522_v4 = vrot.slane %v2521_v48, 4  ;;  %v2721_v6 = vpop.permute.xlu0 %2720  ;;  %v2735_v7 = vpop.permute.xlu1 %2734  ;;  %v2768_v38 = vrot.slane %v2767_v59, 2  ;;  %v2519_v36 = vrot.slane %v2518_v42, 1 }
 0x4d7   :  { %v2741_v10 = vmul.f32 %v6914_v1, %v2721_v6  ;;  %v2743_v11 = vmul.f32 %v6914_v1, %v2735_v7  ;;  %v2763_v18 = vrot.slane %v2762_v62, 1  ;;  %v2747_v19 = vrot.slane %v2746_v9, 2  ;;  %v2936_v6 = vld [vmem:[%s6992_s14] sm:$0xff]  ;;  %v2937_v7 = vld [vmem:[%s6992_s14 + $0x8] sm:$0xff] }
 0x4d8   :  { %v2774_v8 = vmax.f32 %v2772_v2, %v2773_v3  ;;  %v2523_v16 = vmax.f32 %v2521_v48, %v2522_v4  ;;  %v2757_v61 = vmax.f32 %v2755_v52, %v2756_v0  ;;  %v2769_v5 = vmax.f32 %v2767_v59, %v2768_v38 }
 0x4d9   :  { %v2779_v15 = vsel %vm2471_vm7, %v2741_v10, -inf  ;;  %v2793_v20 = vsel %vm2471_vm7, %v2743_v11, -inf  ;;  %v2748_v29 = vmax.f32 %v2746_v9, %v2747_v19  ;;  %v2520_v41 = vmax.f32 %v2518_v42, %v2519_v36  ;;  %v2939_v9 = vld [vmem:[%s6992_s14 + $0x18] sm:$0x3f]  ;;  %v3057_v11 = vld [vmem:[%s6993_s13] ss:$0 sm:$0xff] }
 0x4da   :  { %v2775_v24 = vrot.slane %v2774_v8, 2  ;;  %v2524_v13 = vrot.slane %v2523_v16, 2  ;;  %v2780_v26 = vrot.slane %v2779_v15, 4  ;;  %v2728_v60 = vpop.permute.xlu0 %2727  ;;  %v2794_v31 = vrot.slane %v2793_v20, 4 }
 0x4db   :  { %v2742_v37 = vmul.f32 %v6914_v1, %v2728_v60  ;;  %v2764_v45 = vmax.f32 %v2762_v62, %v2763_v18  ;;  %v2749_v27 = vrot.slane %v2748_v29, 1  ;;  %v2815_v14 = vsel %vm2814_vm11, %v2506_v56, %v2813_v21  ;;  %v2938_v21 = vld [vmem:[%s6992_s14 + $0x10] sm:$0xff] }
 0x4dc   :  { %v2776_v33 = vmax.f32 %v2774_v8, %v2775_v24  ;;  %v2525_v43 = vmax.f32 %v2523_v16, %v2524_v13  ;;  %v2781_v44 = vmax.f32 %v2779_v15, %v2780_v26  ;;  %v2795_v35 = vmax.f32 %v2793_v20, %v2794_v31  ;;  %v3061_v15 = vld [vmem:[%s6994_s15] ss:$0 sm:$0xff] }
 0x4dd   :  { %v2786_v46 = vsel %vm2471_vm7, %v2742_v37, -inf  ;;  %v2770_v50 = vrot.slane %v2769_v5, 1  ;;  %v2750_v51 = vmax.f32 %v2748_v29, %v2749_v27  ;;  %v2817_v17 = vsel %vm2816_vm12, %v2513_v12, %v2815_v14 }
 0x4de   :  { %v2526_v47 = vrot.slane %v2525_v43, 1  ;;  %v2782_v23 = vrot.slane %v2781_v44, 2  ;;  %v2787_v49 = vrot.slane %v2786_v46, 4  ;;  %v2796_v32 = vrot.slane %v2795_v35, 2 }
 0x4df   :  { %v2777_v1 = vrot.slane %v2776_v33, 1  ;;  %v2830_v52 = vsel %vm2808_vm8, %v2757_v61, %v2750_v51  ;;  %v2819_v58 = vsel %vm2818_vm13, %v2520_v41, %v2817_v17  ;;  %v2771_v63 = vmax.f32 %v2769_v5, %v2770_v50 }
 0x4e0   :  { %v2527_v40 = vmax.f32 %v2525_v43, %v2526_v47  ;;  %v2783_v39 = vmax.f32 %v2781_v44, %v2782_v23  ;;  %v2788_v25 = vmax.f32 %v2786_v46, %v2787_v49  ;;  %v2797_v53 = vmax.f32 %v2795_v35, %v2796_v32 }
 0x4e1   :  { %v2831_v54 = vsel %vm2810_vm9, %v2764_v45, %v2830_v52  ;;  %v2778_v22 = vmax.f32 %v2776_v33, %v2777_v1  ;;  %v4276_v38 = vpack.c.bf16 %v2937_v7, %v2936_v6  ;;  %v4280_v10 = vpack.c.bf16 %v2939_v9, %v2938_v21 }
 0x4e2   :  { %v2784_v28 = vrot.slane %v2783_v39, 1  ;;  %v2789_v34 = vrot.slane %v2788_v25, 2  ;;  %v2821_v30 = vsel %vm2820_vm14, %v2527_v40, %v2819_v58  ;;  %v2832_v57 = vsel %vm2812_vm10, %v2771_v63, %v2831_v54 }
 0x4e3   :  { %3494 = vmatprep.mubr.msk.f32.mxu0 %vm2471_vm7, %v2821_v30  ;;  %v2798_v59 = vrot.slane %v2797_v53, 1  ;;  %v2833_v55 = vsel %vm2814_vm11, %v2778_v22, %v2832_v57  ;;  %4277 = vmatprep.subr.bf16.mxu1 %v4276_v38 }
 0x4e4   :  { %v2790_v56 = vmax.f32 %v2788_v25, %v2789_v34  ;;  %v2785_v42 = vmax.f32 %v2783_v39, %v2784_v28  ;;  %4279 = vmatpush3.bf16.msra.mxu1 %v4276_v38 }
 0x4e5   :  { %v2799_v48 = vmax.f32 %v2797_v53, %v2798_v59  ;;  %4282 = vmatprep.subr.msk.bf16.mxu1 %vm4281_vm0, %v4280_v10 }
 0x4e6   :  { %v2791_v62 = vrot.slane %v2790_v56, 1  ;;  %v2834_v0 = vsel %vm2816_vm12, %v2785_v42, %v2833_v55 }
 0x4e8   :  { %v2792_v2 = vmax.f32 %v2790_v56, %v2791_v62  ;;  %4285 = vmatpush3.bf16.msk.msra.mxu1 %vm4281_vm0, %v4280_v10 }
 0x4ea   :  { %v2835_v3 = vsel %vm2818_vm13, %v2792_v2, %v2834_v0 }
 0x4eb   :  { %v2836_v4 = vsel %vm2820_vm14, %v2799_v48, %v2835_v3 }
 0x4ec   :  { %3495 = vmatmul.mubr.msk.f32.vlgmr.msra.gmra.mrb[28].mxu0 %vm2471_vm7, %v2836_v4 }
 0x5bf   :  { %v3496_v12 = vpop.f32.mrb[28].mxu0 }
 0x5c0   :  { %v2931_v36 = vadd.f32 %v3496_v12, %v3057_v11  ;;  %v2925_v8 = vpop.f32.mrb[29].mxu0 }
 0x5c1   :  { %v2926_v16 = vadd.f32 %v3057_v11, %v2925_v8 }
 0x5c3   :  { %4361 = vtanh.f32 %v2926_v16 }
 0x5c4   :  { %4363 = vtanh.f32 %v2931_v36 }
 0x5cd   :  { %v4362_v18 = vpop.eup %4361 }
 0x5ce   :  { %v4364_v19 = vpop.eup %4363  ;;  %3505 = vmatprep.mubr.msk.f32.mxu1 %vm2947_vm1, %v4362_v18 }
 0x5cf   :  { %3506 = vmatmul.mubr.msk.f32.vlgmr.msra.gmra.mrb[22].mxu1 %vm2947_vm1, %v4364_v19 }
 0x6a2   :  { %v3507_v20 = vpop.f32.mrb[22].mxu1 }
 0x6a3   :  { %v3030_v61 = vadd.f32 %v3507_v20, %v3061_v15  ;;  %v3024_v24 = vpop.f32.mrb[23].mxu1 }
 0x6a4   :  { %v3025_v13 = vadd.f32 %v3061_v15, %v3024_v24 }
 0x6a5   :  { %3034 = vst [vmem:[%s6995_s16 + $0x8] sm:$0xff] %v3030_v61 }
 0x6a6   :  { %3033 = vst [vmem:[%s6995_s16] sm:$0xff] %v3025_v13 }

</bundles_post_ra>
